<compile_context>
chip_gen: v7x
topology: tpu7x:2x2x1
jax: 0.10.0
libtpu: 0.0.40
codegen_flags: <defaults>
</compile_context>

<pallas_src>
import jax
import jax.numpy as jnp
from jax.experimental import pallas as pl
from jax.experimental.pallas import tpu as pltpu

STATE_DIM = 1042
NUM_ACTIONS = 6
ACT_PAD = 8                           # action K-dim padded 6 -> 8 for a clean tiny matmul
IN_DIM = STATE_DIM + NUM_ACTIONS      # 1048 (logical concat width)
H1 = 1024
H2 = 512
OUT_PAD = 128                         # lane-dense padded output width (cols 0..5 are real)


def _default_batch_tile():
    """1024 on v6e/v7x (32/64 MiB scoped VMEM headroom), 512 elsewhere (v5e: 16 MiB)."""
    try:
        kind = jax.devices()[0].device_kind.lower()
    except Exception:
        return 512
    if ("v6" in kind) or ("v7" in kind) or ("7x" in kind):
        return 1024
    return 512


def qnetwork_kernel(state_ref, act_ref, w1s_ref, w1a_ref, b1_ref,
                    w2_ref, b2_ref, w3_ref, b3_ref, o_ref):
    # ---- layer 1: concat fused as two matmuls (state rows + zero-padded action rows) ----
    s = state_ref[...].astype(jnp.bfloat16)                       # (tb, 1042) bf16
    a = act_ref[...].astype(jnp.bfloat16)                         # (tb, 8)    bf16 (cols 6,7 zero)
    h1 = (jnp.dot(s, w1s_ref[...], preferred_element_type=jnp.float32)
          + jnp.dot(a, w1a_ref[...], preferred_element_type=jnp.float32)
          + b1_ref[...])                                          # f32 accumulate + bias
    # ---- layer 2 ----
    h2 = jnp.dot(h1.astype(jnp.bfloat16), w2_ref[...],
                 preferred_element_type=jnp.float32) + b2_ref[...]
    # ---- layer 3 (output padded to 128 lanes -> unmasked stores) ----
    o_ref[...] = jnp.dot(h2.astype(jnp.bfloat16), w3_ref[...],
                         preferred_element_type=jnp.float32) + b3_ref[...]


def qnetwork_forward(state, past_actions, params, *, batch_tile=None):
    """state: (B, 1042), past_actions: (B, 6) -> (B, 6) Q-values (f32).

    `state` may be f32 or bf16; it is used as-is (no wrapper-side cast pass)."""
    w1s, w1a, b1, w2, b2, w3p, b3p = params
    B = state.shape[0]
    if batch_tile is None:
        batch_tile = _default_batch_tile()

    # Tiny pad of the action columns 6 -> 8 so layer-1's action term is one small MXU pass.
    past_actions = jnp.pad(past_actions, ((0, 0), (0, ACT_PAD - past_actions.shape[1])))

    tb = batch_tile if B > batch_tile else B
    n_tiles = pl.cdiv(B, tb)           # B > batch_tile  =>  n_tiles >= 2 (shards across TCs)
    Bp = n_tiles * tb
    if Bp != B:                        # pad batch to a whole number of tiles
        pad = Bp - B
        state = jnp.pad(state, ((0, pad), (0, 0)))
        past_actions = jnp.pad(past_actions, ((0, pad), (0, 0)))

    # Weights/biases: whole-array, single-buffered VMEM residents (DMA'd once per call).
    resident = pl.BlockSpec(memory_space=pltpu.MemorySpace.VMEM)

    weight_elems = STATE_DIM * H1 + ACT_PAD * H1 + H1 * H2 + H2 * OUT_PAD
    flops = 2 * Bp * weight_elems
    bytes_accessed = (2 * weight_elems                                      # bf16 weights
                      + 4 * (H1 + H2 + OUT_PAD)                             # f32 biases
                      + state.dtype.itemsize * Bp * STATE_DIM               # inputs
                      + past_actions.dtype.itemsize * Bp * ACT_PAD
                      + 4 * Bp * OUT_PAD)                                   # f32 output

    out = pl.pallas_call(
        qnetwork_kernel,
        out_shape=jax.ShapeDtypeStruct((Bp, OUT_PAD), jnp.float32),
        grid_spec=pltpu.PrefetchScalarGridSpec(
            num_scalar_prefetch=0,
            grid=(n_tiles,),
            in_specs=[
                pl.BlockSpec((tb, STATE_DIM), lambda i: (i, 0)),
                pl.BlockSpec((tb, ACT_PAD), lambda i: (i, 0)),
                resident, resident, resident,      # w1s, w1a, b1
                resident, resident,                # w2, b2
                resident, resident,                # w3p, b3p
            ],
            out_specs=pl.BlockSpec((tb, OUT_PAD), lambda i: (i, 0)),
        ),
        compiler_params=pltpu.CompilerParams(
            dimension_semantics=("parallel",),
        ),
        cost_estimate=pl.CostEstimate(
            flops=flops, transcendentals=0, bytes_accessed=bytes_accessed),
    )(state, past_actions, w1s, w1a, b1, w2, b2, w3p, b3p)

    return out[:B, :NUM_ACTIONS]


def init_params(key):
    """nn.Linear-style init (U[-1/sqrt(fan_in), +]); weights quantized to bf16 at init."""
    ks = jax.random.split(key, 6)

    def linear(kw, kb, fan_in, fan_out):
        bound = 1.0 / jnp.sqrt(jnp.float32(fan_in))
        w = jax.random.uniform(kw, (fan_in, fan_out), jnp.float32, -bound, bound)
        b = jax.random.uniform(kb, (1, fan_out), jnp.float32, -bound, bound)
        return w, b

    w1, b1 = linear(ks[0], ks[1], IN_DIM, H1)
    w2, b2 = linear(ks[2], ks[3], H1, H2)
    w3, b3 = linear(ks[4], ks[5], H2, NUM_ACTIONS)

    # Concat fusion: split W1 rows into state / past-action parts (once, at init).
    w1s = w1[:STATE_DIM].astype(jnp.bfloat16)                      # (1042, 1024) bf16
    w1a = (jnp.zeros((ACT_PAD, H1), jnp.float32)                   # (8, 1024) bf16, rows 6,7 zero
           .at[:NUM_ACTIONS].set(w1[STATE_DIM:]).astype(jnp.bfloat16))
    # Lane-dense output: zero-pad W3 / b3 columns from 6 -> 128.
    w3p = (jnp.zeros((H2, OUT_PAD), jnp.float32)
           .at[:, :NUM_ACTIONS].set(w3).astype(jnp.bfloat16))
    b3p = jnp.zeros((1, OUT_PAD), jnp.float32).at[:, :NUM_ACTIONS].set(b3)

    return (w1s, w1a, b1, w2.astype(jnp.bfloat16), b2, w3p, b3p)


if __name__ == "__main__":
    key = jax.random.PRNGKey(0)
    k_param, k_state, k_act = jax.random.split(key, 3)

    B = 2
    params = init_params(k_param)
    # bf16 state exercises the cheaper input path; actions stay f32 (tiny).
    state = jax.random.normal(k_state, (B, STATE_DIM), jnp.bfloat16)        # (2, 1042)
    past_actions = jax.random.normal(k_act, (B, NUM_ACTIONS), jnp.float32)  # (2, 6)

    out = qnetwork_forward(state, past_actions, params)
    out = jax.block_until_ready(out)

    # Pure-JAX reference with matched precision (same bf16 weights / f32 accumulation).
    w1s, w1a, b1, w2, b2, w3p, b3p = params
    a_pad = jnp.pad(past_actions, ((0, 0), (0, ACT_PAD - NUM_ACTIONS))).astype(jnp.bfloat16)
    h1 = (jnp.dot(state.astype(jnp.bfloat16), w1s, preferred_element_type=jnp.float32)
          + jnp.dot(a_pad, w1a, preferred_element_type=jnp.float32) + b1)
    h2 = jnp.dot(h1.astype(jnp.bfloat16), w2, preferred_element_type=jnp.float32) + b2
    ref = (jnp.dot(h2.astype(jnp.bfloat16), w3p, preferred_element_type=jnp.float32)
           + b3p)[:, :NUM_ACTIONS]

    assert out.shape == (B, NUM_ACTIONS)
    assert jnp.allclose(out, ref, atol=2e-2, rtol=2e-2), float(jnp.max(jnp.abs(out - ref)))

    print("KERNEL_OK")
</pallas_src>

<mosaic_0001>
module attributes {stable_mosaic.version = 11 : i64} {
  func.func @qnetwork_kernel(%arg0: i32, %arg1: memref<2x1042xbf16, #tpu.memory_space<vmem>>, %arg2: memref<2x8xf32, #tpu.memory_space<vmem>>, %arg3: memref<1042x1024xbf16, #tpu.memory_space<vmem>>, %arg4: memref<8x1024xbf16, #tpu.memory_space<vmem>>, %arg5: memref<1x1024xf32, #tpu.memory_space<vmem>>, %arg6: memref<1024x512xbf16, #tpu.memory_space<vmem>>, %arg7: memref<1x512xf32, #tpu.memory_space<vmem>>, %arg8: memref<512x128xbf16, #tpu.memory_space<vmem>>, %arg9: memref<1x128xf32, #tpu.memory_space<vmem>>, %arg10: memref<2x128xf32, #tpu.memory_space<vmem>>) attributes {dimension_semantics = [#tpu.dimension_semantics<parallel>], iteration_bounds = array<i64: 1>, scalar_prefetch = 0 : i64, scratch_operands = 0 : i64, tpu.core_type = #tpu.core_type<tc>, window_params = [{transform_indices = @transform_0, window_bounds = array<i64: 2, 1042>}, {transform_indices = @transform_1, window_bounds = array<i64: 2, 8>}, {pipeline_mode = #tpu.pipeline_mode<synchronous>, transform_indices = @transform_2, window_bounds = array<i64: 1042, 1024>}, {pipeline_mode = #tpu.pipeline_mode<synchronous>, transform_indices = @transform_3, window_bounds = array<i64: 8, 1024>}, {pipeline_mode = #tpu.pipeline_mode<synchronous>, transform_indices = @transform_4, window_bounds = array<i64: 1, 1024>}, {pipeline_mode = #tpu.pipeline_mode<synchronous>, transform_indices = @transform_5, window_bounds = array<i64: 1024, 512>}, {pipeline_mode = #tpu.pipeline_mode<synchronous>, transform_indices = @transform_6, window_bounds = array<i64: 1, 512>}, {pipeline_mode = #tpu.pipeline_mode<synchronous>, transform_indices = @transform_7, window_bounds = array<i64: 512, 128>}, {pipeline_mode = #tpu.pipeline_mode<synchronous>, transform_indices = @transform_8, window_bounds = array<i64: 1, 128>}, {transform_indices = @transform_9, window_bounds = array<i64: 2, 128>}]} {
    %c0 = arith.constant 0 : index
    %c0_0 = arith.constant 0 : index
    %0 = vector.load %arg1[%c0, %c0_0] : memref<2x1042xbf16, #tpu.memory_space<vmem>>, vector<2x1042xbf16>
    %c0_1 = arith.constant 0 : index
    %c0_2 = arith.constant 0 : index
    %1 = vector.load %arg2[%c0_1, %c0_2] : memref<2x8xf32, #tpu.memory_space<vmem>>, vector<2x8xf32>
    %2 = arith.truncf %1 : vector<2x8xf32> to vector<2x8xbf16>
    %c0_3 = arith.constant 0 : index
    %c0_4 = arith.constant 0 : index
    %3 = vector.load %arg3[%c0_3, %c0_4] : memref<1042x1024xbf16, #tpu.memory_space<vmem>>, vector<1042x1024xbf16>
    %cst = arith.constant dense<0.000000e+00> : vector<2x1024xf32>
    %4 = tpu.matmul %0, %3, %cst {dimension_numbers = #tpu.dot_dimension_numbers<[1], [0], [0], [1], [0, 0, 1, 1], [], []>} : vector<2x1042xbf16>, vector<1042x1024xbf16>, vector<2x1024xf32> -> vector<2x1024xf32>
    %c0_5 = arith.constant 0 : index
    %c0_6 = arith.constant 0 : index
    %5 = vector.load %arg4[%c0_5, %c0_6] : memref<8x1024xbf16, #tpu.memory_space<vmem>>, vector<8x1024xbf16>
    %cst_7 = arith.constant dense<0.000000e+00> : vector<2x1024xf32>
    %6 = tpu.matmul %2, %5, %cst_7 {dimension_numbers = #tpu.dot_dimension_numbers<[1], [0], [0], [1], [0, 0, 1, 1], [], []>} : vector<2x8xbf16>, vector<8x1024xbf16>, vector<2x1024xf32> -> vector<2x1024xf32>
    %7 = arith.addf %4, %6 : vector<2x1024xf32>
    %c0_8 = arith.constant 0 : index
    %c0_9 = arith.constant 0 : index
    %8 = vector.load %arg5[%c0_8, %c0_9] : memref<1x1024xf32, #tpu.memory_space<vmem>>, vector<1x1024xf32>
    %9 = vector.broadcast %8 : vector<1x1024xf32> to vector<2x1024xf32>
    %10 = arith.addf %7, %9 : vector<2x1024xf32>
    %11 = arith.truncf %10 : vector<2x1024xf32> to vector<2x1024xbf16>
    %c0_10 = arith.constant 0 : index
    %c0_11 = arith.constant 0 : index
    %12 = vector.load %arg6[%c0_10, %c0_11] : memref<1024x512xbf16, #tpu.memory_space<vmem>>, vector<1024x512xbf16>
    %cst_12 = arith.constant dense<0.000000e+00> : vector<2x512xf32>
    %13 = tpu.matmul %11, %12, %cst_12 {dimension_numbers = #tpu.dot_dimension_numbers<[1], [0], [0], [1], [0, 0, 1, 1], [], []>} : vector<2x1024xbf16>, vector<1024x512xbf16>, vector<2x512xf32> -> vector<2x512xf32>
    %c0_13 = arith.constant 0 : index
    %c0_14 = arith.constant 0 : index
    %14 = vector.load %arg7[%c0_13, %c0_14] : memref<1x512xf32, #tpu.memory_space<vmem>>, vector<1x512xf32>
    %15 = vector.broadcast %14 : vector<1x512xf32> to vector<2x512xf32>
    %16 = arith.addf %13, %15 : vector<2x512xf32>
    %17 = arith.truncf %16 : vector<2x512xf32> to vector<2x512xbf16>
    %c0_15 = arith.constant 0 : index
    %c0_16 = arith.constant 0 : index
    %18 = vector.load %arg8[%c0_15, %c0_16] : memref<512x128xbf16, #tpu.memory_space<vmem>>, vector<512x128xbf16>
    %cst_17 = arith.constant dense<0.000000e+00> : vector<2x128xf32>
    %19 = tpu.matmul %17, %18, %cst_17 {dimension_numbers = #tpu.dot_dimension_numbers<[1], [0], [0], [1], [0, 0, 1, 1], [], []>} : vector<2x512xbf16>, vector<512x128xbf16>, vector<2x128xf32> -> vector<2x128xf32>
    %c0_18 = arith.constant 0 : index
    %c0_19 = arith.constant 0 : index
    %20 = vector.load %arg9[%c0_18, %c0_19] : memref<1x128xf32, #tpu.memory_space<vmem>>, vector<1x128xf32>
    %21 = vector.broadcast %20 : vector<1x128xf32> to vector<2x128xf32>
    %22 = arith.addf %19, %21 : vector<2x128xf32>
    %c0_20 = arith.constant 0 : index
    %c0_21 = arith.constant 0 : index
    %23 = vector.load %arg10[%c0_20, %c0_21] : memref<2x128xf32, #tpu.memory_space<vmem>>, vector<2x128xf32>
    tpu.vector_store %arg10[%c0_20, %c0_21], %22 {strides = array<i32>} : memref<2x128xf32, #tpu.memory_space<vmem>>, vector<2x128xf32>,
    return
  }
  func.func @transform_0(%arg0: i32) -> (i32, i32) {
    %c0_i32 = arith.constant 0 : i32
    %c0_i32_0 = arith.constant 0 : i32
    return %arg0, %c0_i32 : i32, i32
  }
  func.func @transform_1(%arg0: i32) -> (i32, i32) {
    %c0_i32 = arith.constant 0 : i32
    %c0_i32_0 = arith.constant 0 : i32
    return %arg0, %c0_i32 : i32, i32
  }
  func.func @transform_2(%arg0: i32) -> (i32, i32) {
    %c0_i32 = arith.constant 0 : i32
    %c0_i32_0 = arith.constant 0 : i32
    %c0_i32_1 = arith.constant 0 : i32
    return %c0_i32, %c0_i32_0 : i32, i32
  }
  func.func @transform_3(%arg0: i32) -> (i32, i32) {
    %c0_i32 = arith.constant 0 : i32
    %c0_i32_0 = arith.constant 0 : i32
    %c0_i32_1 = arith.constant 0 : i32
    return %c0_i32, %c0_i32_0 : i32, i32
  }
  func.func @transform_4(%arg0: i32) -> (i32, i32) {
    %c0_i32 = arith.constant 0 : i32
    %c0_i32_0 = arith.constant 0 : i32
    %c0_i32_1 = arith.constant 0 : i32
    return %c0_i32, %c0_i32_0 : i32, i32
  }
  func.func @transform_5(%arg0: i32) -> (i32, i32) {
    %c0_i32 = arith.constant 0 : i32
    %c0_i32_0 = arith.constant 0 : i32
    %c0_i32_1 = arith.constant 0 : i32
    return %c0_i32, %c0_i32_0 : i32, i32
  }
  func.func @transform_6(%arg0: i32) -> (i32, i32) {
    %c0_i32 = arith.constant 0 : i32
    %c0_i32_0 = arith.constant 0 : i32
    %c0_i32_1 = arith.constant 0 : i32
    return %c0_i32, %c0_i32_0 : i32, i32
  }
  func.func @transform_7(%arg0: i32) -> (i32, i32) {
    %c0_i32 = arith.constant 0 : i32
    %c0_i32_0 = arith.constant 0 : i32
    %c0_i32_1 = arith.constant 0 : i32
    return %c0_i32, %c0_i32_0 : i32, i32
  }
  func.func @transform_8(%arg0: i32) -> (i32, i32) {
    %c0_i32 = arith.constant 0 : i32
    %c0_i32_0 = arith.constant 0 : i32
    %c0_i32_1 = arith.constant 0 : i32
    return %c0_i32, %c0_i32_0 : i32, i32
  }
  func.func @transform_9(%arg0: i32) -> (i32, i32) {
    %c0_i32 = arith.constant 0 : i32
    %c0_i32_0 = arith.constant 0 : i32
    return %arg0, %c0_i32 : i32, i32
  }
}

</mosaic_0001>

<bundles_post_ra>
// kernel: tpu_custom_call.1
= control target key start
LH: loop header
LB: loop body
LE: loop exit
PB: predicated region body
PF: predicated region fallthrough
CT: control target
= control target key end

     0   :  { %14 = vsyncpa [#allocation3], 0  ;;  %s8756_s0 = inlined_call_operand.hbm [shape: bf16[2,1042], index: 0, kind: input, shape index: {}]   ;;  %s8757_s1 = inlined_call_operand.hbm [shape: f32[2,8], index: 1, kind: input, shape index: {}]   ;;  %s8758_s2 = inlined_call_operand.hbm [shape: bf16[1042,1024], index: 2, kind: input, shape index: {}]   ;;  %s8759_s3 = inlined_call_operand.hbm [shape: bf16[8,1024], index: 3, kind: input, shape index: {}]   ;;  %s8760_s4 = inlined_call_operand.hbm [shape: f32[1,1024], index: 4, kind: input, shape index: {}]   ;;  %s8761_s5 = inlined_call_operand.hbm [shape: bf16[1024,512], index: 5, kind: input, shape index: {}]   ;;  %s8762_s6 = inlined_call_operand.hbm [shape: f32[1,512], index: 6, kind: input, shape index: {}]   ;;  %s8763_s7 = inlined_call_operand.hbm [shape: bf16[512,128], index: 7, kind: input, shape index: {}]   ;;  %s8764_s8 = inlined_call_operand.hbm [shape: f32[1,128], index: 8, kind: input, shape index: {}]   ;;  %s8765_s9 = inlined_call_operand.hbm [shape: f32[2,128], index: 9, kind: output, shape index: {}]  }
   0x1   :  { %15 = vsyncpa [#allocation6], 0 }
   0x2   :  { %16 = vsyncpa [#allocation9], 0 }
   0x3   :  { %17 = vsyncpa [#allocation12], 0 }
   0x4   :  { %18 = vsyncpa [#allocation15], 0 }
   0x5   :  { %19 = vsyncpa [#allocation4], 0  ;;  %s8340_s30 = smov [#allocation5]   ;;  %s8341_s11 = smov [#allocation8]  }
   0x6   :  { %s36_s10 = sshll.u32 %s8340_s30, 4  ;;  %s58_s12 = sshll.u32 %s8341_s11, 4  ;;  %s37_s10 = int_to_ptr.vmem [resolvable:$true] %s36_s10  ;;  %s59_s12 = int_to_ptr.vmem [resolvable:$true] %s58_s12 }
   0x7   :  { %s8108_s15 = scalar_lea.hbm %s8757_s1, 32 }
   0x8   :  { %p8109_p0 = scmp.ne.s32.totalorder %s8757_s1, %s8108_s15  ;;  %p8112_p1 = scmp.lt.u32.totalorder %s8108_s15, %s8757_s1 }
   0xa   :  { %p8114_p2 = pnand %p8112_p1, %p8109_p0 }
   0xc   :  { %8117 = shalt.err (!%p8114_p2)
}
   0xd   :  { %s8118_s20 = scalar_lea.vmem %s37_s10, 32  ;;  %p8123_p4 = scmp.lt.s32.totalorder %s37_s10, %s37_s10 }
   0xe   :  { %p8119_p3 = scmp.ne.s32.totalorder %s37_s10, %s8118_s20  ;;  %p8124_p5 = scmp.lt.s32.totalorder %s8118_s20, %s8118_s20 }
  0x10   :  { %p8125_p6 = por %p8124_p5, %p8123_p4 }
  0x12   :  { %p8126_p7 = pnand %p8125_p6, %p8119_p3 }
  0x14   :  { %8129 = shalt.err (!%p8126_p7)
}
  0x15   :  { %39 = dma.hbm_to_vmem [thread:$0]  %s8757_s1, 32, %s37_s10, [#allocation6]  }
  0x16   :  { %s8130_s25 = scalar_lea.hbm %s8759_s3, 512 }
  0x17   :  { %p8131_p8 = scmp.ne.s32.totalorder %s8759_s3, %s8130_s25  ;;  %p8134_p9 = scmp.lt.u32.totalorder %s8130_s25, %s8759_s3 }
  0x19   :  { %p8136_p10 = pnand %p8134_p9, %p8131_p8 }
  0x1b   :  { %8139 = shalt.err (!%p8136_p10)
}
  0x1c   :  { %s8140_s30 = scalar_lea.vmem %s59_s12, 512  ;;  %p8145_p12 = scmp.lt.s32.totalorder %s59_s12, %s59_s12 }
  0x1d   :  { %p8141_p11 = scmp.ne.s32.totalorder %s59_s12, %s8140_s30  ;;  %p8146_p13 = scmp.lt.s32.totalorder %s8140_s30, %s8140_s30 }
  0x1f   :  { %p8147_p0 = por %p8146_p13, %p8145_p12 }
  0x21   :  { %p8148_p1 = pnand %p8147_p0, %p8141_p11 }
  0x23   :  { %8151 = shalt.err (!%p8148_p1)
}
  0x24   :  { %61 = dma.hbm_to_vmem [thread:$0]  %s8759_s3, 512, %s59_s12, [#allocation9]  }
  0x25   :  { %s8342_s11 = smov [#allocation11]   ;;  %s8152_s16 = scalar_lea.hbm %s8761_s5, 32768 }
  0x26   :  { %s77_s13 = sshll.u32 %s8342_s11, 4  ;;  %p8153_p2 = scmp.ne.s32.totalorder %s8761_s5, %s8152_s16  ;;  %s78_s13 = int_to_ptr.vmem [resolvable:$true] %s77_s13 }
  0x27   :  { %p8156_p3 = scmp.lt.u32.totalorder %s8152_s16, %s8761_s5 }
  0x29   :  { %p8158_p4 = pnand %p8156_p3, %p8153_p2 }
  0x2b   :  { %8161 = shalt.err (!%p8158_p4)
}
  0x2c   :  { %s8162_s21 = scalar_lea.vmem %s78_s13, 32768  ;;  %p8167_p6 = scmp.lt.s32.totalorder %s78_s13, %s78_s13 }
  0x2d   :  { %p8163_p5 = scmp.ne.s32.totalorder %s78_s13, %s8162_s21  ;;  %p8168_p7 = scmp.lt.s32.totalorder %s8162_s21, %s8162_s21 }
  0x2f   :  { %p8169_p8 = por %p8168_p7, %p8167_p6 }
  0x31   :  { %p8170_p9 = pnand %p8169_p8, %p8163_p5 }
  0x33   :  { %8173 = shalt.err (!%p8170_p9)
}
  0x34   :  { %s8343_s3 = smov 256   ;;  %s8344_s12 = smov 16  }
  0x35   :  { %83 = dma.hbm_to_vmem [thread:$0]  %s8761_s5, 32768, %s78_s13, [#allocation12], %s8343_s3, %s8343_s3, %s8344_s12  }
  0x36   :  { %s8345_s24 = smov [#allocation14]   ;;  %s8174_s28 = scalar_lea.hbm %s8763_s7, 4096 }
  0x37   :  { %s99_s25 = sshll.u32 %s8345_s24, 4  ;;  %p8175_p10 = scmp.ne.s32.totalorder %s8763_s7, %s8174_s28  ;;  %s100_s25 = int_to_ptr.vmem [resolvable:$true] %s99_s25 }
  0x38   :  { %p8178_p11 = scmp.lt.u32.totalorder %s8174_s28, %s8763_s7 }
  0x3a   :  { %p8180_p12 = pnand %p8178_p11, %p8175_p10 }
  0x3c   :  { %8183 = shalt.err (!%p8180_p12)
}
  0x3d   :  { %s8184_s11 = scalar_lea.vmem %s100_s25, 4096  ;;  %p8189_p0 = scmp.lt.s32.totalorder %s100_s25, %s100_s25 }
  0x3e   :  { %p8185_p13 = scmp.ne.s32.totalorder %s100_s25, %s8184_s11  ;;  %p8190_p1 = scmp.lt.s32.totalorder %s8184_s11, %s8184_s11 }
  0x40   :  { %p8191_p2 = por %p8190_p1, %p8189_p0 }
  0x42   :  { %p8192_p3 = pnand %p8191_p2, %p8185_p13 }
  0x44   :  { %8195 = shalt.err (!%p8192_p3)
}
  0x45   :  { %s8346_s5 = smov 64   ;;  %s8347_s13 = smov 4  }
  0x46   :  { %105 = dma.hbm_to_vmem [thread:$0]  %s8763_s7, 4096, %s100_s25, [#allocation15], %s8346_s5, %s8346_s5, %s8347_s13  }
  0x47   :  { %s8348_s16 = smov [#allocation2]   ;;  %s8349_s18 = smov [#allocation7]  }
  0x48   :  { %s26_s17 = sshll.u32 %s8348_s16, 4  ;;  %s45_s19 = sshll.u32 %s8349_s18, 4  ;;  %s27_s17 = int_to_ptr.vmem [resolvable:$true] %s26_s17  ;;  %s8456_s19 = int_to_ptr.vmem [resolvable:$true] %s45_s19 }
  0x49   :  { %s8196_s3 = scalar_lea.hbm %s8756_s0, 144 }
  0x4a   :  { %p8197_p4 = scmp.ne.s32.totalorder %s8756_s0, %s8196_s3  ;;  %p8200_p5 = scmp.lt.u32.totalorder %s8196_s3, %s8756_s0 }
  0x4c   :  { %p8202_p6 = pnand %p8200_p5, %p8197_p4 }
  0x4e   :  { %8205 = shalt.err (!%p8202_p6)
}
  0x4f   :  { %s8206_s7 = scalar_lea.vmem %s27_s17, 144  ;;  %s8210_s25 = scalar_lea.vmem %s27_s17, 160 }
  0x50   :  { %p8207_p7 = scmp.ne.s32.totalorder %s27_s17, %s8206_s7  ;;  %p8211_p8 = scmp.lt.s32.totalorder %s27_s17, %s27_s17 }
  0x51   :  { %p8212_p9 = scmp.lt.s32.totalorder %s8210_s25, %s8206_s7 }
  0x53   :  { %p8213_p10 = por %p8212_p9, %p8211_p8 }
  0x55   :  { %p8214_p11 = pnand %p8213_p10, %p8207_p7 }
  0x57   :  { %8217 = shalt.err (!%p8214_p11)
}
  0x58   :  { %29 = dma.hbm_to_vmem [thread:$0]  %s8756_s0, 144, %s27_s17, [#allocation3]  }
  0x59   :  { %s8218_s30 = scalar_lea.hbm %s8758_s2, 67072 }
  0x5a   :  { %p8219_p12 = scmp.ne.s32.totalorder %s8758_s2, %s8218_s30  ;;  %p8222_p13 = scmp.lt.u32.totalorder %s8218_s30, %s8758_s2 }
  0x5c   :  { %p8224_p0 = pnand %p8222_p13, %p8219_p12 }
  0x5e   :  { %8227 = shalt.err (!%p8224_p0)
}
  0x5f   :  { %s8228_s13 = scalar_lea.vmem %s8456_s19, 67072  ;;  %p8233_p2 = scmp.lt.s32.totalorder %s8456_s19, %s8456_s19 }
  0x60   :  { %p8229_p1 = scmp.ne.s32.totalorder %s8456_s19, %s8228_s13  ;;  %p8234_p3 = scmp.lt.s32.totalorder %s8228_s13, %s8228_s13 }
  0x62   :  { %p8235_p4 = por %p8234_p3, %p8233_p2 }
  0x64   :  { %p8236_p5 = pnand %p8235_p4, %p8229_p1 }
  0x66   :  { %8239 = shalt.err (!%p8236_p5)
}
  0x67   :  { %s8350_s0 = smov 512   ;;  %s8351_s14 = smov 32  }
  0x68   :  { %51 = dma.hbm_to_vmem [thread:$0]  %s8758_s2, 67072, %s8456_s19, [#allocation6], %s8350_s0, %s8350_s0, %s8351_s14  }
  0x69   :  { %s8352_s17 = smov [#allocation10]   ;;  %s8353_s20 = smov [#allocation13]  }
  0x6a   :  { %s68_s18 = sshll.u32 %s8352_s17, 4  ;;  %s90_s21 = sshll.u32 %s8353_s20, 4  ;;  %s69_s18 = int_to_ptr.vmem [resolvable:$true] %s68_s18  ;;  %s91_s21 = int_to_ptr.vmem [resolvable:$true] %s90_s21 }
  0x6b   :  { %s8240_s22 = scalar_lea.hbm %s8760_s4, 128 }
  0x6c   :  { %p8241_p6 = scmp.ne.s32.totalorder %s8760_s4, %s8240_s22  ;;  %p8244_p7 = scmp.lt.u32.totalorder %s8240_s22, %s8760_s4 }
  0x6e   :  { %p8246_p8 = pnand %p8244_p7, %p8241_p6 }
  0x70   :  { %8249 = shalt.err (!%p8246_p8)
}
  0x71   :  { %s8250_s2 = scalar_lea.vmem %s69_s18, 128  ;;  %p8255_p10 = scmp.lt.s32.totalorder %s69_s18, %s69_s18 }
  0x72   :  { %p8251_p9 = scmp.ne.s32.totalorder %s69_s18, %s8250_s2  ;;  %p8256_p11 = scmp.lt.s32.totalorder %s8250_s2, %s8250_s2 }
  0x74   :  { %p8257_p12 = por %p8256_p11, %p8255_p10 }
  0x76   :  { %p8258_p13 = pnand %p8257_p12, %p8251_p9 }
  0x78   :  { %8261 = shalt.err (!%p8258_p13)
}
  0x79   :  { %71 = dma.hbm_to_vmem [thread:$0]  %s8760_s4, 128, %s69_s18, [#allocation9]  }
  0x7a   :  { %s8262_s29 = scalar_lea.hbm %s8762_s6, 64 }
  0x7b   :  { %p8263_p0 = scmp.ne.s32.totalorder %s8762_s6, %s8262_s29  ;;  %p8266_p1 = scmp.lt.u32.totalorder %s8262_s29, %s8762_s6 }
  0x7d   :  { %p8268_p2 = pnand %p8266_p1, %p8263_p0 }
  0x7f   :  { %8271 = shalt.err (!%p8268_p2)
}
  0x80   :  { %s8272_s5 = scalar_lea.vmem %s91_s21, 64  ;;  %p8277_p4 = scmp.lt.s32.totalorder %s91_s21, %s91_s21 }
  0x81   :  { %p8273_p3 = scmp.ne.s32.totalorder %s91_s21, %s8272_s5  ;;  %p8278_p5 = scmp.lt.s32.totalorder %s8272_s5, %s8272_s5 }
  0x83   :  { %p8279_p6 = por %p8278_p5, %p8277_p4 }
  0x85   :  { %p8280_p7 = pnand %p8279_p6, %p8273_p3 }
  0x87   :  { %8283 = shalt.err (!%p8280_p7)
}
  0x88   :  { %93 = dma.hbm_to_vmem [thread:$0]  %s8762_s6, 64, %s91_s21, [#allocation12]  }
  0x89   :  { %s8354_s0 = smov [#allocation16]   ;;  %s8284_s17 = scalar_lea.hbm %s8764_s8, 16 }
  0x8a   :  { %s112_s14 = sshll.u32 %s8354_s0, 4  ;;  %p8285_p8 = scmp.ne.s32.totalorder %s8764_s8, %s8284_s17  ;;  %s113_s14 = int_to_ptr.vmem [resolvable:$true] %s112_s14 }
  0x8b   :  { %p8288_p9 = scmp.lt.u32.totalorder %s8284_s17, %s8764_s8 }
  0x8d   :  { %p8290_p10 = pnand %p8288_p9, %p8285_p8 }
  0x8f   :  { %8293 = shalt.err (!%p8290_p10)
}
  0x90   :  { %s8294_s22 = scalar_lea.vmem %s113_s14, 16  ;;  %s8298_s6 = scalar_lea.vmem %s113_s14, 32 }
  0x91   :  { %p8295_p11 = scmp.ne.s32.totalorder %s113_s14, %s8294_s22  ;;  %p8299_p12 = scmp.lt.s32.totalorder %s113_s14, %s113_s14 }
  0x92   :  { %p8300_p13 = scmp.lt.s32.totalorder %s8298_s6, %s8294_s22 }
  0x94   :  { %p8301_p0 = por %p8300_p13, %p8299_p12 }
  0x96   :  { %p8302_p1 = pnand %p8301_p0, %p8295_p11 }
  0x98   :  { %8305 = shalt.err (!%p8302_p1)
}
  0x99   :  { %115 = dma.hbm_to_vmem [thread:$0]  %s8764_s8, 16, %s113_s14, [#allocation15]  }
  0x9a   :  { %8328 = dma.done.wait [#allocation3], 144  }
  0x9b   :  { %8329 = vsyncadd [#allocation3], 4294967152 }
  0x9c   :  { %8330 = dma.done.wait [#allocation6], 67104  }
  0x9d   :  { %8331 = vsyncadd [#allocation6], 4294900192 }
  0x9e   :  { %8332 = dma.done.wait [#allocation9], 640  }
  0x9f   :  { %8333 = vsyncadd [#allocation9], 4294966656 }
  0xa0   :  { %8334 = dma.done.wait [#allocation12], 32832  }
  0xa1   :  { %8335 = vsyncadd [#allocation12], 4294934464 }
  0xa2   :  { %8336 = dma.done.wait [#allocation15], 4112  }
  0xa3   :  { %8337 = vsyncadd [#allocation15], 4294963184  ;;  %v8355_v0 = vmov 0   ;;  %v672_v1 = vld [vmem:[#allocation8] sm:$0xff]  ;;  %vm700_vm0 = vcmask 1043456   ;;  %v673_v2 = vld [vmem:[#allocation8 + $0x8] sm:$0xff]  ;;  %v895_v33 = vlaneseq }
  0xa4   :  { %757 = vmatprep.mubr.bf16.mxu0 %v8355_v0  ;;  %798 = vmatprep.mubr.bf16.mxu1 %v8355_v0  ;;  %v146_v3 = vld [vmem:[#allocation5] sm:$0x3]  ;;  %v6743_v4 = vcombine.high %v672_v1, %v672_v1  ;;  %v6745_v5 = vcombine.high %v673_v2, %v673_v2  ;;  %v6742_v6 = vcombine.low %v672_v1, %v672_v1  ;;  %v674_v8 = vld [vmem:[#allocation8 + $0x10] sm:$0xff]  ;;  %v148_v13 = vld [vmem:[#allocation7] sm:$0xff]  ;;  %vm696_vm1 = vcmask 64512   ;;  %s8357_s8 = smov [#allocation17]  }
  0xa5   :  { %v6744_v7 = vcombine.low %v673_v2, %v673_v2  ;;  %v675_v9 = vld [vmem:[#allocation8 + $0x18] sm:$0xff]  ;;  %v6747_v10 = vcombine.high %v674_v8, %v674_v8  ;;  %v6746_v11 = vcombine.low %v674_v8, %v674_v8  ;;  %v147_v16 = vpack.c.bf16 %v146_v3, %v146_v3  ;;  %v152_v18 = vld [vmem:[#allocation7 + $0x20] sm:$0xff]  ;;  %s6729_s24 = sshll.u32 %s8357_s8, 4  ;;  %s6730_s24 = int_to_ptr.vmem [resolvable:$true] %s6729_s24 }
  0xa6   :  { %v6749_v12 = vcombine.high %v675_v9, %v675_v9  ;;  %6750 = vmatprep.subr.msk.bf16.mxu0 %vm700_vm0, %v6743_v4  ;;  %6752 = vmatprep.subr.msk.bf16.mxu1 %vm700_vm0, %v6745_v5  ;;  %v702_v14 = vsel %vm700_vm0, %v6742_v6, 0  ;;  %v6748_v17 = vcombine.low %v675_v9, %v675_v9  ;;  %v276_v19 = vld [vmem:[#allocation7 + $0x400] sm:$0xff]  ;;  %v6760_v23 = vcombine.high %v148_v13, %v152_v18  ;;  %v144_v59 = vld [vmem:[#allocation2] sm:$0xff]  ;;  %s8306_s7 = scalar_lea.vmem %s6730_s24, 32  ;;  %p8311_p3 = scmp.lt.s32.totalorder %s6730_s24, %s6730_s24 }
  0xa7   :  { %v708_v15 = vsel %vm700_vm0, %v6744_v7, 0  ;;  %v280_v20 = vld [vmem:[#allocation7 + $0x420] sm:$0xff]  ;;  %726 = vmatpush1.bf16.msra.mxu0 %v702_v14  ;;  %v714_v21 = vsel %vm700_vm0, %v6746_v11, 0  ;;  %v6759_v29 = vcombine.low %v148_v13, %v152_v18  ;;  %v8356_v31 = vmov 1966171168   ;;  %p8307_p2 = scmp.ne.s32.totalorder %s6730_s24, %s8306_s7  ;;  %p8312_p4 = scmp.lt.s32.totalorder %s8306_s7, %s8306_s7 }
  0xa8   :  { %767 = vmatpush1.bf16.msra.mxu1 %v708_v15  ;;  %6754 = vmatprep.subr.msk.bf16.mxu0 %vm700_vm0, %v6747_v10  ;;  %v720_v22 = vsel %vm700_vm0, %v6748_v17, 0  ;;  %v6888_v24 = vcombine.high %v276_v19, %v280_v20  ;;  %v156_v25 = vld [vmem:[#allocation7 + $0x40] sm:$0xff]  ;;  %v6887_v30 = vcombine.low %v276_v19, %v280_v20  ;;  %v893_v32 = vunpack.c.l.s4 %v8356_v31 }
  0xa9   :  { %6756 = vmatprep.subr.msk.bf16.mxu1 %vm700_vm0, %v6749_v12  ;;  %v160_v26 = vld [vmem:[#allocation7 + $0x60] sm:$0xff]  ;;  %v8539_v43 = vshrl.u32 %v895_v33, 7  ;;  %vm3586_vm2 = vcmask 1040384   ;;  %vm3582_vm3 = vcmask 146432   ;;  %p8313_p5 = por %p8312_p4, %p8311_p3 }
  0xaa   :  { %6751 = vmatmul.mubr.msk.bf16.vlgmr.msra.gmra.mrb[0].mxu0 %vm696_vm1, %v147_v16  ;;  %v284_v27 = vld [vmem:[#allocation7 + $0x440] sm:$0xff]  ;;  %v6768_v34 = vcombine.high %v156_v25, %v160_v26  ;;  %v6767_v40 = vcombine.low %v156_v25, %v160_v26  ;;  %v894_v42 = vunpack.c.0.s8 %v893_v32 }
  0xab   :  { %6753 = vmatmul.mubr.msk.bf16.vlgmr.msra.gmra.mrb[0].mxu1 %vm696_vm1, %v147_v16  ;;  %808 = vmatpush1.bf16.msra.mxu0 %v714_v21  ;;  %v288_v28 = vld [vmem:[#allocation7 + $0x460] sm:$0xff]  ;;  %p8314_p6 = pnand %p8313_p5, %p8307_p2 }
  0xac   :  { %849 = vmatpush1.bf16.msra.mxu1 %v720_v22  ;;  %839 = vmatprep.mubr.bf16.mxu0 %v8355_v0  ;;  %v6896_v35 = vcombine.high %v284_v27, %v288_v28  ;;  %v164_v36 = vld [vmem:[#allocation7 + $0x80] sm:$0xff]  ;;  %v6895_v41 = vcombine.low %v284_v27, %v288_v28  ;;  %v8542_v52 = vsub.s32 %v894_v42, %v8539_v43 }
  0xad   :  { %880 = vmatprep.mubr.bf16.mxu1 %v8355_v0  ;;  %3611 = vmatprep.subr.bf16.mxu0 %v6760_v23  ;;  %v168_v37 = vld [vmem:[#allocation7 + $0xa0] sm:$0xff]  ;;  %v891_v22 = vcombine.high %v144_v59, %v144_v59 }
  0xae   :  { %3652 = vmatprep.subr.bf16.mxu1 %v6888_v24  ;;  %v292_v38 = vld [vmem:[#allocation7 + $0x480] sm:$0xff]  ;;  %v6776_v44 = vcombine.high %v164_v36, %v168_v37  ;;  %v6775_v50 = vcombine.low %v164_v36, %v168_v37  ;;  %v8545_v62 = vrot.slane %v144_v59, %v8542_v52 }
  0xaf   :  { %v296_v39 = vld [vmem:[#allocation7 + $0x4a0] sm:$0xff]  ;;  %v8559_v31 = vrot.slane %v891_v22, %v8542_v52 }
  0xb0   :  { %v6904_v45 = vcombine.high %v292_v38, %v296_v39  ;;  %v172_v46 = vld [vmem:[#allocation7 + $0xc0] sm:$0xff]  ;;  %v6903_v51 = vcombine.low %v292_v38, %v296_v39  ;;  %v906_v6 = vcombine.high %v8545_v62, %v8545_v62 }
  0xb1   :  { %v176_v47 = vld [vmem:[#allocation7 + $0xe0] sm:$0xff] }
  0xb2   :  { %6755 = vmatmul.mubr.msk.bf16.vlgmr.msra.gmra.mrb[4].mxu0 %vm696_vm1, %v147_v16  ;;  %v300_v48 = vld [vmem:[#allocation7 + $0x4c0] sm:$0xff]  ;;  %v6784_v53 = vcombine.high %v172_v46, %v176_v47  ;;  %v6783_v60 = vcombine.low %v172_v46, %v176_v47  ;;  %v8550_v9 = vrot.slane %v906_v6, %v8542_v52 }
  0xb3   :  { %6757 = vmatmul.mubr.msk.bf16.vlgmr.msra.gmra.mrb[4].mxu1 %vm696_vm1, %v147_v16  ;;  %3612 = vmatpush1.bf16.msra.mxu0 %v6759_v29  ;;  %v304_v49 = vld [vmem:[#allocation7 + $0x4e0] sm:$0xff] }
  0xb4   :  { %3653 = vmatpush1.bf16.msra.mxu1 %v6887_v30  ;;  %3613 = vmatprep.subr.bf16.mxu0 %v6768_v34  ;;  %v6912_v54 = vcombine.high %v300_v48, %v304_v49  ;;  %v180_v55 = vld [vmem:[#allocation7 + $0x100] sm:$0xff]  ;;  %v6911_v61 = vcombine.low %v300_v48, %v304_v49  ;;  %v8555_v16 = vcombine.high %v8550_v9, %v8550_v9 }
  0xb5   :  { %3654 = vmatprep.subr.bf16.mxu1 %v6896_v35  ;;  %v184_v56 = vld [vmem:[#allocation7 + $0x120] sm:$0xff]  ;;  %3643 = vmatprep.mubr.bf16.mxu0 %v8550_v9  ;;  %v8563_v35 = vrot.slane %v8559_v31, %v8542_v52 }
  0xb6   :  { %v308_v57 = vld [vmem:[#allocation7 + $0x500] sm:$0xff]  ;;  %v6792_v63 = vcombine.high %v180_v55, %v184_v56  ;;  %v6791_v7 = vcombine.low %v180_v55, %v184_v56  ;;  %3684 = vmatprep.mubr.bf16.mxu1 %v8555_v16 }
  0xb7   :  { %3614 = vmatpush1.bf16.msra.mxu0 %v6767_v40  ;;  %v312_v58 = vld [vmem:[#allocation7 + $0x520] sm:$0xff] }
  0xb8   :  { %3655 = vmatpush1.bf16.msra.mxu1 %v6895_v41  ;;  %3615 = vmatprep.subr.bf16.mxu0 %v6776_v44  ;;  %v6920_v1 = vcombine.high %v308_v57, %v312_v58  ;;  %v188_v2 = vld [vmem:[#allocation7 + $0x140] sm:$0xff]  ;;  %v6919_v8 = vcombine.low %v308_v57, %v312_v58 }
  0xb9   :  { %3656 = vmatprep.subr.bf16.mxu1 %v6904_v45  ;;  %v192_v3 = vld [vmem:[#allocation7 + $0x160] sm:$0xff] }
  0xba   :  { %v316_v4 = vld [vmem:[#allocation7 + $0x540] sm:$0xff]  ;;  %v6800_v10 = vcombine.high %v188_v2, %v192_v3  ;;  %v6799_v17 = vcombine.low %v188_v2, %v192_v3 }
  0xbb   :  { %3616 = vmatpush1.bf16.msra.mxu0 %v6775_v50  ;;  %v320_v5 = vld [vmem:[#allocation7 + $0x560] sm:$0xff] }
  0xbc   :  { %3657 = vmatpush1.bf16.msra.mxu1 %v6903_v51  ;;  %3617 = vmatprep.subr.bf16.mxu0 %v6784_v53  ;;  %v6928_v11 = vcombine.high %v316_v4, %v320_v5  ;;  %v196_v12 = vld [vmem:[#allocation7 + $0x180] sm:$0xff]  ;;  %v6927_v18 = vcombine.low %v316_v4, %v320_v5 }
  0xbd   :  { %3658 = vmatprep.subr.bf16.mxu1 %v6912_v54  ;;  %v200_v13 = vld [vmem:[#allocation7 + $0x1a0] sm:$0xff] }
  0xbe   :  { %v324_v14 = vld [vmem:[#allocation7 + $0x580] sm:$0xff]  ;;  %v6808_v19 = vcombine.high %v196_v12, %v200_v13  ;;  %v6807_v26 = vcombine.low %v196_v12, %v200_v13 }
  0xbf   :  { %3618 = vmatpush1.bf16.msra.mxu0 %v6783_v60  ;;  %v328_v15 = vld [vmem:[#allocation7 + $0x5a0] sm:$0xff] }
  0xc0   :  { %3659 = vmatpush1.bf16.msra.mxu1 %v6911_v61  ;;  %3619 = vmatprep.subr.bf16.mxu0 %v6792_v63  ;;  %v6936_v20 = vcombine.high %v324_v14, %v328_v15  ;;  %v204_v21 = vld [vmem:[#allocation7 + $0x1c0] sm:$0xff]  ;;  %v6935_v27 = vcombine.low %v324_v14, %v328_v15 }
  0xc1   :  { %3660 = vmatprep.subr.bf16.mxu1 %v6920_v1  ;;  %v208_v23 = vld [vmem:[#allocation7 + $0x1e0] sm:$0xff] }
  0xc2   :  { %v332_v24 = vld [vmem:[#allocation7 + $0x5c0] sm:$0xff]  ;;  %v6816_v28 = vcombine.high %v204_v21, %v208_v23  ;;  %v6815_v36 = vcombine.low %v204_v21, %v208_v23 }
  0xc3   :  { %3620 = vmatpush1.bf16.msra.mxu0 %v6791_v7  ;;  %v336_v25 = vld [vmem:[#allocation7 + $0x5e0] sm:$0xff] }
  0xc4   :  { %3661 = vmatpush1.bf16.msra.mxu1 %v6919_v8  ;;  %3621 = vmatprep.subr.bf16.mxu0 %v6800_v10  ;;  %v6944_v29 = vcombine.high %v332_v24, %v336_v25  ;;  %v212_v30 = vld [vmem:[#allocation7 + $0x200] sm:$0xff]  ;;  %v6943_v37 = vcombine.low %v332_v24, %v336_v25 }
  0xc5   :  { %3662 = vmatprep.subr.bf16.mxu1 %v6928_v11  ;;  %v216_v32 = vld [vmem:[#allocation7 + $0x220] sm:$0xff] }
  0xc6   :  { %v340_v33 = vld [vmem:[#allocation7 + $0x600] sm:$0xff]  ;;  %v6824_v38 = vcombine.high %v212_v30, %v216_v32  ;;  %v6823_v45 = vcombine.low %v212_v30, %v216_v32 }
  0xc7   :  { %3622 = vmatpush1.bf16.msra.mxu0 %v6799_v17  ;;  %v344_v34 = vld [vmem:[#allocation7 + $0x620] sm:$0xff] }
  0xc8   :  { %3663 = vmatpush1.bf16.msra.mxu1 %v6927_v18  ;;  %3623 = vmatprep.subr.bf16.mxu0 %v6808_v19  ;;  %v6952_v39 = vcombine.high %v340_v33, %v344_v34  ;;  %v220_v40 = vld [vmem:[#allocation7 + $0x240] sm:$0xff]  ;;  %v6951_v46 = vcombine.low %v340_v33, %v344_v34 }
  0xc9   :  { %3664 = vmatprep.subr.bf16.mxu1 %v6936_v20  ;;  %v224_v41 = vld [vmem:[#allocation7 + $0x260] sm:$0xff] }
  0xca   :  { %v348_v42 = vld [vmem:[#allocation7 + $0x640] sm:$0xff]  ;;  %v6832_v47 = vcombine.high %v220_v40, %v224_v41  ;;  %v6831_v54 = vcombine.low %v220_v40, %v224_v41 }
  0xcb   :  { %3624 = vmatpush1.bf16.msra.mxu0 %v6807_v26  ;;  %v352_v44 = vld [vmem:[#allocation7 + $0x660] sm:$0xff] }
  0xcc   :  { %3665 = vmatpush1.bf16.msra.mxu1 %v6935_v27  ;;  %3625 = vmatprep.subr.bf16.mxu0 %v6816_v28  ;;  %v6960_v48 = vcombine.high %v348_v42, %v352_v44  ;;  %v228_v49 = vld [vmem:[#allocation7 + $0x280] sm:$0xff]  ;;  %v6959_v55 = vcombine.low %v348_v42, %v352_v44 }
  0xcd   :  { %3666 = vmatprep.subr.bf16.mxu1 %v6944_v29  ;;  %v232_v50 = vld [vmem:[#allocation7 + $0x2a0] sm:$0xff] }
  0xce   :  { %v356_v51 = vld [vmem:[#allocation7 + $0x680] sm:$0xff]  ;;  %v6840_v56 = vcombine.high %v228_v49, %v232_v50  ;;  %v6839_v63 = vcombine.low %v228_v49, %v232_v50 }
  0xcf   :  { %3626 = vmatpush1.bf16.msra.mxu0 %v6815_v36  ;;  %v360_v53 = vld [vmem:[#allocation7 + $0x6a0] sm:$0xff] }
  0xd0   :  { %3667 = vmatpush1.bf16.msra.mxu1 %v6943_v37  ;;  %3627 = vmatprep.subr.bf16.mxu0 %v6824_v38  ;;  %v6968_v57 = vcombine.high %v356_v51, %v360_v53  ;;  %v236_v58 = vld [vmem:[#allocation7 + $0x2c0] sm:$0xff]  ;;  %v6967_v1 = vcombine.low %v356_v51, %v360_v53 }
  0xd1   :  { %3668 = vmatprep.subr.bf16.mxu1 %v6952_v39  ;;  %v240_v59 = vld [vmem:[#allocation7 + $0x2e0] sm:$0xff] }
  0xd2   :  { %v364_v60 = vld [vmem:[#allocation7 + $0x6c0] sm:$0xff]  ;;  %v6848_v2 = vcombine.high %v236_v58, %v240_v59  ;;  %v6847_v8 = vcombine.low %v236_v58, %v240_v59 }
  0xd3   :  { %3628 = vmatpush1.bf16.msra.mxu0 %v6823_v45  ;;  %v368_v61 = vld [vmem:[#allocation7 + $0x6e0] sm:$0xff]  ;;  %v907_v45 = vcombine.high %v8559_v31, %v8559_v31 }
  0xd4   :  { %3669 = vmatpush1.bf16.msra.mxu1 %v6951_v46  ;;  %3629 = vmatprep.subr.bf16.mxu0 %v6832_v47  ;;  %v6976_v3 = vcombine.high %v364_v60, %v368_v61  ;;  %v244_v4 = vld [vmem:[#allocation7 + $0x300] sm:$0xff]  ;;  %v6975_v10 = vcombine.low %v364_v60, %v368_v61  ;;  %v8569_v46 = vrot.slane %v8545_v62, %v8542_v52 }
  0xd5   :  { %3670 = vmatprep.subr.bf16.mxu1 %v6960_v48  ;;  %v248_v5 = vld [vmem:[#allocation7 + $0x320] sm:$0xff] }
  0xd6   :  { %v372_v6 = vld [vmem:[#allocation7 + $0x700] sm:$0xff]  ;;  %v6856_v11 = vcombine.high %v244_v4, %v248_v5  ;;  %v6855_v18 = vcombine.low %v244_v4, %v248_v5  ;;  %v8576_v31 = vcombine.high %v8569_v46, %v8569_v46 }
  0xd7   :  { %3630 = vmatpush1.bf16.msra.mxu0 %v6831_v54  ;;  %v376_v7 = vld [vmem:[#allocation7 + $0x720] sm:$0xff] }
  0xd8   :  { %3671 = vmatpush1.bf16.msra.mxu1 %v6959_v55  ;;  %3631 = vmatprep.subr.bf16.mxu0 %v6840_v56  ;;  %v6984_v12 = vcombine.high %v372_v6, %v376_v7  ;;  %v252_v13 = vld [vmem:[#allocation7 + $0x340] sm:$0xff]  ;;  %v6983_v19 = vcombine.low %v372_v6, %v376_v7  ;;  %v8572_v56 = vrot.slane %v907_v45, %v8542_v52 }
  0xd9   :  { %3672 = vmatprep.subr.bf16.mxu1 %v6968_v57  ;;  %v256_v14 = vld [vmem:[#allocation7 + $0x360] sm:$0xff] }
  0xda   :  { %v380_v15 = vld [vmem:[#allocation7 + $0x740] sm:$0xff]  ;;  %v6864_v21 = vcombine.high %v252_v13, %v256_v14  ;;  %v6863_v26 = vcombine.low %v252_v13, %v256_v14 }
  0xdb   :  { %3632 = vmatpush1.bf16.msra.mxu0 %v6839_v63  ;;  %v384_v17 = vld [vmem:[#allocation7 + $0x760] sm:$0xff] }
  0xdc   :  { %3673 = vmatpush1.bf16.msra.mxu1 %v6967_v1  ;;  %3633 = vmatprep.subr.bf16.mxu0 %v6848_v2  ;;  %v260_v20 = vld [vmem:[#allocation7 + $0x380] sm:$0xff]  ;;  %v6992_v22 = vcombine.high %v380_v15, %v384_v17  ;;  %v6991_v27 = vcombine.low %v380_v15, %v384_v17  ;;  %v8580_v2 = vcombine.high %v8572_v56, %v8572_v56 }
  0xdd   :  { %3674 = vmatprep.subr.bf16.mxu1 %v6976_v3  ;;  %v264_v23 = vld [vmem:[#allocation7 + $0x3a0] sm:$0xff] }
  0xde   :  { %v388_v24 = vld [vmem:[#allocation7 + $0x780] sm:$0xff]  ;;  %v6872_v32 = vcombine.high %v260_v20, %v264_v23  ;;  %v6871_v36 = vcombine.low %v260_v20, %v264_v23 }
  0xdf   :  { %3634 = vmatpush1.bf16.msra.mxu0 %v6847_v8  ;;  %v392_v25 = vld [vmem:[#allocation7 + $0x7a0] sm:$0xff] }
  0xe0   :  { %3675 = vmatpush1.bf16.msra.mxu1 %v6975_v10  ;;  %3635 = vmatprep.subr.bf16.mxu0 %v6856_v11  ;;  %v268_v28 = vld [vmem:[#allocation7 + $0x3c0] sm:$0xff]  ;;  %v7000_v33 = vcombine.high %v388_v24, %v392_v25  ;;  %v6999_v37 = vcombine.low %v388_v24, %v392_v25 }
  0xe1   :  { %3676 = vmatprep.subr.bf16.mxu1 %v6984_v12  ;;  %v272_v29 = vld [vmem:[#allocation7 + $0x3e0] sm:$0xff] }
  0xe2   :  { %v396_v30 = vld [vmem:[#allocation7 + $0x7c0] sm:$0xff]  ;;  %v6880_v41 = vcombine.high %v268_v28, %v272_v29  ;;  %v6879_v47 = vcombine.low %v268_v28, %v272_v29 }
  0xe3   :  { %3636 = vmatpush1.bf16.msra.mxu0 %v6855_v18  ;;  %v400_v34 = vld [vmem:[#allocation7 + $0x7e0] sm:$0xff] }
  0xe4   :  { %3677 = vmatpush1.bf16.msra.mxu1 %v6983_v19  ;;  %3637 = vmatprep.subr.bf16.mxu0 %v6864_v21  ;;  %v404_v38 = vld [vmem:[#allocation7 + $0x800] sm:$0xff]  ;;  %v7008_v42 = vcombine.high %v396_v30, %v400_v34  ;;  %v7007_v48 = vcombine.low %v396_v30, %v400_v34 }
  0xe5   :  { %3678 = vmatprep.subr.bf16.mxu1 %v6992_v22  ;;  %v408_v39 = vld [vmem:[#allocation7 + $0x820] sm:$0xff] }
  0xe6   :  { %v532_v40 = vld [vmem:[#allocation7 + $0xc00] sm:$0xff]  ;;  %v7016_v53 = vcombine.high %v404_v38, %v408_v39  ;;  %v7015_v62 = vcombine.low %v404_v38, %v408_v39 }
  0xe7   :  { %3638 = vmatpush1.bf16.msra.mxu0 %v6863_v26  ;;  %v536_v44 = vld [vmem:[#allocation7 + $0xc20] sm:$0xff] }
  0xe8   :  { %3679 = vmatpush1.bf16.msra.mxu1 %v6991_v27  ;;  %3639 = vmatprep.subr.bf16.mxu0 %v6872_v32  ;;  %v412_v49 = vld [vmem:[#allocation7 + $0x840] sm:$0xff]  ;;  %v7144_v54 = vcombine.high %v532_v40, %v536_v44  ;;  %v7143_v57 = vcombine.low %v532_v40, %v536_v44 }
  0xe9   :  { %3680 = vmatprep.subr.bf16.mxu1 %v7000_v33  ;;  %v416_v50 = vld [vmem:[#allocation7 + $0x860] sm:$0xff] }
  0xea   :  { %v540_v51 = vld [vmem:[#allocation7 + $0xc40] sm:$0xff]  ;;  %v7024_v61 = vcombine.high %v412_v49, %v416_v50  ;;  %v7023_v3 = vcombine.low %v412_v49, %v416_v50 }
  0xeb   :  { %3640 = vmatpush1.bf16.msra.mxu0 %v6871_v36  ;;  %v544_v55 = vld [vmem:[#allocation7 + $0xc60] sm:$0xff] }
  0xec   :  { %3681 = vmatpush1.bf16.msra.mxu1 %v6999_v37  ;;  %3641 = vmatprep.subr.bf16.mxu0 %v6880_v41  ;;  %v420_v58 = vld [vmem:[#allocation7 + $0x880] sm:$0xff]  ;;  %v7152_v63 = vcombine.high %v540_v51, %v544_v55  ;;  %v7151_v4 = vcombine.low %v540_v51, %v544_v55 }
  0xed   :  { %3682 = vmatprep.subr.bf16.mxu1 %v7008_v42  ;;  %v424_v59 = vld [vmem:[#allocation7 + $0x8a0] sm:$0xff] }
  0xee   :  { %v548_v60 = vld [vmem:[#allocation7 + $0xc80] sm:$0xff]  ;;  %v7032_v8 = vcombine.high %v420_v58, %v424_v59  ;;  %v7031_v12 = vcombine.low %v420_v58, %v424_v59 }
  0xef   :  { %3642 = vmatpush1.bf16.msra.mxu0 %v6879_v47  ;;  %v552_v1 = vld [vmem:[#allocation7 + $0xca0] sm:$0xff] }
  0xf0   :  { %3683 = vmatpush1.bf16.msra.mxu1 %v7007_v48  ;;  %3693 = vmatprep.subr.bf16.mxu0 %v7016_v53  ;;  %v428_v5 = vld [vmem:[#allocation7 + $0x8c0] sm:$0xff]  ;;  %v7160_v10 = vcombine.high %v548_v60, %v552_v1  ;;  %v7159_v13 = vcombine.low %v548_v60, %v552_v1 }
  0xf1   :  { %3734 = vmatprep.subr.bf16.mxu1 %v7144_v54  ;;  %v432_v6 = vld [vmem:[#allocation7 + $0x8e0] sm:$0xff] }
  0xf2   :  { %3644 = vmatmul.mubr.bf16.vlgmr.msra.gmra.mrb[8].mxu0 %v8569_v46  ;;  %v556_v7 = vld [vmem:[#allocation7 + $0xcc0] sm:$0xff]  ;;  %v7040_v18 = vcombine.high %v428_v5, %v432_v6  ;;  %v7039_v21 = vcombine.low %v428_v5, %v432_v6 }
  0xf3   :  { %3685 = vmatmul.mubr.bf16.vlgmr.msra.gmra.mrb[8].mxu1 %v8576_v31  ;;  %3694 = vmatpush1.bf16.msra.mxu0 %v7015_v62  ;;  %v560_v11 = vld [vmem:[#allocation7 + $0xce0] sm:$0xff] }
  0xf4   :  { %3735 = vmatpush1.bf16.msra.mxu1 %v7143_v57  ;;  %3695 = vmatprep.subr.bf16.mxu0 %v7024_v61  ;;  %v436_v14 = vld [vmem:[#allocation7 + $0x900] sm:$0xff]  ;;  %v7168_v19 = vcombine.high %v556_v7, %v560_v11  ;;  %v7167_v22 = vcombine.low %v556_v7, %v560_v11 }
  0xf5   :  { %3736 = vmatprep.subr.bf16.mxu1 %v7152_v63  ;;  %3725 = vmatprep.mubr.bf16.mxu0 %v8572_v56  ;;  %v440_v15 = vld [vmem:[#allocation7 + $0x920] sm:$0xff] }
  0xf6   :  { %3766 = vmatprep.mubr.bf16.mxu1 %v8580_v2  ;;  %v564_v17 = vld [vmem:[#allocation7 + $0xd00] sm:$0xff]  ;;  %v7048_v26 = vcombine.high %v436_v14, %v440_v15  ;;  %v7047_v29 = vcombine.low %v436_v14, %v440_v15 }
  0xf7   :  { %3696 = vmatpush1.bf16.msra.mxu0 %v7023_v3  ;;  %v568_v20 = vld [vmem:[#allocation7 + $0xd20] sm:$0xff] }
  0xf8   :  { %3737 = vmatpush1.bf16.msra.mxu1 %v7151_v4  ;;  %3697 = vmatprep.subr.bf16.mxu0 %v7032_v8  ;;  %v444_v23 = vld [vmem:[#allocation7 + $0x940] sm:$0xff]  ;;  %v7176_v27 = vcombine.high %v564_v17, %v568_v20  ;;  %v7175_v30 = vcombine.low %v564_v17, %v568_v20 }
  0xf9   :  { %3738 = vmatprep.subr.bf16.mxu1 %v7160_v10  ;;  %v448_v24 = vld [vmem:[#allocation7 + $0x960] sm:$0xff] }
  0xfa   :  { %v572_v25 = vld [vmem:[#allocation7 + $0xd40] sm:$0xff]  ;;  %v7056_v36 = vcombine.high %v444_v23, %v448_v24  ;;  %v7055_v39 = vcombine.low %v444_v23, %v448_v24 }
  0xfb   :  { %3698 = vmatpush1.bf16.msra.mxu0 %v7031_v12  ;;  %v576_v28 = vld [vmem:[#allocation7 + $0xd60] sm:$0xff] }
  0xfc   :  { %3739 = vmatpush1.bf16.msra.mxu1 %v7159_v13  ;;  %3699 = vmatprep.subr.bf16.mxu0 %v7040_v18  ;;  %v452_v32 = vld [vmem:[#allocation7 + $0x980] sm:$0xff]  ;;  %v7184_v37 = vcombine.high %v572_v25, %v576_v28  ;;  %v7183_v40 = vcombine.low %v572_v25, %v576_v28 }
  0xfd   :  { %3740 = vmatprep.subr.bf16.mxu1 %v7168_v19  ;;  %v456_v33 = vld [vmem:[#allocation7 + $0x9a0] sm:$0xff] }
  0xfe   :  { %v580_v34 = vld [vmem:[#allocation7 + $0xd80] sm:$0xff]  ;;  %v7064_v45 = vcombine.high %v452_v32, %v456_v33  ;;  %v7063_v49 = vcombine.low %v452_v32, %v456_v33 }
  0xff   :  { %3700 = vmatpush1.bf16.msra.mxu0 %v7039_v21  ;;  %v584_v38 = vld [vmem:[#allocation7 + $0xda0] sm:$0xff] }
 0x100   :  { %3741 = vmatpush1.bf16.msra.mxu1 %v7167_v22  ;;  %3701 = vmatprep.subr.bf16.mxu0 %v7048_v26  ;;  %v460_v41 = vld [vmem:[#allocation7 + $0x9c0] sm:$0xff]  ;;  %v7192_v47 = vcombine.high %v580_v34, %v584_v38  ;;  %v7191_v50 = vcombine.low %v580_v34, %v584_v38 }
 0x101   :  { %3742 = vmatprep.subr.bf16.mxu1 %v7176_v27  ;;  %v464_v42 = vld [vmem:[#allocation7 + $0x9e0] sm:$0xff] }
 0x102   :  { %v588_v44 = vld [vmem:[#allocation7 + $0xdc0] sm:$0xff]  ;;  %v7072_v55 = vcombine.high %v460_v41, %v464_v42  ;;  %v7071_v58 = vcombine.low %v460_v41, %v464_v42 }
 0x103   :  { %3702 = vmatpush1.bf16.msra.mxu0 %v7047_v29  ;;  %v592_v48 = vld [vmem:[#allocation7 + $0xde0] sm:$0xff] }
 0x104   :  { %3743 = vmatpush1.bf16.msra.mxu1 %v7175_v30  ;;  %3703 = vmatprep.subr.bf16.mxu0 %v7056_v36  ;;  %v468_v51 = vld [vmem:[#allocation7 + $0xa00] sm:$0xff]  ;;  %v7200_v62 = vcombine.high %v588_v44, %v592_v48  ;;  %v7199_v59 = vcombine.low %v588_v44, %v592_v48 }
 0x105   :  { %3744 = vmatprep.subr.bf16.mxu1 %v7184_v37  ;;  %v472_v53 = vld [vmem:[#allocation7 + $0xa20] sm:$0xff] }
 0x106   :  { %v596_v54 = vld [vmem:[#allocation7 + $0xe00] sm:$0xff]  ;;  %v7080_v1 = vcombine.high %v468_v51, %v472_v53  ;;  %v7079_v5 = vcombine.low %v468_v51, %v472_v53 }
 0x107   :  { %3704 = vmatpush1.bf16.msra.mxu0 %v7055_v39  ;;  %v600_v57 = vld [vmem:[#allocation7 + $0xe20] sm:$0xff] }
 0x108   :  { %3745 = vmatpush1.bf16.msra.mxu1 %v7183_v40  ;;  %3705 = vmatprep.subr.bf16.mxu0 %v7064_v45  ;;  %v476_v60 = vld [vmem:[#allocation7 + $0xa40] sm:$0xff]  ;;  %v7208_v3 = vcombine.high %v596_v54, %v600_v57  ;;  %v7207_v6 = vcombine.low %v596_v54, %v600_v57 }
 0x109   :  { %3746 = vmatprep.subr.bf16.mxu1 %v7192_v47  ;;  %v480_v61 = vld [vmem:[#allocation7 + $0xa60] sm:$0xff] }
 0x10a   :  { %v604_v63 = vld [vmem:[#allocation7 + $0xe40] sm:$0xff]  ;;  %v7088_v11 = vcombine.high %v476_v60, %v480_v61  ;;  %v7087_v14 = vcombine.low %v476_v60, %v480_v61 }
 0x10b   :  { %3706 = vmatpush1.bf16.msra.mxu0 %v7063_v49  ;;  %v608_v4 = vld [vmem:[#allocation7 + $0xe60] sm:$0xff] }
 0x10c   :  { %3747 = vmatpush1.bf16.msra.mxu1 %v7191_v50  ;;  %3707 = vmatprep.subr.bf16.mxu0 %v7072_v55  ;;  %v484_v7 = vld [vmem:[#allocation7 + $0xa80] sm:$0xff]  ;;  %v7216_v12 = vcombine.high %v604_v63, %v608_v4  ;;  %v7215_v15 = vcombine.low %v604_v63, %v608_v4 }
 0x10d   :  { %3748 = vmatprep.subr.bf16.mxu1 %v7200_v62  ;;  %v488_v8 = vld [vmem:[#allocation7 + $0xaa0] sm:$0xff] }
 0x10e   :  { %v612_v10 = vld [vmem:[#allocation7 + $0xe80] sm:$0xff]  ;;  %v7096_v20 = vcombine.high %v484_v7, %v488_v8  ;;  %v7095_v23 = vcombine.low %v484_v7, %v488_v8 }
 0x10f   :  { %3708 = vmatpush1.bf16.msra.mxu0 %v7071_v58  ;;  %v616_v13 = vld [vmem:[#allocation7 + $0xea0] sm:$0xff] }
 0x110   :  { %3749 = vmatpush1.bf16.msra.mxu1 %v7199_v59  ;;  %3709 = vmatprep.subr.bf16.mxu0 %v7080_v1  ;;  %v492_v17 = vld [vmem:[#allocation7 + $0xac0] sm:$0xff]  ;;  %v7224_v21 = vcombine.high %v612_v10, %v616_v13  ;;  %v7223_v24 = vcombine.low %v612_v10, %v616_v13 }
 0x111   :  { %3750 = vmatprep.subr.bf16.mxu1 %v7208_v3  ;;  %v496_v18 = vld [vmem:[#allocation7 + $0xae0] sm:$0xff]  ;;  %v149_v3 = vld [vmem:[#allocation7 + $0x8] sm:$0xff] }
 0x112   :  { %v620_v19 = vld [vmem:[#allocation7 + $0xec0] sm:$0xff]  ;;  %v7104_v28 = vcombine.high %v492_v17, %v496_v18  ;;  %v7103_v32 = vcombine.low %v492_v17, %v496_v18 }
 0x113   :  { %3710 = vmatpush1.bf16.msra.mxu0 %v7079_v5  ;;  %v624_v22 = vld [vmem:[#allocation7 + $0xee0] sm:$0xff] }
 0x114   :  { %3751 = vmatpush1.bf16.msra.mxu1 %v7207_v6  ;;  %3711 = vmatprep.subr.bf16.mxu0 %v7088_v11  ;;  %v500_v25 = vld [vmem:[#allocation7 + $0xb00] sm:$0xff]  ;;  %v7232_v29 = vcombine.high %v620_v19, %v624_v22  ;;  %v7231_v33 = vcombine.low %v620_v19, %v624_v22  ;;  %v153_v6 = vld [vmem:[#allocation7 + $0x28] sm:$0xff] }
 0x115   :  { %3752 = vmatprep.subr.bf16.mxu1 %v7216_v12  ;;  %v504_v26 = vld [vmem:[#allocation7 + $0xb20] sm:$0xff]  ;;  %v157_v11 = vld [vmem:[#allocation7 + $0x48] sm:$0xff]  ;;  %v6762_v13 = vcombine.high %v149_v3, %v153_v6  ;;  %v6761_v18 = vcombine.low %v149_v3, %v153_v6 }
 0x116   :  { %v628_v27 = vld [vmem:[#allocation7 + $0xf00] sm:$0xff]  ;;  %v7112_v38 = vcombine.high %v500_v25, %v504_v26  ;;  %v7111_v41 = vcombine.low %v500_v25, %v504_v26  ;;  %v165_v19 = vld [vmem:[#allocation7 + $0x88] sm:$0xff]  ;;  %v6758_v26 = vld.sshfl [vmem:[#allocation2 + $0x8] sm:$0x1 pattern:$0x75316420] }
 0x117   :  { %3712 = vmatpush1.bf16.msra.mxu0 %v7087_v14  ;;  %v632_v30 = vld [vmem:[#allocation7 + $0xf20] sm:$0xff]  ;;  %v161_v14 = vld [vmem:[#allocation7 + $0x68] sm:$0xff] }
 0x118   :  { %3753 = vmatpush1.bf16.msra.mxu1 %v7215_v15  ;;  %3713 = vmatprep.subr.bf16.mxu0 %v7096_v20  ;;  %v508_v34 = vld [vmem:[#allocation7 + $0xb40] sm:$0xff]  ;;  %v7240_v39 = vcombine.high %v628_v27, %v632_v30  ;;  %v7239_v42 = vcombine.low %v628_v27, %v632_v30  ;;  %v8588_v15 = vcombine.high %v8563_v35, %v8563_v35  ;;  %v169_v20 = vld [vmem:[#allocation7 + $0xa8] sm:$0xff] }
 0x119   :  { %3754 = vmatprep.subr.bf16.mxu1 %v7224_v21  ;;  %v512_v36 = vld [vmem:[#allocation7 + $0xb60] sm:$0xff]  ;;  %v277_v21 = vld [vmem:[#allocation7 + $0x408] sm:$0xff]  ;;  %v6769_v27 = vcombine.low %v157_v11, %v161_v14 }
 0x11a   :  { %v636_v37 = vld [vmem:[#allocation7 + $0xf40] sm:$0xff]  ;;  %v7120_v48 = vcombine.high %v508_v34, %v512_v36  ;;  %v7119_v51 = vcombine.low %v508_v34, %v512_v36  ;;  %v281_v25 = vld [vmem:[#allocation7 + $0x428] sm:$0xff]  ;;  %v6778_v34 = vcombine.high %v165_v19, %v169_v20 }
 0x11b   :  { %3714 = vmatpush1.bf16.msra.mxu0 %v7095_v23  ;;  %v640_v40 = vld [vmem:[#allocation7 + $0xf60] sm:$0xff]  ;;  %v6770_v23 = vcombine.high %v157_v11, %v161_v14  ;;  %v285_v30 = vld [vmem:[#allocation7 + $0x448] sm:$0xff]  ;;  %v6890_v36 = vcombine.high %v277_v21, %v281_v25 }
 0x11c   :  { %3755 = vmatpush1.bf16.msra.mxu1 %v7223_v24  ;;  %3715 = vmatprep.subr.bf16.mxu0 %v7104_v28  ;;  %v516_v44 = vld [vmem:[#allocation7 + $0xb80] sm:$0xff]  ;;  %v7248_v49 = vcombine.high %v636_v37, %v640_v40  ;;  %v7247_v53 = vcombine.low %v636_v37, %v640_v40  ;;  %v173_v28 = vld [vmem:[#allocation7 + $0xc8] sm:$0xff]  ;;  %v8597_v37 = vrot.slane %v6758_v26, %v8542_v52 }
 0x11d   :  { %3756 = vmatprep.subr.bf16.mxu1 %v7232_v29  ;;  %v520_v45 = vld [vmem:[#allocation7 + $0xba0] sm:$0xff]  ;;  %v177_v29 = vld [vmem:[#allocation7 + $0xe8] sm:$0xff] }
 0x11e   :  { %v644_v47 = vld [vmem:[#allocation7 + $0xf80] sm:$0xff]  ;;  %v7128_v57 = vcombine.high %v516_v44, %v520_v45  ;;  %v7127_v60 = vcombine.low %v516_v44, %v520_v45  ;;  %v181_v40 = vld [vmem:[#allocation7 + $0x108] sm:$0xff]  ;;  %v6786_v44 = vcombine.high %v173_v28, %v177_v29  ;;  %v6785_v52 = vcombine.low %v173_v28, %v177_v29 }
 0x11f   :  { %3716 = vmatpush1.bf16.msra.mxu0 %v7103_v32  ;;  %v648_v50 = vld [vmem:[#allocation7 + $0xfa0] sm:$0xff]  ;;  %v289_v32 = vld [vmem:[#allocation7 + $0x468] sm:$0xff] }
 0x120   :  { %3757 = vmatpush1.bf16.msra.mxu1 %v7231_v33  ;;  %3717 = vmatprep.subr.bf16.mxu0 %v7112_v38  ;;  %v524_v54 = vld [vmem:[#allocation7 + $0xbc0] sm:$0xff]  ;;  %v7256_v58 = vcombine.high %v644_v47, %v648_v50  ;;  %v7255_v61 = vcombine.low %v644_v47, %v648_v50  ;;  %v6777_v38 = vcombine.low %v165_v19, %v169_v20  ;;  %v297_v47 = vld [vmem:[#allocation7 + $0x4a8] sm:$0xff] }
 0x121   :  { %3758 = vmatprep.subr.bf16.mxu1 %v7240_v39  ;;  %v528_v55 = vld [vmem:[#allocation7 + $0xbe0] sm:$0xff]  ;;  %v6889_v39 = vcombine.low %v277_v21, %v281_v25  ;;  %v6898_v45 = vcombine.high %v285_v30, %v289_v32  ;;  %v193_v50 = vld [vmem:[#allocation7 + $0x168] sm:$0xff] }
 0x122   :  { %v652_v62 = vld [vmem:[#allocation7 + $0xfc0] sm:$0xff]  ;;  %v7136_v4 = vcombine.high %v524_v54, %v528_v55  ;;  %v7135_v7 = vcombine.low %v524_v54, %v528_v55  ;;  %v305_v55 = vld [vmem:[#allocation7 + $0x4e8] sm:$0xff] }
 0x123   :  { %3718 = vmatpush1.bf16.msra.mxu0 %v7111_v41  ;;  %v656_v59 = vld [vmem:[#allocation7 + $0xfe0] sm:$0xff]  ;;  %v185_v41 = vld [vmem:[#allocation7 + $0x128] sm:$0xff] }
 0x124   :  { %3759 = vmatpush1.bf16.msra.mxu1 %v7239_v42  ;;  %3719 = vmatprep.subr.bf16.mxu0 %v7120_v48  ;;  %v660_v63 = vld [vmem:[#allocation7 + $0x1000] sm:$0xff]  ;;  %v7264_v5 = vcombine.high %v652_v62, %v656_v59  ;;  %v7263_v8 = vcombine.low %v652_v62, %v656_v59  ;;  %v293_v42 = vld [vmem:[#allocation7 + $0x488] sm:$0xff]  ;;  %v6897_v48 = vcombine.low %v285_v30, %v289_v32 }
 0x125   :  { %3760 = vmatprep.subr.bf16.mxu1 %v7248_v49  ;;  %v664_v1 = vld [vmem:[#allocation7 + $0x1020] sm:$0xff]  ;;  %v189_v49 = vld [vmem:[#allocation7 + $0x148] sm:$0xff]  ;;  %v6906_v54 = vcombine.high %v293_v42, %v297_v47  ;;  %v6793_v62 = vcombine.low %v181_v40, %v185_v41 }
 0x126   :  { %v668_v10 = vld [vmem:[#allocation7 + $0x1040] sm:$0x11]  ;;  %v7272_v12 = vcombine.high %v660_v63, %v664_v1  ;;  %v7271_v17 = vcombine.low %v660_v63, %v664_v1  ;;  %v201_v59 = vld [vmem:[#allocation7 + $0x1a8] sm:$0xff]  ;;  %v6801_v3 = vcombine.low %v189_v49, %v193_v50 }
 0x127   :  { %3720 = vmatpush1.bf16.msra.mxu0 %v7119_v51  ;;  %v7280_v22 = vcombine.high %v668_v10, %v668_v10  ;;  %v7279_v24 = vcombine.low %v668_v10, %v668_v10  ;;  %v301_v51 = vld [vmem:[#allocation7 + $0x4c8] sm:$0xff] }
 0x128   :  { %3761 = vmatpush1.bf16.msra.mxu1 %v7247_v53  ;;  %3721 = vmatprep.subr.bf16.mxu0 %v7128_v57  ;;  %v6794_v53 = vcombine.high %v181_v40, %v185_v41  ;;  %v6905_v57 = vcombine.low %v293_v42, %v297_v47  ;;  %v6914_v63 = vcombine.high %v301_v51, %v305_v55  ;;  %v313_v1 = vld [vmem:[#allocation7 + $0x528] sm:$0xff] }
 0x129   :  { %3762 = vmatprep.subr.bf16.mxu1 %v7256_v58  ;;  %v3588_v33 = vsel %vm3586_vm2, %v7279_v24, 0  ;;  %v197_v58 = vld [vmem:[#allocation7 + $0x188] sm:$0xff] }
 0x12a   :  { %v209_v6 = vld [vmem:[#allocation7 + $0x1e8] sm:$0xff] }
 0x12b   :  { %3722 = vmatpush1.bf16.msra.mxu0 %v7127_v60  ;;  %v309_v60 = vld [vmem:[#allocation7 + $0x508] sm:$0xff] }
 0x12c   :  { %3763 = vmatpush1.bf16.msra.mxu1 %v7255_v61  ;;  %3723 = vmatprep.subr.bf16.mxu0 %v7136_v4  ;;  %v6802_v61 = vcombine.high %v189_v49, %v193_v50  ;;  %v6913_v4 = vcombine.low %v301_v51, %v305_v55  ;;  %v6922_v10 = vcombine.high %v309_v60, %v313_v1  ;;  %v321_v11 = vld [vmem:[#allocation7 + $0x568] sm:$0xff] }
 0x12d   :  { %3764 = vmatprep.subr.bf16.mxu1 %v7264_v5  ;;  %v205_v5 = vld [vmem:[#allocation7 + $0x1c8] sm:$0xff] }
 0x12e   :  { %v213_v14 = vld [vmem:[#allocation7 + $0x208] sm:$0xff]  ;;  %v6818_v19 = vcombine.high %v205_v5, %v209_v6 }
 0x12f   :  { %3724 = vmatpush1.bf16.msra.mxu0 %v7135_v7  ;;  %v317_v7 = vld [vmem:[#allocation7 + $0x548] sm:$0xff] }
 0x130   :  { %3765 = vmatpush1.bf16.msra.mxu1 %v7263_v8  ;;  %3775 = vmatprep.subr.bf16.mxu0 %v7272_v12  ;;  %v6810_v8 = vcombine.high %v197_v58, %v201_v59  ;;  %v6809_v12 = vcombine.low %v197_v58, %v201_v59  ;;  %v6930_v20 = vcombine.high %v317_v7, %v321_v11  ;;  %v329_v21 = vld [vmem:[#allocation7 + $0x5a8] sm:$0xff] }
 0x131   :  { %3816 = vmatprep.subr.bf16.mxu1 %v6762_v13  ;;  %v6921_v13 = vcombine.low %v309_v60, %v313_v1  ;;  %v221_v24 = vld [vmem:[#allocation7 + $0x248] sm:$0xff] }
 0x132   :  { %3726 = vmatmul.mubr.bf16.vlgmr.msra.gmra.mrb[12].mxu0 %v8563_v35  ;;  %v225_v25 = vld [vmem:[#allocation7 + $0x268] sm:$0xff] }
 0x133   :  { %3767 = vmatmul.mubr.bf16.vlgmr.msra.gmra.mrb[12].mxu1 %v8588_v15  ;;  %3776 = vmatpush1.bf16.msra.mxu0 %v7271_v17  ;;  %v217_v17 = vld [vmem:[#allocation7 + $0x228] sm:$0xff]  ;;  %v6833_v41 = vcombine.low %v221_v24, %v225_v25 }
 0x134   :  { %3817 = vmatpush1.bf16.msra.mxu1 %v6761_v18  ;;  %7287 = vmatprep.subr.msk.bf16.mxu0 %vm3586_vm2, %v7280_v22  ;;  %v325_v18 = vld [vmem:[#allocation7 + $0x588] sm:$0xff]  ;;  %v6817_v22 = vcombine.low %v205_v5, %v209_v6  ;;  %v6825_v30 = vcombine.low %v213_v14, %v217_v17 }
 0x135   :  { %3818 = vmatprep.subr.bf16.mxu1 %v6770_v23  ;;  %3807 = vmatprep.mubr.bf16.mxu0 %v8355_v0  ;;  %v6929_v23 = vcombine.low %v317_v7, %v321_v11  ;;  %v333_v26 = vld [vmem:[#allocation7 + $0x5c8] sm:$0xff]  ;;  %v6938_v28 = vcombine.high %v325_v18, %v329_v21  ;;  %v6937_v32 = vcombine.low %v325_v18, %v329_v21 }
 0x136   :  { %3848 = vmatprep.mubr.bf16.mxu1 %v8550_v9  ;;  %v337_v29 = vld [vmem:[#allocation7 + $0x5e8] sm:$0xff] }
 0x137   :  { %3778 = vmatpush1.bf16.msra.mxu0 %v3588_v33  ;;  %v229_v33 = vld [vmem:[#allocation7 + $0x288] sm:$0xff]  ;;  %v6945_v42 = vcombine.low %v333_v26, %v337_v29 }
 0x138   :  { %3819 = vmatpush1.bf16.msra.mxu1 %v6769_v27  ;;  %3857 = vmatprep.subr.bf16.mxu0 %v6890_v36  ;;  %v6826_v27 = vcombine.high %v213_v14, %v217_v17  ;;  %v341_v36 = vld [vmem:[#allocation7 + $0x608] sm:$0xff] }
 0x139   :  { %3820 = vmatprep.subr.bf16.mxu1 %v6778_v34  ;;  %v233_v34 = vld [vmem:[#allocation7 + $0x2a8] sm:$0xff] }
 0x13a   :  { %7288 = vmatmul.mubr.msk.bf16.vlgmr.msra.gmra.mrb[16].mxu0 %vm3582_vm3, %v8597_v37  ;;  %v345_v40 = vld [vmem:[#allocation7 + $0x628] sm:$0xff]  ;;  %v6841_v50 = vcombine.low %v229_v33, %v233_v34 }
 0x13b   :  { %3858 = vmatpush1.bf16.msra.mxu0 %v6889_v39  ;;  %3889 = vmatprep.mubr.bf16.mxu0 %v8555_v16  ;;  %v6946_v39 = vcombine.high %v333_v26, %v337_v29  ;;  %v349_v47 = vld [vmem:[#allocation7 + $0x648] sm:$0xff]  ;;  %v6953_v51 = vcombine.low %v341_v36, %v345_v40 }
 0x13c   :  { %3821 = vmatpush1.bf16.msra.mxu1 %v6777_v38  ;;  %3859 = vmatprep.subr.bf16.mxu0 %v6898_v45  ;;  %v6834_v38 = vcombine.high %v221_v24, %v225_v25  ;;  %v241_v45 = vld [vmem:[#allocation7 + $0x2e8] sm:$0xff] }
 0x13d   :  { %3822 = vmatprep.subr.bf16.mxu1 %v6786_v44  ;;  %v237_v44 = vld [vmem:[#allocation7 + $0x2c8] sm:$0xff] }
 0x13e   :  { %v353_v49 = vld [vmem:[#allocation7 + $0x668] sm:$0xff]  ;;  %v6849_v59 = vcombine.low %v237_v44, %v241_v45 }
 0x13f   :  { %3860 = vmatpush1.bf16.msra.mxu0 %v6897_v48  ;;  %v6954_v48 = vcombine.high %v341_v36, %v345_v40  ;;  %v357_v55 = vld [vmem:[#allocation7 + $0x688] sm:$0xff]  ;;  %v6961_v60 = vcombine.low %v349_v47, %v353_v49 }
 0x140   :  { %3823 = vmatpush1.bf16.msra.mxu1 %v6785_v52  ;;  %3861 = vmatprep.subr.bf16.mxu0 %v6906_v54  ;;  %v6842_v52 = vcombine.high %v229_v33, %v233_v34  ;;  %v249_v54 = vld [vmem:[#allocation7 + $0x328] sm:$0xff] }
 0x141   :  { %3824 = vmatprep.subr.bf16.mxu1 %v6794_v53  ;;  %v245_v53 = vld [vmem:[#allocation7 + $0x308] sm:$0xff] }
 0x142   :  { %v361_v58 = vld [vmem:[#allocation7 + $0x6a8] sm:$0xff]  ;;  %v6857_v6 = vcombine.low %v245_v53, %v249_v54 }
 0x143   :  { %3862 = vmatpush1.bf16.msra.mxu0 %v6905_v57  ;;  %v6962_v57 = vcombine.high %v349_v47, %v353_v49  ;;  %v365_v1 = vld [vmem:[#allocation7 + $0x6c8] sm:$0xff]  ;;  %v6969_v7 = vcombine.low %v357_v55, %v361_v58 }
 0x144   :  { %3825 = vmatpush1.bf16.msra.mxu1 %v6793_v62  ;;  %3863 = vmatprep.subr.bf16.mxu0 %v6914_v63  ;;  %v6850_v62 = vcombine.high %v237_v44, %v241_v45  ;;  %v257_v63 = vld [vmem:[#allocation7 + $0x368] sm:$0xff] }
 0x145   :  { %3826 = vmatprep.subr.bf16.mxu1 %v6802_v61  ;;  %v253_v61 = vld [vmem:[#allocation7 + $0x348] sm:$0xff] }
 0x146   :  { %v369_v5 = vld [vmem:[#allocation7 + $0x6e8] sm:$0xff]  ;;  %v6865_v17 = vcombine.low %v253_v61, %v257_v63 }
 0x147   :  { %3864 = vmatpush1.bf16.msra.mxu0 %v6913_v4  ;;  %v6970_v4 = vcombine.high %v357_v55, %v361_v58  ;;  %v373_v11 = vld [vmem:[#allocation7 + $0x708] sm:$0xff]  ;;  %v6977_v18 = vcombine.low %v365_v1, %v369_v5 }
 0x148   :  { %3827 = vmatpush1.bf16.msra.mxu1 %v6801_v3  ;;  %3865 = vmatprep.subr.bf16.mxu0 %v6922_v10  ;;  %v6858_v3 = vcombine.high %v245_v53, %v249_v54  ;;  %v265_v10 = vld [vmem:[#allocation7 + $0x3a8] sm:$0xff] }
 0x149   :  { %3828 = vmatprep.subr.bf16.mxu1 %v6810_v8  ;;  %v261_v8 = vld [vmem:[#allocation7 + $0x388] sm:$0xff] }
 0x14a   :  { %v377_v14 = vld [vmem:[#allocation7 + $0x728] sm:$0xff]  ;;  %v6873_v25 = vcombine.low %v261_v8, %v265_v10 }
 0x14b   :  { %3866 = vmatpush1.bf16.msra.mxu0 %v6921_v13  ;;  %v6978_v13 = vcombine.high %v365_v1, %v369_v5  ;;  %v381_v21 = vld [vmem:[#allocation7 + $0x748] sm:$0xff]  ;;  %v6985_v26 = vcombine.low %v373_v11, %v377_v14 }
 0x14c   :  { %3829 = vmatpush1.bf16.msra.mxu1 %v6809_v12  ;;  %3867 = vmatprep.subr.bf16.mxu0 %v6930_v20  ;;  %v6866_v12 = vcombine.high %v253_v61, %v257_v63  ;;  %v273_v20 = vld [vmem:[#allocation7 + $0x3e8] sm:$0xff] }
 0x14d   :  { %3830 = vmatprep.subr.bf16.mxu1 %v6818_v19  ;;  %v269_v19 = vld [vmem:[#allocation7 + $0x3c8] sm:$0xff] }
 0x14e   :  { %v385_v24 = vld [vmem:[#allocation7 + $0x768] sm:$0xff]  ;;  %v6881_v34 = vcombine.low %v269_v19, %v273_v20 }
 0x14f   :  { %3868 = vmatpush1.bf16.msra.mxu0 %v6929_v23  ;;  %v6986_v23 = vcombine.high %v373_v11, %v377_v14  ;;  %v405_v29 = vld [vmem:[#allocation7 + $0x808] sm:$0xff]  ;;  %v6993_v36 = vcombine.low %v381_v21, %v385_v24 }
 0x150   :  { %3831 = vmatpush1.bf16.msra.mxu1 %v6817_v22  ;;  %3869 = vmatprep.subr.bf16.mxu0 %v6938_v28  ;;  %v6874_v22 = vcombine.high %v261_v8, %v265_v10  ;;  %v393_v28 = vld [vmem:[#allocation7 + $0x7a8] sm:$0xff] }
 0x151   :  { %3832 = vmatprep.subr.bf16.mxu1 %v6826_v27  ;;  %v389_v27 = vld [vmem:[#allocation7 + $0x788] sm:$0xff] }
 0x152   :  { %v409_v33 = vld [vmem:[#allocation7 + $0x828] sm:$0xff]  ;;  %v7001_v45 = vcombine.low %v389_v27, %v393_v28 }
 0x153   :  { %3870 = vmatpush1.bf16.msra.mxu0 %v6937_v32  ;;  %v6994_v32 = vcombine.high %v381_v21, %v385_v24  ;;  %v413_v40 = vld [vmem:[#allocation7 + $0x848] sm:$0xff]  ;;  %v7017_v47 = vcombine.low %v405_v29, %v409_v33 }
 0x154   :  { %3833 = vmatpush1.bf16.msra.mxu1 %v6825_v30  ;;  %3871 = vmatprep.subr.bf16.mxu0 %v6946_v39  ;;  %v6882_v30 = vcombine.high %v269_v19, %v273_v20  ;;  %v401_v39 = vld [vmem:[#allocation7 + $0x7e8] sm:$0xff] }
 0x155   :  { %3834 = vmatprep.subr.bf16.mxu1 %v6834_v38  ;;  %v397_v38 = vld [vmem:[#allocation7 + $0x7c8] sm:$0xff] }
 0x156   :  { %v417_v44 = vld [vmem:[#allocation7 + $0x868] sm:$0xff]  ;;  %v7009_v54 = vcombine.low %v397_v38, %v401_v39 }
 0x157   :  { %3872 = vmatpush1.bf16.msra.mxu0 %v6945_v42  ;;  %v7018_v42 = vcombine.high %v405_v29, %v409_v33  ;;  %v533_v49 = vld [vmem:[#allocation7 + $0xc08] sm:$0xff]  ;;  %v7025_v55 = vcombine.low %v413_v40, %v417_v44 }
 0x158   :  { %3835 = vmatpush1.bf16.msra.mxu1 %v6833_v41  ;;  %3873 = vmatprep.subr.bf16.mxu0 %v6954_v48  ;;  %v7002_v41 = vcombine.high %v389_v27, %v393_v28  ;;  %v425_v48 = vld [vmem:[#allocation7 + $0x8a8] sm:$0xff] }
 0x159   :  { %3836 = vmatprep.subr.bf16.mxu1 %v6842_v52  ;;  %v421_v52 = vld [vmem:[#allocation7 + $0x888] sm:$0xff] }
 0x15a   :  { %v537_v53 = vld [vmem:[#allocation7 + $0xc28] sm:$0xff]  ;;  %v7033_v63 = vcombine.low %v421_v52, %v425_v48 }
 0x15b   :  { %3874 = vmatpush1.bf16.msra.mxu0 %v6953_v51  ;;  %v7026_v51 = vcombine.high %v413_v40, %v417_v44  ;;  %v541_v58 = vld [vmem:[#allocation7 + $0xc48] sm:$0xff]  ;;  %v7145_v1 = vcombine.low %v533_v49, %v537_v53 }
 0x15c   :  { %3837 = vmatpush1.bf16.msra.mxu1 %v6841_v50  ;;  %3875 = vmatprep.subr.bf16.mxu0 %v6962_v57  ;;  %v7010_v50 = vcombine.high %v397_v38, %v401_v39  ;;  %v433_v57 = vld [vmem:[#allocation7 + $0x8e8] sm:$0xff] }
 0x15d   :  { %3838 = vmatprep.subr.bf16.mxu1 %v6850_v62  ;;  %v429_v62 = vld [vmem:[#allocation7 + $0x8c8] sm:$0xff] }
 0x15e   :  { %v545_v61 = vld [vmem:[#allocation7 + $0xc68] sm:$0xff]  ;;  %v7041_v10 = vcombine.low %v429_v62, %v433_v57 }
 0x15f   :  { %3876 = vmatpush1.bf16.msra.mxu0 %v6961_v60  ;;  %v7146_v60 = vcombine.high %v533_v49, %v537_v53  ;;  %v549_v5 = vld [vmem:[#allocation7 + $0xc88] sm:$0xff]  ;;  %v7153_v11 = vcombine.low %v541_v58, %v545_v61 }
 0x160   :  { %3839 = vmatpush1.bf16.msra.mxu1 %v6849_v59  ;;  %3877 = vmatprep.subr.bf16.mxu0 %v6970_v4  ;;  %v7034_v59 = vcombine.high %v421_v52, %v425_v48  ;;  %v441_v4 = vld [vmem:[#allocation7 + $0x928] sm:$0xff] }
 0x161   :  { %3840 = vmatprep.subr.bf16.mxu1 %v6858_v3  ;;  %v437_v3 = vld [vmem:[#allocation7 + $0x908] sm:$0xff] }
 0x162   :  { %v553_v8 = vld [vmem:[#allocation7 + $0xca8] sm:$0xff] }
 0x163   :  { %3878 = vmatpush1.bf16.msra.mxu0 %v6969_v7  ;;  %v7154_v7 = vcombine.high %v541_v58, %v545_v61  ;;  %v557_v14 = vld [vmem:[#allocation7 + $0xcc8] sm:$0xff]  ;;  %v7161_v27 = vcombine.low %v549_v5, %v553_v8 }
 0x164   :  { %3841 = vmatpush1.bf16.msra.mxu1 %v6857_v6  ;;  %3879 = vmatprep.subr.bf16.mxu0 %v6978_v13  ;;  %v7042_v6 = vcombine.high %v429_v62, %v433_v57  ;;  %v449_v13 = vld [vmem:[#allocation7 + $0x968] sm:$0xff] }
 0x165   :  { %3842 = vmatprep.subr.bf16.mxu1 %v6866_v12  ;;  %v445_v12 = vld [vmem:[#allocation7 + $0x948] sm:$0xff] }
 0x166   :  { %v561_v19 = vld [vmem:[#allocation7 + $0xce8] sm:$0xff]  ;;  %v7057_v39 = vcombine.low %v445_v12, %v449_v13 }
 0x167   :  { %3880 = vmatpush1.bf16.msra.mxu0 %v6977_v18  ;;  %v7162_v18 = vcombine.high %v549_v5, %v553_v8  ;;  %v453_v28 = vld [vmem:[#allocation7 + $0x988] sm:$0xff]  ;;  %v7170_v33 = vcombine.high %v557_v14, %v561_v19  ;;  %v7169_v40 = vcombine.low %v557_v14, %v561_v19 }
 0x168   :  { %3843 = vmatpush1.bf16.msra.mxu1 %v6865_v17  ;;  %3881 = vmatprep.subr.bf16.mxu0 %v6986_v23  ;;  %v7050_v17 = vcombine.high %v437_v3, %v441_v4  ;;  %v569_v38 = vld [vmem:[#allocation7 + $0xd28] sm:$0xff] }
 0x169   :  { %3844 = vmatprep.subr.bf16.mxu1 %v6874_v22  ;;  %v461_v44 = vld [vmem:[#allocation7 + $0x9c8] sm:$0xff] }
 0x16a   :  { %v465_v52 = vld [vmem:[#allocation7 + $0x9e8] sm:$0xff] }
 0x16b   :  { %3882 = vmatpush1.bf16.msra.mxu0 %v6985_v26  ;;  %v7049_v26 = vcombine.low %v437_v3, %v441_v4  ;;  %v573_v48 = vld [vmem:[#allocation7 + $0xd48] sm:$0xff]  ;;  %v7073_v4 = vcombine.low %v461_v44, %v465_v52 }
 0x16c   :  { %3845 = vmatpush1.bf16.msra.mxu1 %v6873_v25  ;;  %3883 = vmatprep.subr.bf16.mxu0 %v6994_v32  ;;  %v7058_v32 = vcombine.high %v445_v12, %v449_v13  ;;  %v577_v49 = vld [vmem:[#allocation7 + $0xd68] sm:$0xff] }
 0x16d   :  { %3846 = vmatprep.subr.bf16.mxu1 %v6882_v30  ;;  %v469_v61 = vld [vmem:[#allocation7 + $0xa08] sm:$0xff]  ;;  %v7185_v5 = vcombine.low %v573_v48, %v577_v49 }
 0x16e   :  { %v585_v3 = vld [vmem:[#allocation7 + $0xda8] sm:$0xff] }
 0x16f   :  { %3884 = vmatpush1.bf16.msra.mxu0 %v6993_v36  ;;  %v565_v36 = vld [vmem:[#allocation7 + $0xd08] sm:$0xff] }
 0x170   :  { %3847 = vmatpush1.bf16.msra.mxu1 %v6881_v34  ;;  %3885 = vmatprep.subr.bf16.mxu0 %v7002_v41  ;;  %v457_v34 = vld [vmem:[#allocation7 + $0x9a8] sm:$0xff]  ;;  %v7177_v62 = vcombine.low %v565_v36, %v569_v38 }
 0x171   :  { %3898 = vmatprep.subr.bf16.mxu1 %v7018_v42  ;;  %v7066_v41 = vcombine.high %v453_v28, %v457_v34  ;;  %v7178_v42 = vcombine.high %v565_v36, %v569_v38  ;;  %v477_v8 = vld [vmem:[#allocation7 + $0xa48] sm:$0xff] }
 0x172   :  { %v593_v12 = vld [vmem:[#allocation7 + $0xde8] sm:$0xff] }
 0x173   :  { %3849 = vmatmul.mubr.bf16.vlgmr.msra.gmra.mrb[16].mxu1 %v8569_v46  ;;  %3886 = vmatpush1.bf16.msra.mxu0 %v7001_v45  ;;  %v485_v19 = vld [vmem:[#allocation7 + $0xa88] sm:$0xff] }
 0x174   :  { %3899 = vmatpush1.bf16.msra.mxu1 %v7017_v47  ;;  %3887 = vmatprep.subr.bf16.mxu0 %v7010_v50  ;;  %v609_v36 = vld [vmem:[#allocation7 + $0xe68] sm:$0xff] }
 0x175   :  { %3900 = vmatprep.subr.bf16.mxu1 %v7026_v51  ;;  %3930 = vmatprep.mubr.bf16.mxu1 %v8572_v56 }
 0x177   :  { %3888 = vmatpush1.bf16.msra.mxu0 %v7009_v54 }
 0x178   :  { %3901 = vmatpush1.bf16.msra.mxu1 %v7025_v55  ;;  %3939 = vmatprep.subr.bf16.mxu0 %v7146_v60  ;;  %v7065_v55 = vcombine.low %v453_v28, %v457_v34  ;;  %v7186_v60 = vcombine.high %v573_v48, %v577_v49  ;;  %v605_v34 = vld [vmem:[#allocation7 + $0xe48] sm:$0xff] }
 0x179   :  { %3902 = vmatprep.subr.bf16.mxu1 %v7034_v59  ;;  %v7074_v59 = vcombine.high %v461_v44, %v465_v52  ;;  %v505_v44 = vld [vmem:[#allocation7 + $0xb28] sm:$0xff] }
 0x17a   :  { %3890 = vmatmul.mubr.bf16.vlgmr.msra.gmra.mrb[20].mxu0 %v8576_v31  ;;  %v613_v52 = vld [vmem:[#allocation7 + $0xe88] sm:$0xff] }
 0x17b   :  { %3940 = vmatpush1.bf16.msra.mxu0 %v7145_v1  ;;  %3971 = vmatprep.mubr.bf16.mxu0 %v8580_v2  ;;  %v581_v1 = vld [vmem:[#allocation7 + $0xd88] sm:$0xff] }
 0x17c   :  { %3903 = vmatpush1.bf16.msra.mxu1 %v7033_v63  ;;  %3941 = vmatprep.subr.bf16.mxu0 %v7154_v7  ;;  %v473_v63 = vld [vmem:[#allocation7 + $0xa28] sm:$0xff]  ;;  %v7194_v7 = vcombine.high %v581_v1, %v585_v3  ;;  %v7193_v14 = vcombine.low %v581_v1, %v585_v3 }
 0x17d   :  { %3904 = vmatprep.subr.bf16.mxu1 %v7042_v6  ;;  %v8605_v20 = vpop.f32.mrb[0].mxu0  ;;  %v7082_v6 = vcombine.high %v469_v61, %v473_v63  ;;  %v7081_v13 = vcombine.low %v469_v61, %v473_v63  ;;  %v617_v48 = vld [vmem:[#allocation7 + $0xea8] sm:$0xff] }
 0x17e   :  { %v8607_v21 = vpop.f32.mrb[0].mxu1  ;;  %v8610_v22 = vpop.f32.mrb[1].mxu0  ;;  %v7225_v61 = vcombine.low %v613_v52, %v617_v48  ;;  %v517_v3 = vld [vmem:[#allocation7 + $0xb88] sm:$0xff] }
 0x17f   :  { %v8612_v23 = vpop.f32.mrb[1].mxu1  ;;  %3942 = vmatpush1.bf16.msra.mxu0 %v7153_v11  ;;  %v763_v24 = vpop.f32.mrb[2].mxu0  ;;  %v589_v11 = vld [vmem:[#allocation7 + $0xdc8] sm:$0xff] }
 0x180   :  { %3905 = vmatpush1.bf16.msra.mxu1 %v7041_v10  ;;  %v804_v25 = vpop.f32.mrb[2].mxu1  ;;  %v764_v29 = vpop.f32.mrb[3].mxu0  ;;  %3943 = vmatprep.subr.bf16.mxu0 %v7162_v18  ;;  %v481_v10 = vld [vmem:[#allocation7 + $0xa68] sm:$0xff]  ;;  %v7202_v18 = vcombine.high %v589_v11, %v593_v12  ;;  %v7201_v28 = vcombine.low %v589_v11, %v593_v12 }
 0x181   :  { %v805_v30 = vpop.f32.mrb[3].mxu1  ;;  %3906 = vmatprep.subr.bf16.mxu1 %v7050_v17  ;;  %v7090_v17 = vcombine.high %v477_v8, %v481_v10  ;;  %v489_v24 = vld [vmem:[#allocation7 + $0xaa8] sm:$0xff] }
 0x182   :  { %v597_v25 = vld [vmem:[#allocation7 + $0xe08] sm:$0xff]  ;;  %v7098_v29 = vcombine.high %v485_v19, %v489_v24  ;;  %v7097_v38 = vcombine.low %v485_v19, %v489_v24 }
 0x183   :  { %3944 = vmatpush1.bf16.msra.mxu0 %v7161_v27  ;;  %v7089_v27 = vcombine.low %v477_v8, %v481_v10  ;;  %v525_v12 = vld [vmem:[#allocation7 + $0xbc8] sm:$0xff] }
 0x184   :  { %3907 = vmatpush1.bf16.msra.mxu1 %v7049_v26  ;;  %3945 = vmatprep.subr.bf16.mxu0 %v7170_v33  ;;  %v601_v26 = vld [vmem:[#allocation7 + $0xe28] sm:$0xff] }
 0x185   :  { %3908 = vmatprep.subr.bf16.mxu1 %v7058_v32  ;;  %v8614_v45 = vpop.f32.mrb[4].mxu0  ;;  %v7210_v30 = vcombine.high %v597_v25, %v601_v26  ;;  %v493_v32 = vld [vmem:[#allocation7 + $0xac8] sm:$0xff] }
 0x186   :  { %v8616_v47 = vpop.f32.mrb[4].mxu1  ;;  %v8618_v50 = vpop.f32.mrb[5].mxu0  ;;  %v497_v33 = vld [vmem:[#allocation7 + $0xae8] sm:$0xff] }
 0x187   :  { %v8620_v51 = vpop.f32.mrb[5].mxu1  ;;  %3946 = vmatpush1.bf16.msra.mxu0 %v7169_v40  ;;  %v845_v53 = vpop.f32.mrb[6].mxu0  ;;  %v7106_v40 = vcombine.high %v493_v32, %v497_v33  ;;  %v7105_v49 = vcombine.low %v493_v32, %v497_v33 }
 0x188   :  { %3909 = vmatpush1.bf16.msra.mxu1 %v7057_v39  ;;  %v886_v54 = vpop.f32.mrb[6].mxu1  ;;  %v846_v57 = vpop.f32.mrb[7].mxu0  ;;  %3947 = vmatprep.subr.bf16.mxu0 %v7178_v42  ;;  %v7209_v39 = vcombine.low %v597_v25, %v601_v26  ;;  %v501_v42 = vld [vmem:[#allocation7 + $0xb08] sm:$0xff]  ;;  %v7217_v53 = vcombine.low %v605_v34, %v609_v36 }
 0x189   :  { %v887_v58 = vpop.f32.mrb[7].mxu1  ;;  %3910 = vmatprep.subr.bf16.mxu1 %v7066_v41  ;;  %v7218_v41 = vcombine.high %v605_v34, %v609_v36  ;;  %v7114_v54 = vcombine.high %v501_v42, %v505_v44  ;;  %v513_v57 = vld [vmem:[#allocation7 + $0xb68] sm:$0xff] }
 0x18a   :  { %v621_v58 = vld [vmem:[#allocation7 + $0xec8] sm:$0xff] }
 0x18b   :  { %3948 = vmatpush1.bf16.msra.mxu0 %v7177_v62  ;;  %v509_v62 = vld [vmem:[#allocation7 + $0xb48] sm:$0xff] }
 0x18c   :  { %3911 = vmatpush1.bf16.msra.mxu1 %v7065_v55  ;;  %3949 = vmatprep.subr.bf16.mxu0 %v7186_v60  ;;  %v7226_v55 = vcombine.high %v613_v52, %v617_v48  ;;  %v7113_v60 = vcombine.low %v501_v42, %v505_v44  ;;  %v7122_v63 = vcombine.high %v509_v62, %v513_v57  ;;  %v645_v26 = vld [vmem:[#allocation7 + $0xf88] sm:$0xff]  ;;  %v150_v48 = vld [vmem:[#allocation7 + $0x10] sm:$0xff] }
 0x18d   :  { %3912 = vmatprep.subr.bf16.mxu1 %v7074_v59  ;;  %v625_v59 = vld [vmem:[#allocation7 + $0xee8] sm:$0xff] }
 0x18e   :  { %v7234_v1 = vcombine.high %v621_v58, %v625_v59  ;;  %v7233_v8 = vcombine.low %v621_v58, %v625_v59  ;;  %v653_v36 = vld [vmem:[#allocation7 + $0xfc8] sm:$0xff]  ;;  %v158_v59 = vld [vmem:[#allocation7 + $0x50] sm:$0xff] }
 0x18f   :  { %3950 = vmatpush1.bf16.msra.mxu0 %v7185_v5  ;;  %v629_v5 = vld [vmem:[#allocation7 + $0xf08] sm:$0xff] }
 0x190   :  { %3913 = vmatpush1.bf16.msra.mxu1 %v7073_v4  ;;  %3951 = vmatprep.subr.bf16.mxu0 %v7194_v7  ;;  %v521_v4 = vld [vmem:[#allocation7 + $0xba8] sm:$0xff]  ;;  %v7121_v7 = vcombine.low %v509_v62, %v513_v57 }
 0x191   :  { %3914 = vmatprep.subr.bf16.mxu1 %v7082_v6  ;;  %v633_v6 = vld [vmem:[#allocation7 + $0xf28] sm:$0xff]  ;;  %v7130_v10 = vcombine.high %v517_v3, %v521_v4 }
 0x192   :  { %v7242_v11 = vcombine.high %v629_v5, %v633_v6  ;;  %v7241_v19 = vcombine.low %v629_v5, %v633_v6  ;;  %v166_v6 = vld [vmem:[#allocation7 + $0x90] sm:$0xff] }
 0x193   :  { %3952 = vmatpush1.bf16.msra.mxu0 %v7193_v14  ;;  %v637_v14 = vld [vmem:[#allocation7 + $0xf48] sm:$0xff] }
 0x194   :  { %3915 = vmatpush1.bf16.msra.mxu1 %v7081_v13  ;;  %3953 = vmatprep.subr.bf16.mxu0 %v7202_v18  ;;  %v529_v13 = vld [vmem:[#allocation7 + $0xbe8] sm:$0xff]  ;;  %v7129_v18 = vcombine.low %v517_v3, %v521_v4 }
 0x195   :  { %3916 = vmatprep.subr.bf16.mxu1 %v7090_v17  ;;  %v641_v17 = vld [vmem:[#allocation7 + $0xf68] sm:$0xff]  ;;  %v7138_v24 = vcombine.high %v525_v12, %v529_v13 }
 0x196   :  { %v7250_v25 = vcombine.high %v637_v14, %v641_v17  ;;  %v7249_v32 = vcombine.low %v637_v14, %v641_v17  ;;  %v174_v17 = vld [vmem:[#allocation7 + $0xd0] sm:$0xff] }
 0x197   :  { %3954 = vmatpush1.bf16.msra.mxu0 %v7201_v28  ;;  %v661_v28 = vld [vmem:[#allocation7 + $0x1008] sm:$0xff] }
 0x198   :  { %3917 = vmatpush1.bf16.msra.mxu1 %v7089_v27  ;;  %3955 = vmatprep.subr.bf16.mxu0 %v7210_v30  ;;  %v649_v27 = vld [vmem:[#allocation7 + $0xfa8] sm:$0xff]  ;;  %v7137_v30 = vcombine.low %v525_v12, %v529_v13 }
 0x199   :  { %3918 = vmatprep.subr.bf16.mxu1 %v7098_v29  ;;  %v665_v29 = vld [vmem:[#allocation7 + $0x1028] sm:$0xff]  ;;  %v7258_v33 = vcombine.high %v645_v26, %v649_v27 }
 0x19a   :  { %v7274_v34 = vcombine.high %v661_v28, %v665_v29 }
 0x19b   :  { %3956 = vmatpush1.bf16.msra.mxu0 %v7209_v39  ;;  %v669_v39 = vld [vmem:[#allocation7 + $0x1048] sm:$0x11] }
 0x19c   :  { %3919 = vmatpush1.bf16.msra.mxu1 %v7097_v38  ;;  %3957 = vmatprep.subr.bf16.mxu0 %v7218_v41  ;;  %v657_v38 = vld [vmem:[#allocation7 + $0xfe8] sm:$0xff]  ;;  %v7273_v41 = vcombine.low %v661_v28, %v665_v29  ;;  %v7282_v44 = vcombine.high %v669_v39, %v669_v39  ;;  %v7281_v52 = vcombine.low %v669_v39, %v669_v39  ;;  %v182_v29 = vld [vmem:[#allocation7 + $0x110] sm:$0xff] }
 0x19d   :  { %3920 = vmatprep.subr.bf16.mxu1 %v7106_v40  ;;  %v7257_v40 = vcombine.low %v645_v26, %v649_v27  ;;  %v7266_v42 = vcombine.high %v653_v36, %v657_v38 }
 0x19e   :  { %v3594_v62 = vsel %vm3586_vm2, %v7281_v52, 0  ;;  %v318_v52 = vld [vmem:[#allocation7 + $0x550] sm:$0xff] }
 0x19f   :  { %3958 = vmatpush1.bf16.msra.mxu0 %v7217_v53  ;;  %v278_v53 = vld [vmem:[#allocation7 + $0x410] sm:$0xff] }
 0x1a0   :  { %3921 = vmatpush1.bf16.msra.mxu1 %v7105_v49  ;;  %3959 = vmatprep.subr.bf16.mxu0 %v7226_v55  ;;  %v154_v49 = vld [vmem:[#allocation7 + $0x30] sm:$0xff]  ;;  %v7265_v55 = vcombine.low %v653_v36, %v657_v38 }
 0x1a1   :  { %3922 = vmatprep.subr.bf16.mxu1 %v7114_v54  ;;  %v282_v54 = vld [vmem:[#allocation7 + $0x430] sm:$0xff]  ;;  %v6764_v57 = vcombine.high %v150_v48, %v154_v49 }
 0x1a2   :  { %v6892_v58 = vcombine.high %v278_v53, %v282_v54  ;;  %v6891_v3 = vcombine.low %v278_v53, %v282_v54 }
 0x1a3   :  { %3960 = vmatpush1.bf16.msra.mxu0 %v7225_v61  ;;  %v286_v61 = vld [vmem:[#allocation7 + $0x450] sm:$0xff] }
 0x1a4   :  { %3923 = vmatpush1.bf16.msra.mxu1 %v7113_v60  ;;  %3961 = vmatprep.subr.bf16.mxu0 %v7234_v1  ;;  %v162_v60 = vld [vmem:[#allocation7 + $0x70] sm:$0xff]  ;;  %v6763_v1 = vcombine.low %v150_v48, %v154_v49 }
 0x1a5   :  { %3924 = vmatprep.subr.bf16.mxu1 %v7122_v63  ;;  %v290_v63 = vld [vmem:[#allocation7 + $0x470] sm:$0xff]  ;;  %v6772_v4 = vcombine.high %v158_v59, %v162_v60 }
 0x1a6   :  { %v6900_v5 = vcombine.high %v286_v61, %v290_v63  ;;  %v6899_v12 = vcombine.low %v286_v61, %v290_v63  ;;  %v322_v48 = vld [vmem:[#allocation7 + $0x570] sm:$0xff] }
 0x1a7   :  { %3962 = vmatpush1.bf16.msra.mxu0 %v7233_v8  ;;  %v294_v8 = vld [vmem:[#allocation7 + $0x490] sm:$0xff] }
 0x1a8   :  { %3925 = vmatpush1.bf16.msra.mxu1 %v7121_v7  ;;  %3963 = vmatprep.subr.bf16.mxu0 %v7242_v11  ;;  %v170_v7 = vld [vmem:[#allocation7 + $0xb0] sm:$0xff]  ;;  %v6771_v11 = vcombine.low %v158_v59, %v162_v60 }
 0x1a9   :  { %3926 = vmatprep.subr.bf16.mxu1 %v7130_v10  ;;  %v298_v10 = vld [vmem:[#allocation7 + $0x4b0] sm:$0xff]  ;;  %v6780_v13 = vcombine.high %v166_v6, %v170_v7 }
 0x1aa   :  { %v6908_v14 = vcombine.high %v294_v8, %v298_v10  ;;  %v6907_v26 = vcombine.low %v294_v8, %v298_v10  ;;  %v6931_v8 = vcombine.low %v318_v52, %v322_v48 }
 0x1ab   :  { %3964 = vmatpush1.bf16.msra.mxu0 %v7241_v19  ;;  %v302_v19 = vld [vmem:[#allocation7 + $0x4d0] sm:$0xff] }
 0x1ac   :  { %3927 = vmatpush1.bf16.msra.mxu1 %v7129_v18  ;;  %3965 = vmatprep.subr.bf16.mxu0 %v7250_v25  ;;  %v178_v18 = vld [vmem:[#allocation7 + $0xf0] sm:$0xff]  ;;  %v6779_v25 = vcombine.low %v166_v6, %v170_v7 }
 0x1ad   :  { %3928 = vmatprep.subr.bf16.mxu1 %v7138_v24  ;;  %v306_v24 = vld [vmem:[#allocation7 + $0x4f0] sm:$0xff]  ;;  %v6788_v27 = vcombine.high %v174_v17, %v178_v18 }
 0x1ae   :  { %v6916_v28 = vcombine.high %v302_v19, %v306_v24  ;;  %v6915_v36 = vcombine.low %v302_v19, %v306_v24  ;;  %v326_v6 = vld [vmem:[#allocation7 + $0x590] sm:$0xff] }
 0x1af   :  { %3966 = vmatpush1.bf16.msra.mxu0 %v7249_v32  ;;  %v310_v32 = vld [vmem:[#allocation7 + $0x510] sm:$0xff] }
 0x1b0   :  { %3929 = vmatpush1.bf16.msra.mxu1 %v7137_v30  ;;  %3967 = vmatprep.subr.bf16.mxu0 %v7258_v33  ;;  %v186_v30 = vld [vmem:[#allocation7 + $0x130] sm:$0xff] }
 0x1b1   :  { %3980 = vmatprep.subr.bf16.mxu1 %v7274_v34  ;;  %v314_v33 = vld [vmem:[#allocation7 + $0x530] sm:$0xff]  ;;  %v6787_v34 = vcombine.low %v174_v17, %v178_v18  ;;  %v6796_v38 = vcombine.high %v182_v29, %v186_v30 }
 0x1b2   :  { %v6924_v39 = vcombine.high %v310_v32, %v314_v33  ;;  %v6923_v59 = vcombine.low %v310_v32, %v314_v33  ;;  %v338_v17 = vld [vmem:[#allocation7 + $0x5f0] sm:$0xff] }
 0x1b3   :  { %3931 = vmatmul.mubr.bf16.vlgmr.msra.gmra.mrb[20].mxu1 %v8563_v35  ;;  %3968 = vmatpush1.bf16.msra.mxu0 %v7257_v40  ;;  %v190_v40 = vld [vmem:[#allocation7 + $0x150] sm:$0xff] }
 0x1b4   :  { %3981 = vmatpush1.bf16.msra.mxu1 %v7273_v41  ;;  %3969 = vmatprep.subr.bf16.mxu0 %v7266_v42 }
 0x1b5   :  { %7289 = vmatprep.subr.msk.bf16.mxu1 %vm3586_vm2, %v7282_v44  ;;  %4012 = vmatprep.mubr.bf16.mxu1 %v8355_v0  ;;  %v194_v44 = vld [vmem:[#allocation7 + $0x170] sm:$0xff] }
 0x1b6   :  { %v6803_v7 = vcombine.low %v190_v40, %v194_v44 }
 0x1b7   :  { %3970 = vmatpush1.bf16.msra.mxu0 %v7265_v55 }
 0x1b8   :  { %3983 = vmatpush1.bf16.msra.mxu1 %v3594_v62  ;;  %4021 = vmatprep.subr.bf16.mxu0 %v6764_v57 }
 0x1b9   :  { %4062 = vmatprep.subr.bf16.mxu1 %v6892_v58  ;;  %v6795_v58 = vcombine.low %v182_v29, %v186_v30  ;;  %v346_v29 = vld [vmem:[#allocation7 + $0x630] sm:$0xff] }
 0x1ba   :  { %3972 = vmatmul.mubr.bf16.vlgmr.msra.gmra.mrb[24].mxu0 %v8588_v15 }
 0x1bb   :  { %7290 = vmatmul.mubr.msk.bf16.vlgmr.msra.gmra.mrb[24].mxu1 %vm3582_vm3, %v8597_v37  ;;  %4022 = vmatpush1.bf16.msra.mxu0 %v6763_v1  ;;  %v6804_v1 = vcombine.high %v190_v40, %v194_v44  ;;  %v354_v40 = vld [vmem:[#allocation7 + $0x670] sm:$0xff] }
 0x1bc   :  { %4063 = vmatpush1.bf16.msra.mxu1 %v6891_v3  ;;  %4023 = vmatprep.subr.bf16.mxu0 %v6772_v4  ;;  %v6932_v3 = vcombine.high %v318_v52, %v322_v48  ;;  %v198_v4 = vld [vmem:[#allocation7 + $0x190] sm:$0xff] }
 0x1bd   :  { %4064 = vmatprep.subr.bf16.mxu1 %v6900_v5  ;;  %4053 = vmatprep.mubr.bf16.mxu0 %v8550_v9  ;;  %v202_v5 = vld [vmem:[#allocation7 + $0x1b0] sm:$0xff] }
 0x1be   :  { %4094 = vmatprep.mubr.bf16.mxu1 %v8555_v16  ;;  %v6812_v10 = vcombine.high %v198_v4, %v202_v5  ;;  %v6811_v18 = vcombine.low %v198_v4, %v202_v5  ;;  %v230_v48 = vld [vmem:[#allocation7 + $0x290] sm:$0xff] }
 0x1bf   :  { %4024 = vmatpush1.bf16.msra.mxu0 %v6771_v11 }
 0x1c0   :  { %4065 = vmatpush1.bf16.msra.mxu1 %v6899_v12  ;;  %4025 = vmatprep.subr.bf16.mxu0 %v6780_v13  ;;  %v206_v12 = vld [vmem:[#allocation7 + $0x1d0] sm:$0xff] }
 0x1c1   :  { %4066 = vmatprep.subr.bf16.mxu1 %v6908_v14  ;;  %v210_v13 = vld [vmem:[#allocation7 + $0x1f0] sm:$0xff] }
 0x1c2   :  { %v334_v14 = vld [vmem:[#allocation7 + $0x5d0] sm:$0xff]  ;;  %v6820_v24 = vcombine.high %v206_v12, %v210_v13  ;;  %v6819_v30 = vcombine.low %v206_v12, %v210_v13 }
 0x1c3   :  { %4026 = vmatpush1.bf16.msra.mxu0 %v6779_v25  ;;  %v6948_v25 = vcombine.high %v334_v14, %v338_v17  ;;  %v6947_v32 = vcombine.low %v334_v14, %v338_v17  ;;  %v254_v17 = vld [vmem:[#allocation7 + $0x350] sm:$0xff] }
 0x1c4   :  { %4067 = vmatpush1.bf16.msra.mxu1 %v6907_v26  ;;  %4027 = vmatprep.subr.bf16.mxu0 %v6788_v27  ;;  %v214_v26 = vld [vmem:[#allocation7 + $0x210] sm:$0xff] }
 0x1c5   :  { %4068 = vmatprep.subr.bf16.mxu1 %v6916_v28  ;;  %v3645_v41 = vpop.f32.mrb[8].mxu0  ;;  %v218_v27 = vld [vmem:[#allocation7 + $0x230] sm:$0xff] }
 0x1c6   :  { %v3686_v42 = vpop.f32.mrb[8].mxu1  ;;  %v3646_v49 = vadd.f32 %v3645_v41, %v8605_v20  ;;  %v3647_v53 = vpop.f32.mrb[9].mxu0  ;;  %v342_v28 = vld [vmem:[#allocation7 + $0x610] sm:$0xff]  ;;  %v6828_v33 = vcombine.high %v214_v26, %v218_v27  ;;  %v6827_v41 = vcombine.low %v214_v26, %v218_v27 }
 0x1c7   :  { %v3688_v54 = vpop.f32.mrb[9].mxu1  ;;  %v3648_v55 = vadd.f32 %v3647_v53, %v8610_v22  ;;  %v3649_v62 = vpop.f32.mrb[10].mxu0  ;;  %4028 = vmatpush1.bf16.msra.mxu0 %v6787_v34  ;;  %v330_v22 = vld [vmem:[#allocation7 + $0x5b0] sm:$0xff]  ;;  %v6956_v34 = vcombine.high %v342_v28, %v346_v29 }
 0x1c8   :  { %4069 = vmatpush1.bf16.msra.mxu1 %v6915_v36  ;;  %v3690_v57 = vpop.f32.mrb[10].mxu1  ;;  %v8633_v60 = vadd.f32 %v3686_v42, %v3646_v49  ;;  %v3650_v61 = vpop.f32.mrb[11].mxu0  ;;  %4029 = vmatprep.subr.bf16.mxu0 %v6796_v38  ;;  %v6940_v11 = vcombine.high %v326_v6, %v330_v22  ;;  %v6939_v19 = vcombine.low %v326_v6, %v330_v22  ;;  %v222_v36 = vld [vmem:[#allocation7 + $0x250] sm:$0xff] }
 0x1c9   :  { %v3691_v63 = vpop.f32.mrb[11].mxu1  ;;  %4070 = vmatprep.subr.bf16.mxu1 %v6924_v39  ;;  %v8635_v20 = vadd.f32 %v3688_v54, %v3648_v55  ;;  %v226_v38 = vld [vmem:[#allocation7 + $0x270] sm:$0xff]  ;;  %v6955_v42 = vcombine.low %v342_v28, %v346_v29 }
 0x1ca   :  { %v350_v39 = vld [vmem:[#allocation7 + $0x650] sm:$0xff]  ;;  %v6836_v44 = vcombine.high %v222_v36, %v226_v38  ;;  %v6835_v55 = vcombine.low %v222_v36, %v226_v38 }
 0x1cb   :  { %4030 = vmatpush1.bf16.msra.mxu0 %v6795_v58  ;;  %v6964_v52 = vcombine.high %v350_v39, %v354_v40  ;;  %v234_v49 = vld [vmem:[#allocation7 + $0x2b0] sm:$0xff]  ;;  %v6963_v62 = vcombine.low %v350_v39, %v354_v40 }
 0x1cc   :  { %4071 = vmatpush1.bf16.msra.mxu1 %v6923_v59  ;;  %4031 = vmatprep.subr.bf16.mxu0 %v6804_v1  ;;  %v358_v53 = vld [vmem:[#allocation7 + $0x690] sm:$0xff]  ;;  %v6844_v57 = vcombine.high %v230_v48, %v234_v49 }
 0x1cd   :  { %4072 = vmatprep.subr.bf16.mxu1 %v6932_v3  ;;  %v362_v54 = vld [vmem:[#allocation7 + $0x6b0] sm:$0xff]  ;;  %v6843_v3 = vcombine.low %v230_v48, %v234_v49 }
 0x1ce   :  { %v6972_v58 = vcombine.high %v358_v53, %v362_v54  ;;  %v238_v59 = vld [vmem:[#allocation7 + $0x2d0] sm:$0xff]  ;;  %v6971_v4 = vcombine.low %v358_v53, %v362_v54 }
 0x1cf   :  { %4032 = vmatpush1.bf16.msra.mxu0 %v6803_v7  ;;  %v242_v61 = vld [vmem:[#allocation7 + $0x2f0] sm:$0xff] }
 0x1d0   :  { %4073 = vmatpush1.bf16.msra.mxu1 %v6931_v8  ;;  %4033 = vmatprep.subr.bf16.mxu0 %v6812_v10  ;;  %v366_v63 = vld [vmem:[#allocation7 + $0x6d0] sm:$0xff]  ;;  %v6852_v5 = vcombine.high %v238_v59, %v242_v61 }
 0x1d1   :  { %4074 = vmatprep.subr.bf16.mxu1 %v6940_v11  ;;  %v370_v1 = vld [vmem:[#allocation7 + $0x6f0] sm:$0xff]  ;;  %v6851_v11 = vcombine.low %v238_v59, %v242_v61 }
 0x1d2   :  { %v6980_v6 = vcombine.high %v366_v63, %v370_v1  ;;  %v246_v22 = vld [vmem:[#allocation7 + $0x310] sm:$0xff]  ;;  %v6979_v12 = vcombine.low %v366_v63, %v370_v1 }
 0x1d3   :  { %4034 = vmatpush1.bf16.msra.mxu0 %v6811_v18  ;;  %v250_v7 = vld [vmem:[#allocation7 + $0x330] sm:$0xff] }
 0x1d4   :  { %4075 = vmatpush1.bf16.msra.mxu1 %v6939_v19  ;;  %4035 = vmatprep.subr.bf16.mxu0 %v6820_v24  ;;  %v374_v8 = vld [vmem:[#allocation7 + $0x710] sm:$0xff]  ;;  %v6860_v13 = vcombine.high %v246_v22, %v250_v7 }
 0x1d5   :  { %4076 = vmatprep.subr.bf16.mxu1 %v6948_v25  ;;  %v378_v10 = vld [vmem:[#allocation7 + $0x730] sm:$0xff]  ;;  %v6859_v25 = vcombine.low %v246_v22, %v250_v7 }
 0x1d6   :  { %v6988_v14 = vcombine.high %v374_v8, %v378_v10  ;;  %v258_v18 = vld [vmem:[#allocation7 + $0x370] sm:$0xff]  ;;  %v6987_v26 = vcombine.low %v374_v8, %v378_v10 }
 0x1d7   :  { %4036 = vmatpush1.bf16.msra.mxu0 %v6819_v30  ;;  %v382_v19 = vld [vmem:[#allocation7 + $0x750] sm:$0xff]  ;;  %v6868_v27 = vcombine.high %v254_v17, %v258_v18 }
 0x1d8   :  { %4077 = vmatpush1.bf16.msra.mxu1 %v6947_v32  ;;  %4037 = vmatprep.subr.bf16.mxu0 %v6828_v33  ;;  %v386_v24 = vld [vmem:[#allocation7 + $0x770] sm:$0xff] }
 0x1d9   :  { %4078 = vmatprep.subr.bf16.mxu1 %v6956_v34  ;;  %v6996_v28 = vcombine.high %v382_v19, %v386_v24  ;;  %v262_v29 = vld [vmem:[#allocation7 + $0x390] sm:$0xff]  ;;  %v6867_v34 = vcombine.low %v254_v17, %v258_v18  ;;  %v6995_v36 = vcombine.low %v382_v19, %v386_v24 }
 0x1da   :  { %v266_v30 = vld [vmem:[#allocation7 + $0x3b0] sm:$0xff] }
 0x1db   :  { %4038 = vmatpush1.bf16.msra.mxu0 %v6827_v41  ;;  %v390_v32 = vld [vmem:[#allocation7 + $0x790] sm:$0xff]  ;;  %v6876_v38 = vcombine.high %v262_v29, %v266_v30 }
 0x1dc   :  { %4079 = vmatpush1.bf16.msra.mxu1 %v6955_v42  ;;  %4039 = vmatprep.subr.bf16.mxu0 %v6836_v44  ;;  %v394_v33 = vld [vmem:[#allocation7 + $0x7b0] sm:$0xff] }
 0x1dd   :  { %4080 = vmatprep.subr.bf16.mxu1 %v6964_v52  ;;  %v7004_v39 = vcombine.high %v390_v32, %v394_v33  ;;  %v270_v40 = vld [vmem:[#allocation7 + $0x3d0] sm:$0xff]  ;;  %v6875_v52 = vcombine.low %v262_v29, %v266_v30  ;;  %v7003_v48 = vcombine.low %v390_v32, %v394_v33 }
 0x1de   :  { %v274_v41 = vld [vmem:[#allocation7 + $0x3f0] sm:$0xff] }
 0x1df   :  { %4040 = vmatpush1.bf16.msra.mxu0 %v6835_v55  ;;  %v398_v42 = vld [vmem:[#allocation7 + $0x7d0] sm:$0xff]  ;;  %v6884_v49 = vcombine.high %v270_v40, %v274_v41 }
 0x1e0   :  { %4081 = vmatpush1.bf16.msra.mxu1 %v6963_v62  ;;  %4041 = vmatprep.subr.bf16.mxu0 %v6844_v57  ;;  %v402_v44 = vld [vmem:[#allocation7 + $0x7f0] sm:$0xff] }
 0x1e1   :  { %4082 = vmatprep.subr.bf16.mxu1 %v6972_v58  ;;  %v7012_v53 = vcombine.high %v398_v42, %v402_v44  ;;  %v406_v54 = vld [vmem:[#allocation7 + $0x810] sm:$0xff]  ;;  %v6883_v58 = vcombine.low %v270_v40, %v274_v41  ;;  %v7011_v59 = vcombine.low %v398_v42, %v402_v44 }
 0x1e2   :  { %v410_v55 = vld [vmem:[#allocation7 + $0x830] sm:$0xff] }
 0x1e3   :  { %4042 = vmatpush1.bf16.msra.mxu0 %v6843_v3  ;;  %v534_v62 = vld [vmem:[#allocation7 + $0xc10] sm:$0xff]  ;;  %v7020_v61 = vcombine.high %v406_v54, %v410_v55 }
 0x1e4   :  { %4083 = vmatpush1.bf16.msra.mxu1 %v6971_v4  ;;  %4043 = vmatprep.subr.bf16.mxu0 %v6852_v5  ;;  %v538_v57 = vld [vmem:[#allocation7 + $0xc30] sm:$0xff] }
 0x1e5   :  { %4084 = vmatprep.subr.bf16.mxu1 %v6980_v6  ;;  %v7148_v63 = vcombine.high %v534_v62, %v538_v57  ;;  %v414_v1 = vld [vmem:[#allocation7 + $0x850] sm:$0xff]  ;;  %v7019_v6 = vcombine.low %v406_v54, %v410_v55  ;;  %v7147_v22 = vcombine.low %v534_v62, %v538_v57 }
 0x1e6   :  { %v418_v3 = vld [vmem:[#allocation7 + $0x870] sm:$0xff] }
 0x1e7   :  { %4044 = vmatpush1.bf16.msra.mxu0 %v6851_v11  ;;  %v542_v4 = vld [vmem:[#allocation7 + $0xc50] sm:$0xff]  ;;  %v7028_v7 = vcombine.high %v414_v1, %v418_v3 }
 0x1e8   :  { %4085 = vmatpush1.bf16.msra.mxu1 %v6979_v12  ;;  %4045 = vmatprep.subr.bf16.mxu0 %v6860_v13  ;;  %v546_v5 = vld [vmem:[#allocation7 + $0xc70] sm:$0xff] }
 0x1e9   :  { %4086 = vmatprep.subr.bf16.mxu1 %v6988_v14  ;;  %v7156_v8 = vcombine.high %v542_v4, %v546_v5  ;;  %v422_v10 = vld [vmem:[#allocation7 + $0x890] sm:$0xff]  ;;  %v7027_v14 = vcombine.low %v414_v1, %v418_v3  ;;  %v7155_v17 = vcombine.low %v542_v4, %v546_v5 }
 0x1ea   :  { %v426_v11 = vld [vmem:[#allocation7 + $0x8b0] sm:$0xff] }
 0x1eb   :  { %4046 = vmatpush1.bf16.msra.mxu0 %v6859_v25  ;;  %v550_v12 = vld [vmem:[#allocation7 + $0xc90] sm:$0xff]  ;;  %v7036_v18 = vcombine.high %v422_v10, %v426_v11 }
 0x1ec   :  { %4087 = vmatpush1.bf16.msra.mxu1 %v6987_v26  ;;  %4047 = vmatprep.subr.bf16.mxu0 %v6868_v27  ;;  %v554_v13 = vld [vmem:[#allocation7 + $0xcb0] sm:$0xff] }
 0x1ed   :  { %4088 = vmatprep.subr.bf16.mxu1 %v6996_v28  ;;  %v7164_v19 = vcombine.high %v550_v12, %v554_v13  ;;  %v430_v24 = vld [vmem:[#allocation7 + $0x8d0] sm:$0xff]  ;;  %v7035_v28 = vcombine.low %v422_v10, %v426_v11  ;;  %v7163_v29 = vcombine.low %v550_v12, %v554_v13 }
 0x1ee   :  { %v434_v25 = vld [vmem:[#allocation7 + $0x8f0] sm:$0xff] }
 0x1ef   :  { %4048 = vmatpush1.bf16.msra.mxu0 %v6867_v34  ;;  %v558_v26 = vld [vmem:[#allocation7 + $0xcd0] sm:$0xff]  ;;  %v7044_v30 = vcombine.high %v430_v24, %v434_v25 }
 0x1f0   :  { %4089 = vmatpush1.bf16.msra.mxu1 %v6995_v36  ;;  %4049 = vmatprep.subr.bf16.mxu0 %v6876_v38  ;;  %v562_v27 = vld [vmem:[#allocation7 + $0xcf0] sm:$0xff] }
 0x1f1   :  { %4090 = vmatprep.subr.bf16.mxu1 %v7004_v39  ;;  %v7172_v32 = vcombine.high %v558_v26, %v562_v27  ;;  %v438_v33 = vld [vmem:[#allocation7 + $0x910] sm:$0xff]  ;;  %v7043_v39 = vcombine.low %v430_v24, %v434_v25  ;;  %v7171_v40 = vcombine.low %v558_v26, %v562_v27 }
 0x1f2   :  { %v442_v34 = vld [vmem:[#allocation7 + $0x930] sm:$0xff] }
 0x1f3   :  { %4050 = vmatpush1.bf16.msra.mxu0 %v6875_v52  ;;  %v566_v36 = vld [vmem:[#allocation7 + $0xd10] sm:$0xff]  ;;  %v7052_v41 = vcombine.high %v438_v33, %v442_v34 }
 0x1f4   :  { %4091 = vmatpush1.bf16.msra.mxu1 %v7003_v48  ;;  %4051 = vmatprep.subr.bf16.mxu0 %v6884_v49  ;;  %v570_v38 = vld [vmem:[#allocation7 + $0xd30] sm:$0xff] }
 0x1f5   :  { %4092 = vmatprep.subr.bf16.mxu1 %v7012_v53  ;;  %v7180_v42 = vcombine.high %v566_v36, %v570_v38  ;;  %v446_v44 = vld [vmem:[#allocation7 + $0x950] sm:$0xff]  ;;  %v7179_v1 = vcombine.low %v566_v36, %v570_v38 }
 0x1f6   :  { %v450_v49 = vld [vmem:[#allocation7 + $0x970] sm:$0xff] }
 0x1f7   :  { %4052 = vmatpush1.bf16.msra.mxu0 %v6883_v58  ;;  %v574_v53 = vld [vmem:[#allocation7 + $0xd50] sm:$0xff] }
 0x1f8   :  { %4093 = vmatpush1.bf16.msra.mxu1 %v7011_v59  ;;  %4103 = vmatprep.subr.bf16.mxu0 %v7020_v61  ;;  %v578_v54 = vld [vmem:[#allocation7 + $0xd70] sm:$0xff] }
 0x1f9   :  { %4144 = vmatprep.subr.bf16.mxu1 %v7148_v63  ;;  %v7051_v63 = vcombine.low %v438_v33, %v442_v34  ;;  %v582_v10 = vld [vmem:[#allocation7 + $0xd90] sm:$0xff]  ;;  %v7187_v12 = vcombine.low %v574_v53, %v578_v54 }
 0x1fa   :  { %4054 = vmatmul.mubr.bf16.vlgmr.msra.gmra.mrb[28].mxu0 %v8569_v46  ;;  %v586_v11 = vld [vmem:[#allocation7 + $0xdb0] sm:$0xff] }
 0x1fb   :  { %4095 = vmatmul.mubr.bf16.vlgmr.msra.gmra.mrb[28].mxu1 %v8576_v31  ;;  %4104 = vmatpush1.bf16.msra.mxu0 %v7019_v6  ;;  %v7060_v6 = vcombine.high %v446_v44, %v450_v49  ;;  %v590_v24 = vld [vmem:[#allocation7 + $0xdd0] sm:$0xff] }
 0x1fc   :  { %4145 = vmatpush1.bf16.msra.mxu1 %v7147_v22  ;;  %4105 = vmatprep.subr.bf16.mxu0 %v7028_v7  ;;  %v7188_v22 = vcombine.high %v574_v53, %v578_v54  ;;  %v454_v7 = vld [vmem:[#allocation7 + $0x990] sm:$0xff] }
 0x1fd   :  { %4146 = vmatprep.subr.bf16.mxu1 %v7156_v8  ;;  %4135 = vmatprep.mubr.bf16.mxu0 %v8572_v56  ;;  %v594_v25 = vld [vmem:[#allocation7 + $0xdf0] sm:$0xff] }
 0x1fe   :  { %4176 = vmatprep.mubr.bf16.mxu1 %v8580_v2  ;;  %v7204_v36 = vcombine.high %v590_v24, %v594_v25  ;;  %v470_v38 = vld [vmem:[#allocation7 + $0xa10] sm:$0xff] }
 0x1ff   :  { %4106 = vmatpush1.bf16.msra.mxu0 %v7027_v14  ;;  %v7196_v14 = vcombine.high %v582_v10, %v586_v11  ;;  %v482_v53 = vld [vmem:[#allocation7 + $0xa70] sm:$0xff] }
 0x200   :  { %4147 = vmatpush1.bf16.msra.mxu1 %v7155_v17  ;;  %4107 = vmatprep.subr.bf16.mxu0 %v7036_v18  ;;  %v462_v17 = vld [vmem:[#allocation7 + $0x9d0] sm:$0xff] }
 0x201   :  { %4148 = vmatprep.subr.bf16.mxu1 %v7164_v19  ;;  %v466_v19 = vld [vmem:[#allocation7 + $0x9f0] sm:$0xff] }
 0x202   :  { %v7076_v34 = vcombine.high %v462_v17, %v466_v19  ;;  %v606_v54 = vld [vmem:[#allocation7 + $0xe50] sm:$0xff] }
 0x203   :  { %4108 = vmatpush1.bf16.msra.mxu0 %v7035_v28 }
 0x204   :  { %4149 = vmatpush1.bf16.msra.mxu1 %v7163_v29  ;;  %4109 = vmatprep.subr.bf16.mxu0 %v7044_v30 }
 0x205   :  { %4150 = vmatprep.subr.bf16.mxu1 %v7172_v32  ;;  %v3727_v52 = vpop.f32.mrb[12].mxu0  ;;  %v7195_v32 = vcombine.low %v582_v10, %v586_v11  ;;  %v626_v10 = vld [vmem:[#allocation7 + $0xef0] sm:$0xff] }
 0x206   :  { %v3768_v48 = vpop.f32.mrb[12].mxu1  ;;  %v3728_v55 = vadd.f32 %v3727_v52, %v8633_v60  ;;  %v3729_v62 = vpop.f32.mrb[13].mxu0  ;;  %v458_v60 = vld [vmem:[#allocation7 + $0x9b0] sm:$0xff] }
 0x207   :  { %v3770_v57 = vpop.f32.mrb[13].mxu1  ;;  %v3730_v58 = vadd.f32 %v3729_v62, %v8635_v20  ;;  %v3731_v59 = vpop.f32.mrb[14].mxu0  ;;  %4110 = vmatpush1.bf16.msra.mxu0 %v7043_v39  ;;  %v7059_v20 = vcombine.low %v446_v44, %v450_v49  ;;  %v7068_v13 = vcombine.high %v454_v7, %v458_v60  ;;  %v7067_v30 = vcombine.low %v454_v7, %v458_v60  ;;  %v474_v39 = vld [vmem:[#allocation7 + $0xa30] sm:$0xff] }
 0x208   :  { %4151 = vmatpush1.bf16.msra.mxu1 %v7171_v40  ;;  %v3772_v61 = vpop.f32.mrb[14].mxu1  ;;  %v3769_v3 = vadd.f32 %v3768_v48, %v3728_v55  ;;  %v3732_v4 = vpop.f32.mrb[15].mxu0  ;;  %4111 = vmatprep.subr.bf16.mxu0 %v7052_v41  ;;  %v598_v40 = vld [vmem:[#allocation7 + $0xe10] sm:$0xff]  ;;  %v7203_v44 = vcombine.low %v590_v24, %v594_v25  ;;  %v7084_v52 = vcombine.high %v470_v38, %v474_v39 }
 0x209   :  { %v3773_v5 = vpop.f32.mrb[15].mxu1  ;;  %4152 = vmatprep.subr.bf16.mxu1 %v7180_v42  ;;  %v3771_v8 = vadd.f32 %v3770_v57, %v3730_v58  ;;  %v602_v41 = vld [vmem:[#allocation7 + $0xe30] sm:$0xff]  ;;  %v7075_v42 = vcombine.low %v462_v17, %v466_v19  ;;  %v7083_v62 = vcombine.low %v470_v38, %v474_v39 }
 0x20a   :  { %v7212_v48 = vcombine.high %v598_v40, %v602_v41  ;;  %v478_v49 = vld [vmem:[#allocation7 + $0xa50] sm:$0xff]  ;;  %v7211_v57 = vcombine.low %v598_v40, %v602_v41 }
 0x20b   :  { %4112 = vmatpush1.bf16.msra.mxu0 %v7051_v63  ;;  %v610_v55 = vld [vmem:[#allocation7 + $0xe70] sm:$0xff]  ;;  %v7092_v58 = vcombine.high %v478_v49, %v482_v53  ;;  %v7091_v4 = vcombine.low %v478_v49, %v482_v53 }
 0x20c   :  { %4153 = vmatpush1.bf16.msra.mxu1 %v7179_v1  ;;  %4113 = vmatprep.subr.bf16.mxu0 %v7060_v6  ;;  %v7220_v59 = vcombine.high %v606_v54, %v610_v55  ;;  %v486_v61 = vld [vmem:[#allocation7 + $0xa90] sm:$0xff]  ;;  %v7219_v5 = vcombine.low %v606_v54, %v610_v55 }
 0x20d   :  { %4154 = vmatprep.subr.bf16.mxu1 %v7188_v22  ;;  %v3809_v18 = vpop.f32.mrb[16].mxu0  ;;  %v490_v63 = vld [vmem:[#allocation7 + $0xab0] sm:$0xff] }
 0x20e   :  { %v8643_v26 = vadd.f32 %v3809_v18, %v3769_v3  ;;  %v3811_v27 = vpop.f32.mrb[17].mxu0  ;;  %v614_v1 = vld [vmem:[#allocation7 + $0xe90] sm:$0xff]  ;;  %v7100_v6 = vcombine.high %v486_v61, %v490_v63  ;;  %v7099_v11 = vcombine.low %v486_v61, %v490_v63 }
 0x20f   :  { %v8645_v28 = vadd.f32 %v3811_v27, %v3771_v8  ;;  %v3813_v29 = vpop.f32.mrb[18].mxu0  ;;  %4114 = vmatpush1.bf16.msra.mxu0 %v7059_v20  ;;  %v618_v3 = vld [vmem:[#allocation7 + $0xeb0] sm:$0xff] }
 0x210   :  { %4155 = vmatpush1.bf16.msra.mxu1 %v7187_v12  ;;  %v3814_v33 = vpop.f32.mrb[19].mxu0  ;;  %4115 = vmatprep.subr.bf16.mxu0 %v7068_v13  ;;  %v7228_v22 = vcombine.high %v614_v1, %v618_v3  ;;  %v494_v7 = vld [vmem:[#allocation7 + $0xad0] sm:$0xff]  ;;  %v7227_v20 = vcombine.low %v614_v1, %v618_v3 }
 0x211   :  { %4156 = vmatprep.subr.bf16.mxu1 %v7196_v14  ;;  %v498_v8 = vld [vmem:[#allocation7 + $0xaf0] sm:$0xff] }
 0x212   :  { %v622_v60 = vld [vmem:[#allocation7 + $0xed0] sm:$0xff]  ;;  %v7108_v12 = vcombine.high %v494_v7, %v498_v8  ;;  %v7107_v24 = vcombine.low %v494_v7, %v498_v8 }
 0x213   :  { %4116 = vmatpush1.bf16.msra.mxu0 %v7067_v30  ;;  %v7236_v13 = vcombine.high %v622_v60, %v626_v10  ;;  %v502_v14 = vld [vmem:[#allocation7 + $0xb10] sm:$0xff]  ;;  %v7235_v25 = vcombine.low %v622_v60, %v626_v10 }
 0x214   :  { %4157 = vmatpush1.bf16.msra.mxu1 %v7195_v32  ;;  %4117 = vmatprep.subr.bf16.mxu0 %v7076_v34  ;;  %v506_v17 = vld [vmem:[#allocation7 + $0xb30] sm:$0xff] }
 0x215   :  { %4158 = vmatprep.subr.bf16.mxu1 %v7204_v36  ;;  %v630_v18 = vld [vmem:[#allocation7 + $0xf10] sm:$0xff]  ;;  %v7116_v27 = vcombine.high %v502_v14, %v506_v17  ;;  %v7115_v36 = vcombine.low %v502_v14, %v506_v17 }
 0x216   :  { %v634_v19 = vld [vmem:[#allocation7 + $0xf30] sm:$0xff] }
 0x217   :  { %4118 = vmatpush1.bf16.msra.mxu0 %v7075_v42  ;;  %v7244_v29 = vcombine.high %v630_v18, %v634_v19  ;;  %v510_v30 = vld [vmem:[#allocation7 + $0xb50] sm:$0xff]  ;;  %v7243_v38 = vcombine.low %v630_v18, %v634_v19  ;;  %v167_v19 = vld [vmem:[#allocation7 + $0x98] sm:$0xff] }
 0x218   :  { %4159 = vmatpush1.bf16.msra.mxu1 %v7203_v44  ;;  %4119 = vmatprep.subr.bf16.mxu0 %v7084_v52  ;;  %v514_v32 = vld [vmem:[#allocation7 + $0xb70] sm:$0xff] }
 0x219   :  { %4160 = vmatprep.subr.bf16.mxu1 %v7212_v48  ;;  %v638_v33 = vld [vmem:[#allocation7 + $0xf50] sm:$0xff]  ;;  %v7124_v39 = vcombine.high %v510_v30, %v514_v32  ;;  %v7123_v48 = vcombine.low %v510_v30, %v514_v32 }
 0x21a   :  { %v642_v34 = vld [vmem:[#allocation7 + $0xf70] sm:$0xff] }
 0x21b   :  { %4120 = vmatpush1.bf16.msra.mxu0 %v7083_v62  ;;  %v7252_v40 = vcombine.high %v638_v33, %v642_v34  ;;  %v518_v41 = vld [vmem:[#allocation7 + $0xb90] sm:$0xff]  ;;  %v7251_v49 = vcombine.low %v638_v33, %v642_v34  ;;  %v175_v34 = vld [vmem:[#allocation7 + $0xd8] sm:$0xff] }
 0x21c   :  { %4161 = vmatpush1.bf16.msra.mxu1 %v7211_v57  ;;  %4121 = vmatprep.subr.bf16.mxu0 %v7092_v58  ;;  %v522_v42 = vld [vmem:[#allocation7 + $0xbb0] sm:$0xff] }
 0x21d   :  { %4162 = vmatprep.subr.bf16.mxu1 %v7220_v59  ;;  %v646_v44 = vld [vmem:[#allocation7 + $0xf90] sm:$0xff]  ;;  %v7132_v53 = vcombine.high %v518_v41, %v522_v42  ;;  %v7131_v59 = vcombine.low %v518_v41, %v522_v42 }
 0x21e   :  { %v650_v52 = vld [vmem:[#allocation7 + $0xfb0] sm:$0xff] }
 0x21f   :  { %4122 = vmatpush1.bf16.msra.mxu0 %v7091_v4  ;;  %v7260_v54 = vcombine.high %v646_v44, %v650_v52  ;;  %v526_v55 = vld [vmem:[#allocation7 + $0xbd0] sm:$0xff]  ;;  %v7259_v61 = vcombine.low %v646_v44, %v650_v52  ;;  %v183_v52 = vld [vmem:[#allocation7 + $0x118] sm:$0xff] }
 0x220   :  { %4163 = vmatpush1.bf16.msra.mxu1 %v7219_v5  ;;  %4123 = vmatprep.subr.bf16.mxu0 %v7100_v6  ;;  %v530_v62 = vld [vmem:[#allocation7 + $0xbf0] sm:$0xff]  ;;  %v151_v5 = vld [vmem:[#allocation7 + $0x18] sm:$0xff] }
 0x221   :  { %4164 = vmatprep.subr.bf16.mxu1 %v7228_v22  ;;  %v654_v57 = vld [vmem:[#allocation7 + $0xfd0] sm:$0xff]  ;;  %v7140_v63 = vcombine.high %v526_v55, %v530_v62  ;;  %v155_v6 = vld [vmem:[#allocation7 + $0x38] sm:$0xff]  ;;  %v7139_v22 = vcombine.low %v526_v55, %v530_v62 }
 0x222   :  { %v658_v58 = vld [vmem:[#allocation7 + $0xff0] sm:$0xff]  ;;  %v6766_v60 = vcombine.high %v151_v5, %v155_v6 }
 0x223   :  { %4124 = vmatpush1.bf16.msra.mxu0 %v7099_v11  ;;  %v7268_v1 = vcombine.high %v654_v57, %v658_v58  ;;  %v662_v3 = vld [vmem:[#allocation7 + $0x1010] sm:$0xff]  ;;  %v7267_v7 = vcombine.low %v654_v57, %v658_v58  ;;  %v159_v11 = vld [vmem:[#allocation7 + $0x58] sm:$0xff] }
 0x224   :  { %4165 = vmatpush1.bf16.msra.mxu1 %v7227_v20  ;;  %4125 = vmatprep.subr.bf16.mxu0 %v7108_v12  ;;  %v666_v4 = vld [vmem:[#allocation7 + $0x1030] sm:$0xff]  ;;  %v163_v20 = vld [vmem:[#allocation7 + $0x78] sm:$0xff] }
 0x225   :  { %4166 = vmatprep.subr.bf16.mxu1 %v7236_v13  ;;  %v7276_v8 = vcombine.high %v662_v3, %v666_v4  ;;  %v670_v10 = vld [vmem:[#allocation7 + $0x1050] sm:$0x11]  ;;  %v7275_v12 = vcombine.low %v662_v3, %v666_v4  ;;  %v6765_v13 = vcombine.low %v151_v5, %v155_v6  ;;  %v6774_v17 = vcombine.high %v159_v11, %v163_v20  ;;  %v191_v57 = vld [vmem:[#allocation7 + $0x158] sm:$0xff] }
 0x226   :  { %v7284_v14 = vcombine.high %v670_v10, %v670_v10  ;;  %v7283_v18 = vcombine.low %v670_v10, %v670_v10  ;;  %v199_v10 = vld [vmem:[#allocation7 + $0x198] sm:$0xff] }
 0x227   :  { %4126 = vmatpush1.bf16.msra.mxu0 %v7107_v24  ;;  %v171_v24 = vld [vmem:[#allocation7 + $0xb8] sm:$0xff] }
 0x228   :  { %4167 = vmatpush1.bf16.msra.mxu1 %v7235_v25  ;;  %4127 = vmatprep.subr.bf16.mxu0 %v7116_v27  ;;  %v279_v25 = vld [vmem:[#allocation7 + $0x418] sm:$0xff]  ;;  %v3600_v30 = vsel %vm3586_vm2, %v7283_v18, 0  ;;  %v6782_v32 = vcombine.high %v167_v19, %v171_v24 }
 0x229   :  { %4168 = vmatprep.subr.bf16.mxu1 %v7244_v29  ;;  %v283_v27 = vld [vmem:[#allocation7 + $0x438] sm:$0xff]  ;;  %v6773_v29 = vcombine.low %v159_v11, %v163_v20 }
 0x22a   :  { %v6894_v33 = vcombine.high %v279_v25, %v283_v27  ;;  %v6893_v41 = vcombine.low %v279_v25, %v283_v27  ;;  %v203_v11 = vld [vmem:[#allocation7 + $0x1b8] sm:$0xff] }
 0x22b   :  { %4128 = vmatpush1.bf16.msra.mxu0 %v7115_v36  ;;  %v179_v36 = vld [vmem:[#allocation7 + $0xf8] sm:$0xff] }
 0x22c   :  { %4169 = vmatpush1.bf16.msra.mxu1 %v7243_v38  ;;  %4129 = vmatprep.subr.bf16.mxu0 %v7124_v39  ;;  %v287_v38 = vld [vmem:[#allocation7 + $0x458] sm:$0xff]  ;;  %v6790_v42 = vcombine.high %v175_v34, %v179_v36 }
 0x22d   :  { %4170 = vmatprep.subr.bf16.mxu1 %v7252_v40  ;;  %v291_v39 = vld [vmem:[#allocation7 + $0x478] sm:$0xff]  ;;  %v6781_v40 = vcombine.low %v167_v19, %v171_v24 }
 0x22e   :  { %v6902_v44 = vcombine.high %v287_v38, %v291_v39  ;;  %v6901_v55 = vcombine.low %v287_v38, %v291_v39  ;;  %v311_v20 = vld [vmem:[#allocation7 + $0x518] sm:$0xff] }
 0x22f   :  { %4130 = vmatpush1.bf16.msra.mxu0 %v7123_v48  ;;  %v187_v48 = vld [vmem:[#allocation7 + $0x138] sm:$0xff] }
 0x230   :  { %4171 = vmatpush1.bf16.msra.mxu1 %v7251_v49  ;;  %4131 = vmatprep.subr.bf16.mxu0 %v7132_v53  ;;  %v295_v49 = vld [vmem:[#allocation7 + $0x498] sm:$0xff]  ;;  %v6797_v6 = vcombine.low %v183_v52, %v187_v48 }
 0x231   :  { %4172 = vmatprep.subr.bf16.mxu1 %v7260_v54  ;;  %v299_v53 = vld [vmem:[#allocation7 + $0x4b8] sm:$0xff]  ;;  %v6789_v54 = vcombine.low %v175_v34, %v179_v36 }
 0x232   :  { %v6910_v62 = vcombine.high %v295_v49, %v299_v53  ;;  %v211_v18 = vld [vmem:[#allocation7 + $0x1f8] sm:$0xff] }
 0x233   :  { %4132 = vmatpush1.bf16.msra.mxu0 %v7131_v59  ;;  %v195_v59 = vld [vmem:[#allocation7 + $0x178] sm:$0xff] }
 0x234   :  { %4173 = vmatpush1.bf16.msra.mxu1 %v7259_v61  ;;  %4133 = vmatprep.subr.bf16.mxu0 %v7140_v63  ;;  %v303_v61 = vld [vmem:[#allocation7 + $0x4d8] sm:$0xff] }
 0x235   :  { %4174 = vmatprep.subr.bf16.mxu1 %v7268_v1  ;;  %v307_v63 = vld [vmem:[#allocation7 + $0x4f8] sm:$0xff] }
 0x236   :  { %v319_v19 = vld [vmem:[#allocation7 + $0x558] sm:$0xff] }
 0x237   :  { %4134 = vmatpush1.bf16.msra.mxu0 %v7139_v22  ;;  %v6909_v22 = vcombine.low %v295_v49, %v299_v53  ;;  %v323_v24 = vld [vmem:[#allocation7 + $0x578] sm:$0xff] }
 0x238   :  { %4175 = vmatpush1.bf16.msra.mxu1 %v7267_v7  ;;  %4185 = vmatprep.subr.bf16.mxu0 %v7276_v8  ;;  %v6806_v8 = vcombine.high %v191_v57, %v195_v59  ;;  %v6934_v38 = vcombine.high %v319_v19, %v323_v24  ;;  %v215_v39 = vld [vmem:[#allocation7 + $0x218] sm:$0xff] }
 0x239   :  { %4226 = vmatprep.subr.bf16.mxu1 %v6766_v60  ;;  %v6918_v60 = vcombine.high %v303_v61, %v307_v63  ;;  %v223_v53 = vld [vmem:[#allocation7 + $0x258] sm:$0xff] }
 0x23a   :  { %4136 = vmatmul.mubr.bf16.vlgmr.msra.gmra.mrb[32].mxu0 %v8563_v35 }
 0x23b   :  { %4177 = vmatmul.mubr.bf16.vlgmr.msra.gmra.mrb[32].mxu1 %v8588_v15  ;;  %4186 = vmatpush1.bf16.msra.mxu0 %v7275_v12  ;;  %v315_v12 = vld [vmem:[#allocation7 + $0x538] sm:$0xff] }
 0x23c   :  { %4227 = vmatpush1.bf16.msra.mxu1 %v6765_v13  ;;  %7291 = vmatprep.subr.msk.bf16.mxu0 %vm3586_vm2, %v7284_v14  ;;  %v6926_v13 = vcombine.high %v311_v20, %v315_v12  ;;  %v207_v14 = vld [vmem:[#allocation7 + $0x1d8] sm:$0xff] }
 0x23d   :  { %4228 = vmatprep.subr.bf16.mxu1 %v6774_v17  ;;  %4217 = vmatprep.mubr.bf16.mxu0 %v8355_v0  ;;  %v6822_v36 = vcombine.high %v207_v14, %v211_v18 }
 0x23e   :  { %4258 = vmatprep.mubr.bf16.mxu1 %v8550_v9  ;;  %v6798_v9 = vcombine.high %v183_v52, %v187_v48  ;;  %v6933_v52 = vcombine.low %v319_v19, %v323_v24 }
 0x23f   :  { %4188 = vmatpush1.bf16.msra.mxu0 %v3600_v30 }
 0x240   :  { %4229 = vmatpush1.bf16.msra.mxu1 %v6773_v29  ;;  %4267 = vmatprep.subr.bf16.mxu0 %v6894_v33  ;;  %v6925_v33 = vcombine.low %v311_v20, %v315_v12 }
 0x241   :  { %4230 = vmatprep.subr.bf16.mxu1 %v6782_v32  ;;  %v6813_v32 = vcombine.low %v199_v10, %v203_v11 }
 0x242   :  { %7292 = vmatmul.mubr.msk.bf16.vlgmr.msra.gmra.mrb[36].mxu0 %vm3582_vm3, %v8597_v37 }
 0x243   :  { %4268 = vmatpush1.bf16.msra.mxu0 %v6893_v41  ;;  %4299 = vmatprep.mubr.bf16.mxu0 %v8555_v16  ;;  %v6805_v16 = vcombine.low %v191_v57, %v195_v59  ;;  %v327_v41 = vld [vmem:[#allocation7 + $0x598] sm:$0xff] }
 0x244   :  { %4231 = vmatpush1.bf16.msra.mxu1 %v6781_v40  ;;  %4269 = vmatprep.subr.bf16.mxu0 %v6902_v44  ;;  %v219_v40 = vld [vmem:[#allocation7 + $0x238] sm:$0xff]  ;;  %v6821_v44 = vcombine.low %v207_v14, %v211_v18 }
 0x245   :  { %4232 = vmatprep.subr.bf16.mxu1 %v6790_v42  ;;  %v331_v42 = vld [vmem:[#allocation7 + $0x5b8] sm:$0xff]  ;;  %v6830_v48 = vcombine.high %v215_v39, %v219_v40 }
 0x246   :  { %v3850_v58 = vpop.f32.mrb[16].mxu1  ;;  %v6942_v49 = vcombine.high %v327_v41, %v331_v42  ;;  %v6941_v57 = vcombine.low %v327_v41, %v331_v42  ;;  %v363_v14 = vld [vmem:[#allocation7 + $0x6b8] sm:$0xff] }
 0x247   :  { %v3851_v1 = vadd.f32 %v3850_v58, %v8607_v21  ;;  %v3852_v3 = vpop.f32.mrb[17].mxu1  ;;  %4270 = vmatpush1.bf16.msra.mxu0 %v6901_v55  ;;  %v6917_v21 = vcombine.low %v303_v61, %v307_v63  ;;  %v335_v55 = vld [vmem:[#allocation7 + $0x5d8] sm:$0xff] }
 0x248   :  { %v3853_v4 = vadd.f32 %v3852_v3, %v8612_v23  ;;  %4233 = vmatpush1.bf16.msra.mxu1 %v6789_v54  ;;  %v3854_v5 = vpop.f32.mrb[18].mxu1  ;;  %4271 = vmatprep.subr.bf16.mxu0 %v6910_v62  ;;  %v6814_v23 = vcombine.high %v199_v10, %v203_v11  ;;  %v227_v54 = vld [vmem:[#allocation7 + $0x278] sm:$0xff]  ;;  %v6829_v62 = vcombine.low %v215_v39, %v219_v40 }
 0x249   :  { %v3855_v7 = vpop.f32.mrb[19].mxu1  ;;  %4234 = vmatprep.subr.bf16.mxu1 %v6798_v9  ;;  %v339_v9 = vld [vmem:[#allocation7 + $0x5f8] sm:$0xff]  ;;  %v6838_v58 = vcombine.high %v223_v53, %v227_v54 }
 0x24a   :  { %v6950_v59 = vcombine.high %v335_v55, %v339_v9  ;;  %v231_v61 = vld [vmem:[#allocation7 + $0x298] sm:$0xff]  ;;  %v6949_v5 = vcombine.low %v335_v55, %v339_v9 }
 0x24b   :  { %4272 = vmatpush1.bf16.msra.mxu0 %v6909_v22  ;;  %v235_v63 = vld [vmem:[#allocation7 + $0x2b8] sm:$0xff] }
 0x24c   :  { %4235 = vmatpush1.bf16.msra.mxu1 %v6797_v6  ;;  %4273 = vmatprep.subr.bf16.mxu0 %v6918_v60  ;;  %v347_v3 = vld [vmem:[#allocation7 + $0x638] sm:$0xff]  ;;  %v6846_v6 = vcombine.high %v231_v61, %v235_v63  ;;  %v6845_v11 = vcombine.low %v231_v61, %v235_v63 }
 0x24d   :  { %4236 = vmatprep.subr.bf16.mxu1 %v6806_v8  ;;  %v3891_v17 = vpop.f32.mrb[20].mxu0  ;;  %v239_v7 = vld [vmem:[#allocation7 + $0x2d8] sm:$0xff] }
 0x24e   :  { %v8658_v25 = vadd.f32 %v3891_v17, %v3851_v1  ;;  %v3893_v27 = vpop.f32.mrb[21].mxu0  ;;  %v343_v1 = vld [vmem:[#allocation7 + $0x618] sm:$0xff] }
 0x24f   :  { %v8660_v29 = vadd.f32 %v3893_v27, %v3853_v4  ;;  %v3895_v30 = vpop.f32.mrb[22].mxu0  ;;  %4274 = vmatpush1.bf16.msra.mxu0 %v6917_v21  ;;  %v6837_v4 = vcombine.low %v223_v53, %v227_v54  ;;  %v6958_v22 = vcombine.high %v343_v1, %v347_v3  ;;  %v243_v8 = vld [vmem:[#allocation7 + $0x2f8] sm:$0xff]  ;;  %v6957_v20 = vcombine.low %v343_v1, %v347_v3 }
 0x250   :  { %4237 = vmatpush1.bf16.msra.mxu1 %v6805_v16  ;;  %v3896_v34 = vpop.f32.mrb[23].mxu0  ;;  %4275 = vmatprep.subr.bf16.mxu0 %v6926_v13  ;;  %v351_v60 = vld [vmem:[#allocation7 + $0x658] sm:$0xff]  ;;  %v6854_v12 = vcombine.high %v239_v7, %v243_v8  ;;  %v6853_v17 = vcombine.low %v239_v7, %v243_v8 }
 0x251   :  { %4238 = vmatprep.subr.bf16.mxu1 %v6814_v23  ;;  %v355_v10 = vld [vmem:[#allocation7 + $0x678] sm:$0xff] }
 0x252   :  { %v6966_v16 = vcombine.high %v351_v60, %v355_v10  ;;  %v247_v21 = vld [vmem:[#allocation7 + $0x318] sm:$0xff]  ;;  %v6965_v18 = vcombine.low %v351_v60, %v355_v10 }
 0x253   :  { %4276 = vmatpush1.bf16.msra.mxu0 %v6925_v33  ;;  %v251_v23 = vld [vmem:[#allocation7 + $0x338] sm:$0xff] }
 0x254   :  { %4239 = vmatpush1.bf16.msra.mxu1 %v6813_v32  ;;  %4277 = vmatprep.subr.bf16.mxu0 %v6934_v38  ;;  %v359_v13 = vld [vmem:[#allocation7 + $0x698] sm:$0xff]  ;;  %v6862_v19 = vcombine.high %v247_v21, %v251_v23  ;;  %v6861_v34 = vcombine.low %v247_v21, %v251_v23 }
 0x255   :  { %4240 = vmatprep.subr.bf16.mxu1 %v6822_v36  ;;  %v6974_v24 = vcombine.high %v359_v13, %v363_v14  ;;  %v255_v27 = vld [vmem:[#allocation7 + $0x358] sm:$0xff]  ;;  %v6973_v36 = vcombine.low %v359_v13, %v363_v14 }
 0x256   :  { %v259_v30 = vld [vmem:[#allocation7 + $0x378] sm:$0xff] }
 0x257   :  { %4278 = vmatpush1.bf16.msra.mxu0 %v6933_v52  ;;  %v367_v32 = vld [vmem:[#allocation7 + $0x6d8] sm:$0xff]  ;;  %v6870_v38 = vcombine.high %v255_v27, %v259_v30  ;;  %v6869_v52 = vcombine.low %v255_v27, %v259_v30 }
 0x258   :  { %4241 = vmatpush1.bf16.msra.mxu1 %v6821_v44  ;;  %4279 = vmatprep.subr.bf16.mxu0 %v6942_v49  ;;  %v371_v33 = vld [vmem:[#allocation7 + $0x6f8] sm:$0xff] }
 0x259   :  { %4242 = vmatprep.subr.bf16.mxu1 %v6830_v48  ;;  %v6982_v39 = vcombine.high %v367_v32, %v371_v33  ;;  %v263_v40 = vld [vmem:[#allocation7 + $0x398] sm:$0xff]  ;;  %v6981_v48 = vcombine.low %v367_v32, %v371_v33 }
 0x25a   :  { %v267_v41 = vld [vmem:[#allocation7 + $0x3b8] sm:$0xff] }
 0x25b   :  { %4280 = vmatpush1.bf16.msra.mxu0 %v6941_v57  ;;  %v375_v42 = vld [vmem:[#allocation7 + $0x718] sm:$0xff]  ;;  %v6878_v49 = vcombine.high %v263_v40, %v267_v41  ;;  %v6877_v57 = vcombine.low %v263_v40, %v267_v41 }
 0x25c   :  { %4243 = vmatpush1.bf16.msra.mxu1 %v6829_v62  ;;  %4281 = vmatprep.subr.bf16.mxu0 %v6950_v59  ;;  %v379_v44 = vld [vmem:[#allocation7 + $0x738] sm:$0xff] }
 0x25d   :  { %4244 = vmatprep.subr.bf16.mxu1 %v6838_v58  ;;  %v6990_v53 = vcombine.high %v375_v42, %v379_v44  ;;  %v271_v54 = vld [vmem:[#allocation7 + $0x3d8] sm:$0xff]  ;;  %v6989_v58 = vcombine.low %v375_v42, %v379_v44 }
 0x25e   :  { %v275_v55 = vld [vmem:[#allocation7 + $0x3f8] sm:$0xff] }
 0x25f   :  { %4282 = vmatpush1.bf16.msra.mxu0 %v6949_v5  ;;  %v383_v9 = vld [vmem:[#allocation7 + $0x758] sm:$0xff]  ;;  %v6886_v59 = vcombine.high %v271_v54, %v275_v55  ;;  %v6885_v5 = vcombine.low %v271_v54, %v275_v55 }
 0x260   :  { %4245 = vmatpush1.bf16.msra.mxu1 %v6837_v4  ;;  %4283 = vmatprep.subr.bf16.mxu0 %v6958_v22  ;;  %v387_v62 = vld [vmem:[#allocation7 + $0x778] sm:$0xff] }
 0x261   :  { %4246 = vmatprep.subr.bf16.mxu1 %v6846_v6  ;;  %v6998_v61 = vcombine.high %v383_v9, %v387_v62  ;;  %v391_v63 = vld [vmem:[#allocation7 + $0x798] sm:$0xff]  ;;  %v6997_v6 = vcombine.low %v383_v9, %v387_v62 }
 0x262   :  { %v395_v1 = vld [vmem:[#allocation7 + $0x7b8] sm:$0xff] }
 0x263   :  { %4284 = vmatpush1.bf16.msra.mxu0 %v6957_v20  ;;  %v407_v3 = vld [vmem:[#allocation7 + $0x818] sm:$0xff]  ;;  %v7006_v22 = vcombine.high %v391_v63, %v395_v1  ;;  %v7005_v20 = vcombine.low %v391_v63, %v395_v1 }
 0x264   :  { %4247 = vmatpush1.bf16.msra.mxu1 %v6845_v11  ;;  %4285 = vmatprep.subr.bf16.mxu0 %v6966_v16  ;;  %v411_v4 = vld [vmem:[#allocation7 + $0x838] sm:$0xff] }
 0x265   :  { %4248 = vmatprep.subr.bf16.mxu1 %v6854_v12  ;;  %v7022_v7 = vcombine.high %v407_v3, %v411_v4  ;;  %v399_v8 = vld [vmem:[#allocation7 + $0x7d8] sm:$0xff]  ;;  %v7021_v12 = vcombine.low %v407_v3, %v411_v4 }
 0x266   :  { %v403_v60 = vld [vmem:[#allocation7 + $0x7f8] sm:$0xff] }
 0x267   :  { %4286 = vmatpush1.bf16.msra.mxu0 %v6965_v18  ;;  %v415_v10 = vld [vmem:[#allocation7 + $0x858] sm:$0xff]  ;;  %v7014_v16 = vcombine.high %v399_v8, %v403_v60  ;;  %v7013_v18 = vcombine.low %v399_v8, %v403_v60 }
 0x268   :  { %4249 = vmatpush1.bf16.msra.mxu1 %v6853_v17  ;;  %4287 = vmatprep.subr.bf16.mxu0 %v6974_v24  ;;  %v419_v11 = vld [vmem:[#allocation7 + $0x878] sm:$0xff] }
 0x269   :  { %4250 = vmatprep.subr.bf16.mxu1 %v6862_v19  ;;  %v7030_v21 = vcombine.high %v415_v10, %v419_v11  ;;  %v423_v23 = vld [vmem:[#allocation7 + $0x898] sm:$0xff]  ;;  %v7029_v19 = vcombine.low %v415_v10, %v419_v11 }
 0x26a   :  { %v427_v13 = vld [vmem:[#allocation7 + $0x8b8] sm:$0xff] }
 0x26b   :  { %4288 = vmatpush1.bf16.msra.mxu0 %v6973_v36  ;;  %v535_v14 = vld [vmem:[#allocation7 + $0xc18] sm:$0xff]  ;;  %v7038_v24 = vcombine.high %v423_v23, %v427_v13  ;;  %v7037_v36 = vcombine.low %v423_v23, %v427_v13 }
 0x26c   :  { %4251 = vmatpush1.bf16.msra.mxu1 %v6861_v34  ;;  %4289 = vmatprep.subr.bf16.mxu0 %v6982_v39  ;;  %v539_v17 = vld [vmem:[#allocation7 + $0xc38] sm:$0xff] }
 0x26d   :  { %4252 = vmatprep.subr.bf16.mxu1 %v6870_v38  ;;  %v7150_v27 = vcombine.high %v535_v14, %v539_v17  ;;  %v431_v30 = vld [vmem:[#allocation7 + $0x8d8] sm:$0xff]  ;;  %v7149_v38 = vcombine.low %v535_v14, %v539_v17 }
 0x26e   :  { %v435_v32 = vld [vmem:[#allocation7 + $0x8f8] sm:$0xff] }
 0x26f   :  { %4290 = vmatpush1.bf16.msra.mxu0 %v6981_v48  ;;  %v543_v33 = vld [vmem:[#allocation7 + $0xc58] sm:$0xff] }
 0x270   :  { %4253 = vmatpush1.bf16.msra.mxu1 %v6869_v52  ;;  %4291 = vmatprep.subr.bf16.mxu0 %v6990_v53  ;;  %v547_v34 = vld [vmem:[#allocation7 + $0xc78] sm:$0xff]  ;;  %v7045_v52 = vcombine.low %v431_v30, %v435_v32 }
 0x271   :  { %4254 = vmatprep.subr.bf16.mxu1 %v6878_v49  ;;  %v7158_v39 = vcombine.high %v543_v33, %v547_v34  ;;  %v439_v40 = vld [vmem:[#allocation7 + $0x918] sm:$0xff]  ;;  %v7157_v48 = vcombine.low %v543_v33, %v547_v34 }
 0x272   :  { %v443_v41 = vld [vmem:[#allocation7 + $0x938] sm:$0xff] }
 0x273   :  { %4292 = vmatpush1.bf16.msra.mxu0 %v6989_v58  ;;  %v551_v42 = vld [vmem:[#allocation7 + $0xc98] sm:$0xff] }
 0x274   :  { %4255 = vmatpush1.bf16.msra.mxu1 %v6877_v57  ;;  %4293 = vmatprep.subr.bf16.mxu0 %v6998_v61  ;;  %v555_v44 = vld [vmem:[#allocation7 + $0xcb8] sm:$0xff]  ;;  %v7053_v61 = vcombine.low %v439_v40, %v443_v41 }
 0x275   :  { %4256 = vmatprep.subr.bf16.mxu1 %v6886_v59  ;;  %v7166_v49 = vcombine.high %v551_v42, %v555_v44  ;;  %v447_v53 = vld [vmem:[#allocation7 + $0x958] sm:$0xff]  ;;  %v7165_v63 = vcombine.low %v551_v42, %v555_v44 }
 0x276   :  { %v451_v55 = vld [vmem:[#allocation7 + $0x978] sm:$0xff] }
 0x277   :  { %4294 = vmatpush1.bf16.msra.mxu0 %v6997_v6  ;;  %v559_v9 = vld [vmem:[#allocation7 + $0xcd8] sm:$0xff]  ;;  %v7062_v3 = vcombine.high %v447_v53, %v451_v55 }
 0x278   :  { %4257 = vmatpush1.bf16.msra.mxu1 %v6885_v5  ;;  %4295 = vmatprep.subr.bf16.mxu0 %v7006_v22  ;;  %v563_v62 = vld [vmem:[#allocation7 + $0xcf8] sm:$0xff] }
 0x279   :  { %4308 = vmatprep.subr.bf16.mxu1 %v7022_v7  ;;  %v7174_v4 = vcombine.high %v559_v9, %v563_v62  ;;  %v455_v5 = vld [vmem:[#allocation7 + $0x998] sm:$0xff] }
 0x27a   :  { %v459_v6 = vld [vmem:[#allocation7 + $0x9b8] sm:$0xff] }
 0x27b   :  { %4259 = vmatmul.mubr.bf16.vlgmr.msra.gmra.mrb[36].mxu1 %v8569_v46  ;;  %4296 = vmatpush1.bf16.msra.mxu0 %v7005_v20  ;;  %v7046_v46 = vcombine.high %v431_v30, %v435_v32  ;;  %v567_v22 = vld [vmem:[#allocation7 + $0xd18] sm:$0xff] }
 0x27c   :  { %4309 = vmatpush1.bf16.msra.mxu1 %v7021_v12  ;;  %4297 = vmatprep.subr.bf16.mxu0 %v7014_v16  ;;  %v571_v7 = vld [vmem:[#allocation7 + $0xd38] sm:$0xff] }
 0x27d   :  { %4310 = vmatprep.subr.bf16.mxu1 %v7030_v21  ;;  %4340 = vmatprep.mubr.bf16.mxu1 %v8572_v56  ;;  %v7054_v56 = vcombine.high %v439_v40, %v443_v41  ;;  %v7182_v8 = vcombine.high %v567_v22, %v571_v7  ;;  %v463_v60 = vld [vmem:[#allocation7 + $0x9d8] sm:$0xff] }
 0x27e   :  { %v467_v20 = vld [vmem:[#allocation7 + $0x9f8] sm:$0xff] }
 0x27f   :  { %4298 = vmatpush1.bf16.msra.mxu0 %v7013_v18  ;;  %v575_v12 = vld [vmem:[#allocation7 + $0xd58] sm:$0xff]  ;;  %v7078_v33 = vcombine.high %v463_v60, %v467_v20  ;;  %v7077_v41 = vcombine.low %v463_v60, %v467_v20 }
 0x280   :  { %4311 = vmatpush1.bf16.msra.mxu1 %v7029_v19  ;;  %4349 = vmatprep.subr.bf16.mxu0 %v7150_v27  ;;  %v579_v16 = vld [vmem:[#allocation7 + $0xd78] sm:$0xff]  ;;  %v7069_v19 = vcombine.low %v455_v5, %v459_v6 }
 0x281   :  { %4312 = vmatprep.subr.bf16.mxu1 %v7038_v24  ;;  %v7181_v24 = vcombine.low %v567_v22, %v571_v7  ;;  %v7190_v34 = vcombine.high %v575_v12, %v579_v16  ;;  %v587_v40 = vld [vmem:[#allocation7 + $0xdb8] sm:$0xff]  ;;  %v7189_v42 = vcombine.low %v575_v12, %v579_v16 }
 0x282   :  { %4300 = vmatmul.mubr.bf16.vlgmr.msra.gmra.mrb[40].mxu0 %v8576_v31  ;;  %v611_v22 = vld [vmem:[#allocation7 + $0xe78] sm:$0xff] }
 0x283   :  { %4350 = vmatpush1.bf16.msra.mxu0 %v7149_v38  ;;  %4381 = vmatprep.mubr.bf16.mxu0 %v8580_v2  ;;  %v7061_v2 = vcombine.low %v447_v53, %v451_v55  ;;  %v595_v53 = vld [vmem:[#allocation7 + $0xdf8] sm:$0xff] }
 0x284   :  { %4313 = vmatpush1.bf16.msra.mxu1 %v7037_v36  ;;  %4351 = vmatprep.subr.bf16.mxu0 %v7158_v39  ;;  %v471_v36 = vld [vmem:[#allocation7 + $0xa18] sm:$0xff] }
 0x285   :  { %4314 = vmatprep.subr.bf16.mxu1 %v7046_v46  ;;  %v475_v46 = vld [vmem:[#allocation7 + $0xa38] sm:$0xff] }
 0x286   :  { %v3932_v54 = vpop.f32.mrb[20].mxu1  ;;  %v583_v39 = vld [vmem:[#allocation7 + $0xd98] sm:$0xff]  ;;  %v7086_v44 = vcombine.high %v471_v36, %v475_v46 }
 0x287   :  { %v3933_v57 = vadd.f32 %v3932_v54, %v8658_v25  ;;  %v3934_v58 = vpop.f32.mrb[21].mxu1  ;;  %4352 = vmatpush1.bf16.msra.mxu0 %v7157_v48  ;;  %v7173_v25 = vcombine.low %v559_v9, %v563_v62  ;;  %v479_v48 = vld [vmem:[#allocation7 + $0xa58] sm:$0xff]  ;;  %v7085_v54 = vcombine.low %v471_v36, %v475_v46  ;;  %v7197_v55 = vcombine.low %v583_v39, %v587_v40 }
 0x288   :  { %v3935_v31 = vadd.f32 %v3934_v58, %v8660_v29  ;;  %4315 = vmatpush1.bf16.msra.mxu1 %v7045_v52  ;;  %v3936_v59 = vpop.f32.mrb[22].mxu1  ;;  %4353 = vmatprep.subr.bf16.mxu0 %v7166_v49  ;;  %v7070_v29 = vcombine.high %v455_v5, %v459_v6  ;;  %v7198_v52 = vcombine.high %v583_v39, %v587_v40  ;;  %v591_v49 = vld [vmem:[#allocation7 + $0xdd8] sm:$0xff] }
 0x289   :  { %v3937_v1 = vpop.f32.mrb[23].mxu1  ;;  %4316 = vmatprep.subr.bf16.mxu1 %v7054_v56  ;;  %v483_v56 = vld [vmem:[#allocation7 + $0xa78] sm:$0xff]  ;;  %v7206_v62 = vcombine.high %v591_v49, %v595_v53 }
 0x28a   :  { %v7094_v9 = vcombine.high %v479_v48, %v483_v56  ;;  %v491_v58 = vld [vmem:[#allocation7 + $0xab8] sm:$0xff] }
 0x28b   :  { %4354 = vmatpush1.bf16.msra.mxu0 %v7165_v63  ;;  %v603_v59 = vld [vmem:[#allocation7 + $0xe38] sm:$0xff]  ;;  %v7205_v63 = vcombine.low %v591_v49, %v595_v53 }
 0x28c   :  { %4317 = vmatpush1.bf16.msra.mxu1 %v7053_v61  ;;  %4355 = vmatprep.subr.bf16.mxu0 %v7174_v4  ;;  %v7093_v61 = vcombine.low %v479_v48, %v483_v56  ;;  %v495_v4 = vld [vmem:[#allocation7 + $0xad8] sm:$0xff] }
 0x28d   :  { %4318 = vmatprep.subr.bf16.mxu1 %v7062_v3  ;;  %v3973_v10 = vpop.f32.mrb[24].mxu0  ;;  %v499_v5 = vld [vmem:[#allocation7 + $0xaf8] sm:$0xff] }
 0x28e   :  { %v4014_v11 = vpop.f32.mrb[24].mxu1  ;;  %v3974_v21 = vadd.f32 %v3973_v10, %v3933_v57  ;;  %v3975_v23 = vpop.f32.mrb[25].mxu0  ;;  %v487_v57 = vld [vmem:[#allocation7 + $0xa98] sm:$0xff]  ;;  %v7109_v20 = vcombine.low %v495_v4, %v499_v5 }
 0x28f   :  { %v4016_v13 = vpop.f32.mrb[25].mxu1  ;;  %v3976_v14 = vadd.f32 %v3975_v23, %v3935_v31  ;;  %v3977_v17 = vpop.f32.mrb[26].mxu0  ;;  %4356 = vmatpush1.bf16.msra.mxu0 %v7173_v25  ;;  %v599_v31 = vld [vmem:[#allocation7 + $0xe18] sm:$0xff]  ;;  %v7102_v1 = vcombine.high %v487_v57, %v491_v58  ;;  %v7101_v7 = vcombine.low %v487_v57, %v491_v58  ;;  %v7110_v25 = vcombine.high %v495_v4, %v499_v5  ;;  %v8673_v5 = vld [vmem:[#allocation10] sm:$0xff] }
 0x290   :  { %4319 = vmatpush1.bf16.msra.mxu1 %v7061_v2  ;;  %v4018_v18 = vpop.f32.mrb[26].mxu1  ;;  %v8668_v27 = vadd.f32 %v4014_v11, %v3974_v21  ;;  %v3978_v30 = vpop.f32.mrb[27].mxu0  ;;  %4357 = vmatprep.subr.bf16.mxu0 %v7182_v8  ;;  %v7214_v3 = vcombine.high %v599_v31, %v603_v59  ;;  %v607_v6 = vld [vmem:[#allocation7 + $0xe58] sm:$0xff]  ;;  %v7213_v2 = vcombine.low %v599_v31, %v603_v59 }
 0x291   :  { %v4019_v32 = vpop.f32.mrb[27].mxu1  ;;  %4320 = vmatprep.subr.bf16.mxu1 %v7070_v29  ;;  %v8670_v38 = vadd.f32 %v4016_v13, %v3976_v14  ;;  %v7222_v29 = vcombine.high %v607_v6, %v611_v22  ;;  %v503_v8 = vld [vmem:[#allocation7 + $0xb18] sm:$0xff]  ;;  %v7221_v12 = vcombine.low %v607_v6, %v611_v22 }
 0x292   :  { %v507_v60 = vld [vmem:[#allocation7 + $0xb38] sm:$0xff] }
 0x293   :  { %4358 = vmatpush1.bf16.msra.mxu0 %v7181_v24  ;;  %v615_v10 = vld [vmem:[#allocation7 + $0xe98] sm:$0xff]  ;;  %v7118_v16 = vcombine.high %v503_v8, %v507_v60  ;;  %v7117_v18 = vcombine.low %v503_v8, %v507_v60 }
 0x294   :  { %4321 = vmatpush1.bf16.msra.mxu1 %v7069_v19  ;;  %4359 = vmatprep.subr.bf16.mxu0 %v7190_v34  ;;  %v619_v11 = vld [vmem:[#allocation7 + $0xeb8] sm:$0xff] }
 0x295   :  { %4322 = vmatprep.subr.bf16.mxu1 %v7078_v33  ;;  %v7230_v21 = vcombine.high %v615_v10, %v619_v11  ;;  %v511_v23 = vld [vmem:[#allocation7 + $0xb58] sm:$0xff]  ;;  %v7229_v19 = vcombine.low %v615_v10, %v619_v11  ;;  %v7696_v11 = vld [vmem:[#allocation11 + $0xc] ss:$16 sps:$4 sm:$0xff]  }
 0x296   :  { %v515_v13 = vld [vmem:[#allocation7 + $0xb78] sm:$0xff] }
 0x297   :  { %4360 = vmatpush1.bf16.msra.mxu0 %v7189_v42  ;;  %v623_v14 = vld [vmem:[#allocation7 + $0xed8] sm:$0xff]  ;;  %v7126_v24 = vcombine.high %v511_v23, %v515_v13  ;;  %v7125_v46 = vcombine.low %v511_v23, %v515_v13  ;;  %v7702_v23 = vld [vmem:[#allocation11 + $0x2c] ss:$16 sps:$4 sm:$0xff]  }
 0x298   :  { %4323 = vmatpush1.bf16.msra.mxu1 %v7077_v41  ;;  %4361 = vmatprep.subr.bf16.mxu0 %v7198_v52  ;;  %v627_v17 = vld [vmem:[#allocation7 + $0xef8] sm:$0xff] }
 0x299   :  { %4324 = vmatprep.subr.bf16.mxu1 %v7086_v44  ;;  %v7238_v30 = vcombine.high %v623_v14, %v627_v17  ;;  %v519_v32 = vld [vmem:[#allocation7 + $0xb98] sm:$0xff]  ;;  %v7237_v39 = vcombine.low %v623_v14, %v627_v17  ;;  %v7708_v14 = vld [vmem:[#allocation11 + $0x4c] ss:$16 sps:$4 sm:$0xff]  }
 0x29a   :  { %v523_v33 = vld [vmem:[#allocation7 + $0xbb8] sm:$0xff] }
 0x29b   :  { %4362 = vmatpush1.bf16.msra.mxu0 %v7197_v55  ;;  %v631_v34 = vld [vmem:[#allocation7 + $0xf18] sm:$0xff]  ;;  %v7134_v40 = vcombine.high %v519_v32, %v523_v33  ;;  %v7133_v56 = vcombine.low %v519_v32, %v523_v33 }
 0x29c   :  { %4325 = vmatpush1.bf16.msra.mxu1 %v7085_v54  ;;  %4363 = vmatprep.subr.bf16.mxu0 %v7206_v62  ;;  %v635_v36 = vld [vmem:[#allocation7 + $0xf38] sm:$0xff] }
 0x29d   :  { %4326 = vmatprep.subr.bf16.mxu1 %v7094_v9  ;;  %v7246_v41 = vcombine.high %v631_v34, %v635_v36  ;;  %v527_v42 = vld [vmem:[#allocation7 + $0xbd8] sm:$0xff]  ;;  %v7245_v49 = vcombine.low %v631_v34, %v635_v36  ;;  %v7720_v34 = vld [vmem:[#allocation11 + $0x8c] ss:$16 sps:$4 sm:$0xff]  }
 0x29e   :  { %v531_v44 = vld [vmem:[#allocation7 + $0xbf8] sm:$0xff] }
 0x29f   :  { %4364 = vmatpush1.bf16.msra.mxu0 %v7205_v63  ;;  %v639_v52 = vld [vmem:[#allocation7 + $0xf58] sm:$0xff]  ;;  %v7142_v53 = vcombine.high %v527_v42, %v531_v44  ;;  %v7141_v58 = vcombine.low %v527_v42, %v531_v44  ;;  %v4439_v63 = vsub.s32 1, %v8539_v43 }
 0x2a0   :  { %4327 = vmatpush1.bf16.msra.mxu1 %v7093_v61  ;;  %4365 = vmatprep.subr.bf16.mxu0 %v7214_v3  ;;  %v643_v48 = vld [vmem:[#allocation7 + $0xf78] sm:$0xff] }
 0x2a1   :  { %4328 = vmatprep.subr.bf16.mxu1 %v7102_v1  ;;  %v7254_v54 = vcombine.high %v639_v52, %v643_v48  ;;  %v647_v55 = vld [vmem:[#allocation7 + $0xf98] sm:$0xff]  ;;  %v7253_v31 = vcombine.low %v639_v52, %v643_v48 }
 0x2a2   :  { %v651_v9 = vld [vmem:[#allocation7 + $0xfb8] sm:$0xff] }
 0x2a3   :  { %4366 = vmatpush1.bf16.msra.mxu0 %v7213_v2  ;;  %v663_v62 = vld [vmem:[#allocation7 + $0x1018] sm:$0xff]  ;;  %v7262_v59 = vcombine.high %v647_v55, %v651_v9  ;;  %v7261_v6 = vcombine.low %v647_v55, %v651_v9 }
 0x2a4   :  { %4329 = vmatpush1.bf16.msra.mxu1 %v7101_v7  ;;  %4367 = vmatprep.subr.bf16.mxu0 %v7222_v29  ;;  %v667_v57 = vld [vmem:[#allocation7 + $0x1038] sm:$0xff]  ;;  %v4440_v29 = vrot.slane %v8673_v5, %v4439_v63 }
 0x2a5   :  { %4330 = vmatprep.subr.bf16.mxu1 %v7110_v25  ;;  %v7278_v61 = vcombine.high %v663_v62, %v667_v57  ;;  %v655_v1 = vld [vmem:[#allocation7 + $0xfd8] sm:$0xff]  ;;  %v7277_v22 = vcombine.low %v663_v62, %v667_v57  ;;  %v7732_v62 = vld [vmem:[#allocation11 + $0xcc] ss:$16 sps:$4 sm:$0xff]  }
 0x2a6   :  { %v659_v3 = vld [vmem:[#allocation7 + $0xff8] sm:$0xff] }
 0x2a7   :  { %4368 = vmatpush1.bf16.msra.mxu0 %v7221_v12  ;;  %v671_v4 = vld [vmem:[#allocation7 + $0x1058] sm:$0x11]  ;;  %v7270_v7 = vcombine.high %v655_v1, %v659_v3  ;;  %v7269_v8 = vcombine.low %v655_v1, %v659_v3  ;;  %v7736_v1 = vld [vmem:[#allocation11 + $0xe8] ss:$16 sps:$4 sm:$0xff]  }
 0x2a8   :  { %4331 = vmatpush1.bf16.msra.mxu1 %v7109_v20  ;;  %4369 = vmatprep.subr.bf16.mxu0 %v7230_v21  ;;  %v7286_v2 = vcombine.high %v671_v4, %v671_v4  ;;  %v7285_v25 = vcombine.low %v671_v4, %v671_v4  ;;  %v7693_v10 = vld [vmem:[#allocation11 + $0x4] ss:$16 sps:$4 sm:$0xff]   ;;  %v4474_v20 = vadd.f32 %v4440_v29, %v8645_v28  ;;  %v7691_v12 = vld [vmem:[#allocation11] ss:$16 sps:$4 sm:$0xff]   ;;  %v7744_v4 = vld [vmem:[#allocation11 + $0x10c] ss:$16 sps:$4 sm:$0xff]  }
 0x2a9   :  { %4332 = vmatprep.subr.bf16.mxu1 %v7118_v16  ;;  %v7694_v16 = vld [vmem:[#allocation11 + $0x8] ss:$16 sps:$4 sm:$0xff]   ;;  %v7699_v21 = vld [vmem:[#allocation11 + $0x24] ss:$16 sps:$4 sm:$0xff]   ;;  %v7697_v13 = vld [vmem:[#allocation11 + $0x20] ss:$16 sps:$4 sm:$0xff]  }
 0x2aa   :  { %v3606_v60 = vsel %vm3586_vm2, %v7285_v25, 0  ;;  %v7705_v28 = vld [vmem:[#allocation11 + $0x44] ss:$16 sps:$4 sm:$0xff]   ;;  %v7703_v17 = vld [vmem:[#allocation11 + $0x40] ss:$16 sps:$4 sm:$0xff]  }
 0x2ab   :  { %4370 = vmatpush1.bf16.msra.mxu0 %v7229_v19  ;;  %v7711_v19 = vld [vmem:[#allocation11 + $0x64] ss:$16 sps:$4 sm:$0xff]   ;;  %v7715_v44 = vld [vmem:[#allocation11 + $0x80] ss:$16 sps:$4 sm:$0xff]   ;;  %v7748_v29 = vld [vmem:[#allocation11 + $0x128] ss:$16 sps:$4 sm:$0xff]  }
 0x2ac   :  { %4333 = vmatpush1.bf16.msra.mxu1 %v7117_v18  ;;  %4371 = vmatprep.subr.bf16.mxu0 %v7238_v30  ;;  %v7706_v18 = vld [vmem:[#allocation11 + $0x48] ss:$16 sps:$4 sm:$0xff]   ;;  %v7717_v30 = vld [vmem:[#allocation11 + $0x84] ss:$16 sps:$4 sm:$0xff]   ;;  %v7721_v55 = vld [vmem:[#allocation11 + $0xa0] ss:$16 sps:$4 sm:$0xff]  }
 0x2ad   :  { %4334 = vmatprep.subr.bf16.mxu1 %v7126_v24  ;;  %v7712_v24 = vld [vmem:[#allocation11 + $0x68] ss:$16 sps:$4 sm:$0xff]   ;;  %v7729_v9 = vld [vmem:[#allocation11 + $0xc4] ss:$16 sps:$4 sm:$0xff]   ;;  %v7727_v57 = vld [vmem:[#allocation11 + $0xc0] ss:$16 sps:$4 sm:$0xff]  }
 0x2ae   :  { %v7741_v3 = vld [vmem:[#allocation11 + $0x104] ss:$16 sps:$4 sm:$0xff]   ;;  %v7745_v25 = vld [vmem:[#allocation11 + $0x120] ss:$16 sps:$4 sm:$0xff]  }
 0x2af   :  { %4372 = vmatpush1.bf16.msra.mxu0 %v7237_v39 }
 0x2b0   :  { %4335 = vmatpush1.bf16.msra.mxu1 %v7125_v46  ;;  %4373 = vmatprep.subr.bf16.mxu0 %v7246_v41 }
 0x2b1   :  { %4336 = vmatprep.subr.bf16.mxu1 %v7134_v40 }
 0x2b3   :  { %4374 = vmatpush1.bf16.msra.mxu0 %v7245_v49  ;;  %v7718_v49 = vld [vmem:[#allocation11 + $0x88] ss:$16 sps:$4 sm:$0xff]  }
 0x2b4   :  { %4337 = vmatpush1.bf16.msra.mxu1 %v7133_v56  ;;  %4375 = vmatprep.subr.bf16.mxu0 %v7254_v54 }
 0x2b5   :  { %4338 = vmatprep.subr.bf16.mxu1 %v7142_v53  ;;  %v7723_v53 = vld [vmem:[#allocation11 + $0xa4] ss:$16 sps:$4 sm:$0xff]  }
 0x2b7   :  { %4376 = vmatpush1.bf16.msra.mxu0 %v7253_v31  ;;  %v7735_v31 = vld [vmem:[#allocation11 + $0xe4] ss:$16 sps:$4 sm:$0xff]  }
 0x2b8   :  { %4339 = vmatpush1.bf16.msra.mxu1 %v7141_v58  ;;  %4377 = vmatprep.subr.bf16.mxu0 %v7262_v59  ;;  %v7730_v58 = vld [vmem:[#allocation11 + $0xc8] ss:$16 sps:$4 sm:$0xff]   ;;  %v7738_v59 = vld [vmem:[#allocation11 + $0xec] ss:$16 sps:$4 sm:$0xff]  }
 0x2b9   :  { %4390 = vmatprep.subr.bf16.mxu1 %v7278_v61  ;;  %v7733_v61 = vld [vmem:[#allocation11 + $0xe0] ss:$16 sps:$4 sm:$0xff]  }
 0x2bb   :  { %4341 = vmatmul.mubr.bf16.vlgmr.msra.gmra.mrb[40].mxu1 %v8563_v35  ;;  %4378 = vmatpush1.bf16.msra.mxu0 %v7261_v6  ;;  %v4482_v35 = vpack.c.bf16 %v4474_v20, %v4474_v20  ;;  %v7739_v6 = vld [vmem:[#allocation11 + $0x100] ss:$16 sps:$4 sm:$0xff]   ;;  %v7759_v20 = vld [vmem:[#allocation11 + $0x164] ss:$16 sps:$4 sm:$0xff]  }
 0x2bc   :  { %4391 = vmatpush1.bf16.msra.mxu1 %v7277_v22  ;;  %4379 = vmatprep.subr.bf16.mxu0 %v7270_v7  ;;  %v7742_v22 = vld [vmem:[#allocation11 + $0x108] ss:$16 sps:$4 sm:$0xff]   ;;  %v7747_v7 = vld [vmem:[#allocation11 + $0x124] ss:$16 sps:$4 sm:$0xff]  }
 0x2bd   :  { %7293 = vmatprep.subr.msk.bf16.mxu1 %vm3586_vm2, %v7286_v2  ;;  %4422 = vmatprep.mubr.bf16.mxu1 %v8355_v0  ;;  %v7700_v0 = vld [vmem:[#allocation11 + $0x28] ss:$16 sps:$4 sm:$0xff]   ;;  %v7750_v2 = vld [vmem:[#allocation11 + $0x12c] ss:$16 sps:$4 sm:$0xff]  }
 0x2bf   :  { %4380 = vmatpush1.bf16.msra.mxu0 %v7269_v8  ;;  %v7753_v8 = vld [vmem:[#allocation11 + $0x144] ss:$16 sps:$4 sm:$0xff]  }
 0x2c0   :  { %4393 = vmatpush1.bf16.msra.mxu1 %v3606_v60  ;;  %6047 = vmatprep.subr.bf16.mxu0 %v7693_v10  ;;  %v7756_v60 = vld [vmem:[#allocation11 + $0x14c] ss:$16 sps:$4 sm:$0xff]   ;;  %v7751_v10 = vld [vmem:[#allocation11 + $0x140] ss:$16 sps:$4 sm:$0xff]  }
 0x2c1   :  { %6211 = vmatprep.subr.bf16.mxu1 %v7696_v11  ;;  %v7754_v11 = vld [vmem:[#allocation11 + $0x148] ss:$16 sps:$4 sm:$0xff]  }
 0x2c2   :  { %4382 = vmatmul.mubr.bf16.vlgmr.msra.gmra.mrb[44].mxu0 %v8588_v15  ;;  %v7714_v15 = vld [vmem:[#allocation11 + $0x6c] ss:$16 sps:$4 sm:$0xff]  }
 0x2c3   :  { %7294 = vmatmul.mubr.msk.bf16.vlgmr.msra.gmra.mrb[44].mxu1 %vm3582_vm3, %v8597_v37  ;;  %6048 = vmatpush1.bf16.msra.mxu0 %v7691_v12  ;;  %v7709_v37 = vld [vmem:[#allocation11 + $0x60] ss:$16 sps:$4 sm:$0xff]   ;;  %v7762_v12 = vld [vmem:[#allocation11 + $0x16c] ss:$16 sps:$4 sm:$0xff]  }
 0x2c4   :  { %6079 = vmatprep.mubr.bf16.mxu0 %v4482_v35  ;;  %6212 = vmatpush1.bf16.msra.mxu1 %v7694_v16  ;;  %v7757_v16 = vld [vmem:[#allocation11 + $0x160] ss:$16 sps:$4 sm:$0xff]  }
 0x2c5   :  { %6243 = vmatprep.mubr.bf16.mxu1 %v4482_v35  ;;  %6049 = vmatprep.subr.bf16.mxu0 %v7699_v21  ;;  %v7760_v35 = vld [vmem:[#allocation11 + $0x168] ss:$16 sps:$4 sm:$0xff]   ;;  %v7765_v21 = vld [vmem:[#allocation11 + $0x184] ss:$16 sps:$4 sm:$0xff]  }
 0x2c6   :  { %6213 = vmatprep.subr.bf16.mxu1 %v7702_v23  ;;  %v7768_v23 = vld [vmem:[#allocation11 + $0x18c] ss:$16 sps:$4 sm:$0xff]  }
 0x2c7   :  { %6050 = vmatpush1.bf16.msra.mxu0 %v7697_v13  ;;  %v7763_v13 = vld [vmem:[#allocation11 + $0x180] ss:$16 sps:$4 sm:$0xff]  }
 0x2c8   :  { %6214 = vmatpush1.bf16.msra.mxu1 %v7700_v0  ;;  %6051 = vmatprep.subr.bf16.mxu0 %v7705_v28  ;;  %v7766_v0 = vld [vmem:[#allocation11 + $0x188] ss:$16 sps:$4 sm:$0xff]   ;;  %v7771_v28 = vld [vmem:[#allocation11 + $0x1a4] ss:$16 sps:$4 sm:$0xff]  }
 0x2c9   :  { %6215 = vmatprep.subr.bf16.mxu1 %v7708_v14  ;;  %v7774_v14 = vld [vmem:[#allocation11 + $0x1ac] ss:$16 sps:$4 sm:$0xff]  }
 0x2cb   :  { %6052 = vmatpush1.bf16.msra.mxu0 %v7703_v17  ;;  %v7769_v17 = vld [vmem:[#allocation11 + $0x1a0] ss:$16 sps:$4 sm:$0xff]  }
 0x2cc   :  { %6216 = vmatpush1.bf16.msra.mxu1 %v7706_v18  ;;  %6053 = vmatprep.subr.bf16.mxu0 %v7711_v19  ;;  %v4435_v18 = vsub.s32 0, %v8539_v43  ;;  %v7772_v19 = vld [vmem:[#allocation11 + $0x1a8] ss:$16 sps:$4 sm:$0xff]  }
 0x2cd   :  { %v4055_v32 = vpop.f32.mrb[28].mxu0  ;;  %6217 = vmatprep.subr.bf16.mxu1 %v7714_v15  ;;  %v7777_v15 = vld [vmem:[#allocation11 + $0x1c4] ss:$16 sps:$4 sm:$0xff]  }
 0x2ce   :  { %v4096_v33 = vpop.f32.mrb[28].mxu1  ;;  %v4056_v36 = vadd.f32 %v4055_v32, %v8614_v45  ;;  %v4057_v46 = vpop.f32.mrb[29].mxu0  ;;  %v7726_v45 = vld [vmem:[#allocation11 + $0xac] ss:$16 sps:$4 sm:$0xff]   ;;  %v4436_v32 = vrot.slane %v8673_v5, %v4435_v18 }
 0x2cf   :  { %v4098_v39 = vpop.f32.mrb[29].mxu1  ;;  %v4058_v40 = vadd.f32 %v4057_v46, %v8618_v50  ;;  %v4059_v41 = vpop.f32.mrb[30].mxu0  ;;  %6054 = vmatpush1.bf16.msra.mxu0 %v7709_v37  ;;  %v7724_v50 = vld [vmem:[#allocation11 + $0xa8] ss:$16 sps:$4 sm:$0xff]   ;;  %v7780_v37 = vld [vmem:[#allocation11 + $0x1cc] ss:$16 sps:$4 sm:$0xff]  }
 0x2d0   :  { %v4100_v42 = vpop.f32.mrb[30].mxu1  ;;  %v8688_v52 = vadd.f32 %v4096_v33, %v4056_v36  ;;  %6218 = vmatpush1.bf16.msra.mxu1 %v7712_v24  ;;  %v4060_v48 = vpop.f32.mrb[31].mxu0  ;;  %6055 = vmatprep.subr.bf16.mxu0 %v7717_v30  ;;  %v4447_v24 = vsub.s32 3, %v8539_v43  ;;  %v7775_v30 = vld [vmem:[#allocation11 + $0x1c0] ss:$16 sps:$4 sm:$0xff]  }
 0x2d1   :  { %v4101_v56 = vpop.f32.mrb[31].mxu1  ;;  %v8690_v54 = vadd.f32 %v4098_v39, %v4058_v40  ;;  %6219 = vmatprep.subr.bf16.mxu1 %v7720_v34  ;;  %v7778_v33 = vld [vmem:[#allocation11 + $0x1c8] ss:$16 sps:$4 sm:$0xff]   ;;  %v7783_v34 = vld [vmem:[#allocation11 + $0x1e4] ss:$16 sps:$4 sm:$0xff]   ;;  %v4473_v40 = vadd.f32 %v4436_v32, %v8643_v26 }
 0x2d2   :  { %v7786_v36 = vld [vmem:[#allocation11 + $0x1ec] ss:$16 sps:$4 sm:$0xff]   ;;  %v4448_v46 = vrot.slane %v8673_v5, %v4447_v24  ;;  %v7781_v39 = vld [vmem:[#allocation11 + $0x1e0] ss:$16 sps:$4 sm:$0xff]   ;;  %v7784_v41 = vld [vmem:[#allocation11 + $0x1e8] ss:$16 sps:$4 sm:$0xff]  }
 0x2d3   :  { %6056 = vmatpush1.bf16.msra.mxu0 %v7715_v44  ;;  %v7789_v42 = vld [vmem:[#allocation11 + $0x204] ss:$16 sps:$4 sm:$0xff]   ;;  %v7792_v44 = vld [vmem:[#allocation11 + $0x20c] ss:$16 sps:$4 sm:$0xff]   ;;  %v7787_v56 = vld [vmem:[#allocation11 + $0x200] ss:$16 sps:$4 sm:$0xff]  }
 0x2d4   :  { %6220 = vmatpush1.bf16.msra.mxu1 %v7718_v49  ;;  %6057 = vmatprep.subr.bf16.mxu0 %v7723_v53  ;;  %v4476_v48 = vadd.f32 %v4448_v46, %v8670_v38  ;;  %v4481_v49 = vpack.c.bf16 %v4473_v40, %v4473_v40  ;;  %v7790_v53 = vld [vmem:[#allocation11 + $0x208] ss:$16 sps:$4 sm:$0xff]   ;;  %v7793_v26 = vld [vmem:[#allocation11 + $0x220] ss:$16 sps:$4 sm:$0xff]   ;;  %v7804_v38 = vld [vmem:[#allocation11 + $0x24c] ss:$16 sps:$4 sm:$0xff]  }
 0x2d5   :  { %6221 = vmatprep.subr.bf16.mxu1 %v7726_v45  ;;  %v7795_v45 = vld [vmem:[#allocation11 + $0x224] ss:$16 sps:$4 sm:$0xff]   ;;  %v7826_v32 = vld [vmem:[#allocation11 + $0x2c8] ss:$16 sps:$4 sm:$0xff]   ;;  %v7840_v40 = vld [vmem:[#allocation11 + $0x30c] ss:$16 sps:$4 sm:$0xff]  }
 0x2d6   :  { %v7832_v46 = vld [vmem:[#allocation11 + $0x2e8] ss:$16 sps:$4 sm:$0xff]  }
 0x2d7   :  { %6058 = vmatpush1.bf16.msra.mxu0 %v7721_v55  ;;  %v4484_v55 = vpack.c.bf16 %v4476_v48, %v4476_v48  ;;  %v7846_v48 = vld [vmem:[#allocation11 + $0x32c] ss:$16 sps:$4 sm:$0xff]  }
 0x2d8   :  { %6222 = vmatpush1.bf16.msra.mxu1 %v7724_v50  ;;  %6059 = vmatprep.subr.bf16.mxu0 %v7729_v9  ;;  %v7798_v50 = vld [vmem:[#allocation11 + $0x22c] ss:$16 sps:$4 sm:$0xff]   ;;  %v7796_v9 = vld [vmem:[#allocation11 + $0x228] ss:$16 sps:$4 sm:$0xff]  }
 0x2d9   :  { %6223 = vmatprep.subr.bf16.mxu1 %v7732_v62  ;;  %v7801_v62 = vld [vmem:[#allocation11 + $0x244] ss:$16 sps:$4 sm:$0xff]  }
 0x2db   :  { %6060 = vmatpush1.bf16.msra.mxu0 %v7727_v57  ;;  %v7799_v57 = vld [vmem:[#allocation11 + $0x240] ss:$16 sps:$4 sm:$0xff]  }
 0x2dc   :  { %6224 = vmatpush1.bf16.msra.mxu1 %v7730_v58  ;;  %6061 = vmatprep.subr.bf16.mxu0 %v7735_v31  ;;  %v7802_v58 = vld [vmem:[#allocation11 + $0x248] ss:$16 sps:$4 sm:$0xff]   ;;  %v7807_v31 = vld [vmem:[#allocation11 + $0x264] ss:$16 sps:$4 sm:$0xff]  }
 0x2dd   :  { %6225 = vmatprep.subr.bf16.mxu1 %v7738_v59  ;;  %v7810_v59 = vld [vmem:[#allocation11 + $0x26c] ss:$16 sps:$4 sm:$0xff]  }
 0x2df   :  { %6062 = vmatpush1.bf16.msra.mxu0 %v7733_v61  ;;  %v7805_v61 = vld [vmem:[#allocation11 + $0x260] ss:$16 sps:$4 sm:$0xff]  }
 0x2e0   :  { %6226 = vmatpush1.bf16.msra.mxu1 %v7736_v1  ;;  %6063 = vmatprep.subr.bf16.mxu0 %v7741_v3  ;;  %v7808_v1 = vld [vmem:[#allocation11 + $0x268] ss:$16 sps:$4 sm:$0xff]   ;;  %v7813_v3 = vld [vmem:[#allocation11 + $0x284] ss:$16 sps:$4 sm:$0xff]  }
 0x2e1   :  { %6227 = vmatprep.subr.bf16.mxu1 %v7744_v4 }
 0x2e3   :  { %6064 = vmatpush1.bf16.msra.mxu0 %v7739_v6 }
 0x2e4   :  { %6228 = vmatpush1.bf16.msra.mxu1 %v7742_v22  ;;  %6065 = vmatprep.subr.bf16.mxu0 %v7747_v7  ;;  %v7816_v22 = vld [vmem:[#allocation11 + $0x28c] ss:$16 sps:$4 sm:$0xff]  }
 0x2e5   :  { %6229 = vmatprep.subr.bf16.mxu1 %v7750_v2 }
 0x2e7   :  { %6066 = vmatpush1.bf16.msra.mxu0 %v7745_v25 }
 0x2e8   :  { %6230 = vmatpush1.bf16.msra.mxu1 %v7748_v29  ;;  %6067 = vmatprep.subr.bf16.mxu0 %v7753_v8 }
 0x2e9   :  { %6231 = vmatprep.subr.bf16.mxu1 %v7756_v60 }
 0x2eb   :  { %6068 = vmatpush1.bf16.msra.mxu0 %v7751_v10  ;;  %v7811_v10 = vld [vmem:[#allocation11 + $0x280] ss:$16 sps:$4 sm:$0xff]  }
 0x2ec   :  { %6232 = vmatpush1.bf16.msra.mxu1 %v7754_v11  ;;  %6069 = vmatprep.subr.bf16.mxu0 %v7759_v20 }
 0x2ed   :  { %6233 = vmatprep.subr.bf16.mxu1 %v7762_v12 }
 0x2ef   :  { %6070 = vmatpush1.bf16.msra.mxu0 %v7757_v16  ;;  %v7814_v16 = vld [vmem:[#allocation11 + $0x288] ss:$16 sps:$4 sm:$0xff]  }
 0x2f0   :  { %6234 = vmatpush1.bf16.msra.mxu1 %v7760_v35  ;;  %6071 = vmatprep.subr.bf16.mxu0 %v7765_v21  ;;  %v7819_v35 = vld [vmem:[#allocation11 + $0x2a4] ss:$16 sps:$4 sm:$0xff]  }
 0x2f1   :  { %6235 = vmatprep.subr.bf16.mxu1 %v7768_v23  ;;  %v7822_v23 = vld [vmem:[#allocation11 + $0x2ac] ss:$16 sps:$4 sm:$0xff]  }
 0x2f3   :  { %6072 = vmatpush1.bf16.msra.mxu0 %v7763_v13  ;;  %v7820_v13 = vld [vmem:[#allocation11 + $0x2a8] ss:$16 sps:$4 sm:$0xff]  }
 0x2f4   :  { %6236 = vmatpush1.bf16.msra.mxu1 %v7766_v0  ;;  %6073 = vmatprep.subr.bf16.mxu0 %v7771_v28  ;;  %v7828_v28 = vld [vmem:[#allocation11 + $0x2cc] ss:$16 sps:$4 sm:$0xff]  }
 0x2f5   :  { %6237 = vmatprep.subr.bf16.mxu1 %v7774_v14 }
 0x2f7   :  { %6074 = vmatpush1.bf16.msra.mxu0 %v7769_v17 }
 0x2f8   :  { %6238 = vmatpush1.bf16.msra.mxu1 %v7772_v19  ;;  %6075 = vmatprep.subr.bf16.mxu0 %v7777_v15 }
 0x2f9   :  { %6239 = vmatprep.subr.bf16.mxu1 %v7780_v37  ;;  %v7823_v37 = vld [vmem:[#allocation11 + $0x2c0] ss:$16 sps:$4 sm:$0xff]  }
 0x2fb   :  { %6076 = vmatpush1.bf16.msra.mxu0 %v7775_v30 }
 0x2fc   :  { %6240 = vmatpush1.bf16.msra.mxu1 %v7778_v33  ;;  %6077 = vmatprep.subr.bf16.mxu0 %v7783_v34  ;;  %v7831_v33 = vld [vmem:[#allocation11 + $0x2e4] ss:$16 sps:$4 sm:$0xff]   ;;  %v7834_v34 = vld [vmem:[#allocation11 + $0x2ec] ss:$16 sps:$4 sm:$0xff]  }
 0x2fd   :  { %6241 = vmatprep.subr.bf16.mxu1 %v7786_v36  ;;  %v7829_v36 = vld [vmem:[#allocation11 + $0x2e0] ss:$16 sps:$4 sm:$0xff]  }
 0x2ff   :  { %6078 = vmatpush1.bf16.msra.mxu0 %v7781_v39  ;;  %v7837_v39 = vld [vmem:[#allocation11 + $0x304] ss:$16 sps:$4 sm:$0xff]  }
 0x300   :  { %6242 = vmatpush1.bf16.msra.mxu1 %v7784_v41  ;;  %6088 = vmatprep.subr.bf16.mxu0 %v7789_v42  ;;  %v7835_v41 = vld [vmem:[#allocation11 + $0x300] ss:$16 sps:$4 sm:$0xff]   ;;  %v7838_v42 = vld [vmem:[#allocation11 + $0x308] ss:$16 sps:$4 sm:$0xff]  }
 0x301   :  { %6252 = vmatprep.subr.bf16.mxu1 %v7792_v44  ;;  %v7843_v44 = vld [vmem:[#allocation11 + $0x324] ss:$16 sps:$4 sm:$0xff]  }
 0x302   :  { %6080 = vmatmul.mubr.bf16.vlgmr.msra.gmra.mrb[48].mxu0 %v4481_v49 }
 0x303   :  { %6244 = vmatmul.mubr.bf16.vlgmr.msra.gmra.mrb[48].mxu1 %v4481_v49  ;;  %6089 = vmatpush1.bf16.msra.mxu0 %v7787_v56  ;;  %v7841_v56 = vld [vmem:[#allocation11 + $0x320] ss:$16 sps:$4 sm:$0xff]   ;;  %v7844_v49 = vld [vmem:[#allocation11 + $0x328] ss:$16 sps:$4 sm:$0xff]  }
 0x304   :  { %6120 = vmatprep.mubr.bf16.mxu0 %v4484_v55  ;;  %6253 = vmatpush1.bf16.msra.mxu1 %v7790_v53  ;;  %v7849_v53 = vld [vmem:[#allocation11 + $0x344] ss:$16 sps:$4 sm:$0xff]  }
 0x305   :  { %6284 = vmatprep.mubr.bf16.mxu1 %v4484_v55  ;;  %6090 = vmatprep.subr.bf16.mxu0 %v7795_v45  ;;  %v7852_v45 = vld [vmem:[#allocation11 + $0x34c] ss:$16 sps:$4 sm:$0xff]   ;;  %v7847_v55 = vld [vmem:[#allocation11 + $0x340] ss:$16 sps:$4 sm:$0xff]  }
 0x306   :  { %6254 = vmatprep.subr.bf16.mxu1 %v7798_v50  ;;  %v7850_v50 = vld [vmem:[#allocation11 + $0x348] ss:$16 sps:$4 sm:$0xff]  }
 0x307   :  { %6091 = vmatpush1.bf16.msra.mxu0 %v7793_v26  ;;  %v7855_v26 = vld [vmem:[#allocation11 + $0x364] ss:$16 sps:$4 sm:$0xff]  }
 0x308   :  { %6255 = vmatpush1.bf16.msra.mxu1 %v7796_v9  ;;  %6092 = vmatprep.subr.bf16.mxu0 %v7801_v62  ;;  %v7858_v9 = vld [vmem:[#allocation11 + $0x36c] ss:$16 sps:$4 sm:$0xff]   ;;  %v7853_v62 = vld [vmem:[#allocation11 + $0x360] ss:$16 sps:$4 sm:$0xff]  }
 0x309   :  { %6256 = vmatprep.subr.bf16.mxu1 %v7804_v38  ;;  %v7856_v38 = vld [vmem:[#allocation11 + $0x368] ss:$16 sps:$4 sm:$0xff]  }
 0x30b   :  { %6093 = vmatpush1.bf16.msra.mxu0 %v7799_v57  ;;  %v7861_v57 = vld [vmem:[#allocation11 + $0x384] ss:$16 sps:$4 sm:$0xff]  }
 0x30c   :  { %6257 = vmatpush1.bf16.msra.mxu1 %v7802_v58  ;;  %6094 = vmatprep.subr.bf16.mxu0 %v7807_v31  ;;  %v7864_v58 = vld [vmem:[#allocation11 + $0x38c] ss:$16 sps:$4 sm:$0xff]   ;;  %v7859_v31 = vld [vmem:[#allocation11 + $0x380] ss:$16 sps:$4 sm:$0xff]  }
 0x30d   :  { %v4137_v4 = vpop.f32.mrb[32].mxu0  ;;  %6258 = vmatprep.subr.bf16.mxu1 %v7810_v59  ;;  %v7862_v59 = vld [vmem:[#allocation11 + $0x388] ss:$16 sps:$4 sm:$0xff]  }
 0x30e   :  { %v4178_v6 = vpop.f32.mrb[32].mxu1  ;;  %v4138_v7 = vadd.f32 %v4137_v4, %v8688_v52  ;;  %v4139_v2 = vpop.f32.mrb[33].mxu0  ;;  %v7817_v52 = vld [vmem:[#allocation11 + $0x2a0] ss:$16 sps:$4 sm:$0xff]   ;;  %v4443_v4 = vsub.s32 2, %v8539_v43 }
 0x30f   :  { %v4180_v25 = vpop.f32.mrb[33].mxu1  ;;  %v4140_v29 = vadd.f32 %v4139_v2, %v8690_v54  ;;  %v4141_v8 = vpop.f32.mrb[34].mxu0  ;;  %6095 = vmatpush1.bf16.msra.mxu0 %v7805_v61  ;;  %v7825_v54 = vld [vmem:[#allocation11 + $0x2c4] ss:$16 sps:$4 sm:$0xff]   ;;  %v4455_v2 = vsub.s32 5, %v8539_v43 }
 0x310   :  { %v4182_v60 = vpop.f32.mrb[34].mxu1  ;;  %v4179_v11 = vadd.f32 %v4178_v6, %v4138_v7  ;;  %6259 = vmatpush1.bf16.msra.mxu1 %v7808_v1  ;;  %v4142_v20 = vpop.f32.mrb[35].mxu0  ;;  %6096 = vmatprep.subr.bf16.mxu0 %v7813_v3  ;;  %v7867_v61 = vld [vmem:[#allocation11 + $0x3a4] ss:$16 sps:$4 sm:$0xff]   ;;  %v7870_v1 = vld [vmem:[#allocation11 + $0x3ac] ss:$16 sps:$4 sm:$0xff]  }
 0x311   :  { %v4183_v12 = vpop.f32.mrb[35].mxu1  ;;  %v4181_v21 = vadd.f32 %v4180_v25, %v4140_v29  ;;  %6260 = vmatprep.subr.bf16.mxu1 %v7816_v22  ;;  %v7865_v3 = vld [vmem:[#allocation11 + $0x3a0] ss:$16 sps:$4 sm:$0xff]   ;;  %v7868_v6 = vld [vmem:[#allocation11 + $0x3a8] ss:$16 sps:$4 sm:$0xff]   ;;  %v4444_v29 = vrot.slane %v8673_v5, %v4443_v4 }
 0x312   :  { %v7873_v22 = vld [vmem:[#allocation11 + $0x3c4] ss:$16 sps:$4 sm:$0xff]   ;;  %v7876_v7 = vld [vmem:[#allocation11 + $0x3cc] ss:$16 sps:$4 sm:$0xff]   ;;  %v7871_v25 = vld [vmem:[#allocation11 + $0x3c0] ss:$16 sps:$4 sm:$0xff]  }
 0x313   :  { %6097 = vmatpush1.bf16.msra.mxu0 %v7811_v10  ;;  %v7874_v8 = vld [vmem:[#allocation11 + $0x3c8] ss:$16 sps:$4 sm:$0xff]   ;;  %v7879_v60 = vld [vmem:[#allocation11 + $0x3e4] ss:$16 sps:$4 sm:$0xff]   ;;  %v7882_v10 = vld [vmem:[#allocation11 + $0x3ec] ss:$16 sps:$4 sm:$0xff]   ;;  %v4475_v12 = vadd.f32 %v4444_v29, %v8668_v27 }
 0x314   :  { %6261 = vmatpush1.bf16.msra.mxu1 %v7814_v16  ;;  %6098 = vmatprep.subr.bf16.mxu0 %v7819_v35  ;;  %v7877_v20 = vld [vmem:[#allocation11 + $0x3e0] ss:$16 sps:$4 sm:$0xff]   ;;  %v7880_v16 = vld [vmem:[#allocation11 + $0x3e8] ss:$16 sps:$4 sm:$0xff]   ;;  %v7885_v35 = vld [vmem:[#allocation11 + $0x404] ss:$16 sps:$4 sm:$0xff]  }
 0x315   :  { %v4219_v0 = vpop.f32.mrb[36].mxu0  ;;  %6262 = vmatprep.subr.bf16.mxu1 %v7822_v23  ;;  %v7889_v27 = vld [vmem:[#allocation11 + $0x420] ss:$16 sps:$4 sm:$0xff]  }
 0x316   :  { %v8704_v14 = vadd.f32 %v4219_v0, %v4179_v11  ;;  %v4221_v17 = vpop.f32.mrb[37].mxu0  ;;  %v4456_v11 = vrot.slane %v8673_v5, %v4455_v2  ;;  %v7891_v0 = vld [vmem:[#allocation11 + $0x424] ss:$16 sps:$4 sm:$0xff]   ;;  %v7931_v29 = vld [vmem:[#allocation11 + $0x500] ss:$16 sps:$4 sm:$0xff]  }
 0x317   :  { %v8706_v19 = vadd.f32 %v4221_v17, %v4181_v21  ;;  %v4223_v15 = vpop.f32.mrb[38].mxu0  ;;  %6099 = vmatpush1.bf16.msra.mxu0 %v7817_v52  ;;  %v7888_v21 = vld [vmem:[#allocation11 + $0x40c] ss:$16 sps:$4 sm:$0xff]   ;;  %v7883_v52 = vld [vmem:[#allocation11 + $0x400] ss:$16 sps:$4 sm:$0xff]  }
 0x318   :  { %6263 = vmatpush1.bf16.msra.mxu1 %v7820_v13  ;;  %v4224_v30 = vpop.f32.mrb[39].mxu0  ;;  %6100 = vmatprep.subr.bf16.mxu0 %v7825_v54  ;;  %v4483_v13 = vpack.c.bf16 %v4475_v12, %v4475_v12  ;;  %v7886_v54 = vld [vmem:[#allocation11 + $0x408] ss:$16 sps:$4 sm:$0xff]   ;;  %v7894_v17 = vld [vmem:[#allocation11 + $0x42c] ss:$16 sps:$4 sm:$0xff]  }
 0x319   :  { %6264 = vmatprep.subr.bf16.mxu1 %v7828_v28  ;;  %v4478_v23 = vadd.f32 %v4456_v11, %v8706_v19  ;;  %v7892_v15 = vld [vmem:[#allocation11 + $0x428] ss:$16 sps:$4 sm:$0xff]   ;;  %v7900_v19 = vld [vmem:[#allocation11 + $0x44c] ss:$16 sps:$4 sm:$0xff]   ;;  %v7895_v30 = vld [vmem:[#allocation11 + $0x440] ss:$16 sps:$4 sm:$0xff]  }
 0x31a   :  { %v7933_v2 = vld [vmem:[#allocation11 + $0x504] ss:$16 sps:$4 sm:$0xff]   ;;  %v7937_v11 = vld [vmem:[#allocation11 + $0x520] ss:$16 sps:$4 sm:$0xff]  }
 0x31b   :  { %6101 = vmatpush1.bf16.msra.mxu0 %v7823_v37  ;;  %v4486_v28 = vpack.c.bf16 %v4478_v23, %v4478_v23  ;;  %v7897_v37 = vld [vmem:[#allocation11 + $0x444] ss:$16 sps:$4 sm:$0xff]  }
 0x31c   :  { %6265 = vmatpush1.bf16.msra.mxu1 %v7826_v32  ;;  %6102 = vmatprep.subr.bf16.mxu0 %v7831_v33  ;;  %v7898_v32 = vld [vmem:[#allocation11 + $0x448] ss:$16 sps:$4 sm:$0xff]   ;;  %v7903_v33 = vld [vmem:[#allocation11 + $0x464] ss:$16 sps:$4 sm:$0xff]  }
 0x31d   :  { %6266 = vmatprep.subr.bf16.mxu1 %v7834_v34  ;;  %v7906_v34 = vld [vmem:[#allocation11 + $0x46c] ss:$16 sps:$4 sm:$0xff]   ;;  %v7945_v12 = vld [vmem:[#allocation11 + $0x544] ss:$16 sps:$4 sm:$0xff]  }
 0x31e   :  { %v7951_v23 = vld [vmem:[#allocation11 + $0x564] ss:$16 sps:$4 sm:$0xff]  }
 0x31f   :  { %6103 = vmatpush1.bf16.msra.mxu0 %v7829_v36  ;;  %v7901_v36 = vld [vmem:[#allocation11 + $0x460] ss:$16 sps:$4 sm:$0xff]  }
 0x320   :  { %6267 = vmatpush1.bf16.msra.mxu1 %v7832_v46  ;;  %6104 = vmatprep.subr.bf16.mxu0 %v7837_v39  ;;  %v7904_v46 = vld [vmem:[#allocation11 + $0x468] ss:$16 sps:$4 sm:$0xff]   ;;  %v7909_v39 = vld [vmem:[#allocation11 + $0x484] ss:$16 sps:$4 sm:$0xff]  }
 0x321   :  { %6268 = vmatprep.subr.bf16.mxu1 %v7840_v40 }
 0x323   :  { %6105 = vmatpush1.bf16.msra.mxu0 %v7835_v41  ;;  %v7912_v41 = vld [vmem:[#allocation11 + $0x48c] ss:$16 sps:$4 sm:$0xff]  }
 0x324   :  { %6269 = vmatpush1.bf16.msra.mxu1 %v7838_v42  ;;  %6106 = vmatprep.subr.bf16.mxu0 %v7843_v44 }
 0x325   :  { %6270 = vmatprep.subr.bf16.mxu1 %v7846_v48 }
 0x327   :  { %6107 = vmatpush1.bf16.msra.mxu0 %v7841_v56 }
 0x328   :  { %6271 = vmatpush1.bf16.msra.mxu1 %v7844_v49  ;;  %6108 = vmatprep.subr.bf16.mxu0 %v7849_v53  ;;  %v7907_v49 = vld [vmem:[#allocation11 + $0x480] ss:$16 sps:$4 sm:$0xff]  }
 0x329   :  { %6272 = vmatprep.subr.bf16.mxu1 %v7852_v45  ;;  %v7910_v45 = vld [vmem:[#allocation11 + $0x488] ss:$16 sps:$4 sm:$0xff]  }
 0x32b   :  { %6109 = vmatpush1.bf16.msra.mxu0 %v7847_v55  ;;  %v7915_v55 = vld [vmem:[#allocation11 + $0x4a4] ss:$16 sps:$4 sm:$0xff]  }
 0x32c   :  { %6273 = vmatpush1.bf16.msra.mxu1 %v7850_v50  ;;  %6110 = vmatprep.subr.bf16.mxu0 %v7855_v26  ;;  %v7918_v50 = vld [vmem:[#allocation11 + $0x4ac] ss:$16 sps:$4 sm:$0xff]   ;;  %v7913_v26 = vld [vmem:[#allocation11 + $0x4a0] ss:$16 sps:$4 sm:$0xff]  }
 0x32d   :  { %6274 = vmatprep.subr.bf16.mxu1 %v7858_v9  ;;  %v7916_v9 = vld [vmem:[#allocation11 + $0x4a8] ss:$16 sps:$4 sm:$0xff]  }
 0x32f   :  { %6111 = vmatpush1.bf16.msra.mxu0 %v7853_v62  ;;  %v7921_v62 = vld [vmem:[#allocation11 + $0x4c4] ss:$16 sps:$4 sm:$0xff]  }
 0x330   :  { %6275 = vmatpush1.bf16.msra.mxu1 %v7856_v38  ;;  %6112 = vmatprep.subr.bf16.mxu0 %v7861_v57  ;;  %v7924_v38 = vld [vmem:[#allocation11 + $0x4cc] ss:$16 sps:$4 sm:$0xff]  }
 0x331   :  { %6276 = vmatprep.subr.bf16.mxu1 %v7864_v58 }
 0x333   :  { %6113 = vmatpush1.bf16.msra.mxu0 %v7859_v31 }
 0x334   :  { %6277 = vmatpush1.bf16.msra.mxu1 %v7862_v59  ;;  %6114 = vmatprep.subr.bf16.mxu0 %v7867_v61  ;;  %v7919_v59 = vld [vmem:[#allocation11 + $0x4c0] ss:$16 sps:$4 sm:$0xff]  }
 0x335   :  { %6278 = vmatprep.subr.bf16.mxu1 %v7870_v1  ;;  %v7922_v1 = vld [vmem:[#allocation11 + $0x4c8] ss:$16 sps:$4 sm:$0xff]  }
 0x337   :  { %6115 = vmatpush1.bf16.msra.mxu0 %v7865_v3  ;;  %v7927_v3 = vld [vmem:[#allocation11 + $0x4e4] ss:$16 sps:$4 sm:$0xff]  }
 0x338   :  { %6279 = vmatpush1.bf16.msra.mxu1 %v7868_v6  ;;  %6116 = vmatprep.subr.bf16.mxu0 %v7873_v22  ;;  %v7930_v6 = vld [vmem:[#allocation11 + $0x4ec] ss:$16 sps:$4 sm:$0xff]   ;;  %v7925_v22 = vld [vmem:[#allocation11 + $0x4e0] ss:$16 sps:$4 sm:$0xff]  }
 0x339   :  { %6280 = vmatprep.subr.bf16.mxu1 %v7876_v7  ;;  %v7928_v7 = vld [vmem:[#allocation11 + $0x4e8] ss:$16 sps:$4 sm:$0xff]  }
 0x33b   :  { %6117 = vmatpush1.bf16.msra.mxu0 %v7871_v25  ;;  %v7936_v25 = vld [vmem:[#allocation11 + $0x50c] ss:$16 sps:$4 sm:$0xff]  }
 0x33c   :  { %6281 = vmatpush1.bf16.msra.mxu1 %v7874_v8  ;;  %6118 = vmatprep.subr.bf16.mxu0 %v7879_v60  ;;  %v7934_v8 = vld [vmem:[#allocation11 + $0x508] ss:$16 sps:$4 sm:$0xff]   ;;  %v7939_v60 = vld [vmem:[#allocation11 + $0x524] ss:$16 sps:$4 sm:$0xff]  }
 0x33d   :  { %6282 = vmatprep.subr.bf16.mxu1 %v7882_v10  ;;  %v7942_v10 = vld [vmem:[#allocation11 + $0x52c] ss:$16 sps:$4 sm:$0xff]  }
 0x33f   :  { %6119 = vmatpush1.bf16.msra.mxu0 %v7877_v20  ;;  %v7940_v20 = vld [vmem:[#allocation11 + $0x528] ss:$16 sps:$4 sm:$0xff]  }
 0x340   :  { %6283 = vmatpush1.bf16.msra.mxu1 %v7880_v16  ;;  %6129 = vmatprep.subr.bf16.mxu0 %v7885_v35  ;;  %v7948_v16 = vld [vmem:[#allocation11 + $0x54c] ss:$16 sps:$4 sm:$0xff]   ;;  %v7943_v35 = vld [vmem:[#allocation11 + $0x540] ss:$16 sps:$4 sm:$0xff]  }
 0x341   :  { %6293 = vmatprep.subr.bf16.mxu1 %v7888_v21  ;;  %v7946_v21 = vld [vmem:[#allocation11 + $0x548] ss:$16 sps:$4 sm:$0xff]  }
 0x342   :  { %6121 = vmatmul.mubr.bf16.vlgmr.msra.gmra.mrb[48].mxu0 %v4483_v13 }
 0x343   :  { %6285 = vmatmul.mubr.bf16.vlgmr.msra.gmra.mrb[48].mxu1 %v4483_v13  ;;  %6130 = vmatpush1.bf16.msra.mxu0 %v7883_v52  ;;  %v7954_v52 = vld [vmem:[#allocation11 + $0x56c] ss:$16 sps:$4 sm:$0xff]   ;;  %v7949_v13 = vld [vmem:[#allocation11 + $0x560] ss:$16 sps:$4 sm:$0xff]  }
 0x344   :  { %6161 = vmatprep.mubr.bf16.mxu0 %v4486_v28  ;;  %6294 = vmatpush1.bf16.msra.mxu1 %v7886_v54  ;;  %v7952_v54 = vld [vmem:[#allocation11 + $0x568] ss:$16 sps:$4 sm:$0xff]  }
 0x345   :  { %6325 = vmatprep.mubr.bf16.mxu1 %v4486_v28  ;;  %6131 = vmatprep.subr.bf16.mxu0 %v7891_v0  ;;  %v7957_v0 = vld [vmem:[#allocation11 + $0x584] ss:$16 sps:$4 sm:$0xff]   ;;  %v7960_v28 = vld [vmem:[#allocation11 + $0x58c] ss:$16 sps:$4 sm:$0xff]  }
 0x346   :  { %6295 = vmatprep.subr.bf16.mxu1 %v7894_v17  ;;  %v7955_v17 = vld [vmem:[#allocation11 + $0x580] ss:$16 sps:$4 sm:$0xff]  }
 0x347   :  { %6132 = vmatpush1.bf16.msra.mxu0 %v7889_v27  ;;  %v7958_v27 = vld [vmem:[#allocation11 + $0x588] ss:$16 sps:$4 sm:$0xff]  }
 0x348   :  { %6296 = vmatpush1.bf16.msra.mxu1 %v7892_v15  ;;  %6133 = vmatprep.subr.bf16.mxu0 %v7897_v37  ;;  %v7963_v15 = vld [vmem:[#allocation11 + $0x5a4] ss:$16 sps:$4 sm:$0xff]   ;;  %v7966_v37 = vld [vmem:[#allocation11 + $0x5ac] ss:$16 sps:$4 sm:$0xff]  }
 0x349   :  { %6297 = vmatprep.subr.bf16.mxu1 %v7900_v19  ;;  %v7961_v19 = vld [vmem:[#allocation11 + $0x5a0] ss:$16 sps:$4 sm:$0xff]  }
 0x34b   :  { %6134 = vmatpush1.bf16.msra.mxu0 %v7895_v30  ;;  %v4451_v30 = vsub.s32 4, %v8539_v43 }
 0x34c   :  { %6298 = vmatpush1.bf16.msra.mxu1 %v7898_v32  ;;  %6135 = vmatprep.subr.bf16.mxu0 %v7903_v33  ;;  %v7964_v32 = vld [vmem:[#allocation11 + $0x5a8] ss:$16 sps:$4 sm:$0xff]   ;;  %v7969_v33 = vld [vmem:[#allocation11 + $0x5c4] ss:$16 sps:$4 sm:$0xff]  }
 0x34d   :  { %6299 = vmatprep.subr.bf16.mxu1 %v7906_v34  ;;  %v7972_v34 = vld [vmem:[#allocation11 + $0x5cc] ss:$16 sps:$4 sm:$0xff]  }
 0x34e   :  { %v4260_v40 = vpop.f32.mrb[36].mxu1 }
 0x34f   :  { %v4261_v42 = vadd.f32 %v4260_v40, %v8616_v47  ;;  %v4262_v44 = vpop.f32.mrb[37].mxu1  ;;  %6136 = vmatpush1.bf16.msra.mxu0 %v7901_v36  ;;  %v7967_v36 = vld [vmem:[#allocation11 + $0x5c0] ss:$16 sps:$4 sm:$0xff]   ;;  %v7975_v40 = vld [vmem:[#allocation11 + $0x5e4] ss:$16 sps:$4 sm:$0xff]  }
 0x350   :  { %v4263_v48 = vadd.f32 %v4262_v44, %v8620_v51  ;;  %v4264_v56 = vpop.f32.mrb[38].mxu1  ;;  %6300 = vmatpush1.bf16.msra.mxu1 %v7904_v46  ;;  %6137 = vmatprep.subr.bf16.mxu0 %v7909_v39  ;;  %v4452_v46 = vrot.slane %v8673_v5, %v4451_v30  ;;  %v7970_v39 = vld [vmem:[#allocation11 + $0x5c8] ss:$16 sps:$4 sm:$0xff]  }
 0x351   :  { %v4265_v53 = vpop.f32.mrb[39].mxu1  ;;  %6301 = vmatprep.subr.bf16.mxu1 %v7912_v41  ;;  %v7978_v41 = vld [vmem:[#allocation11 + $0x5ec] ss:$16 sps:$4 sm:$0xff]   ;;  %v7981_v56 = vld [vmem:[#allocation11 + $0x604] ss:$16 sps:$4 sm:$0xff]  }
 0x352   :  { %v4477_v44 = vadd.f32 %v4452_v46, %v8704_v14  ;;  %v7979_v53 = vld [vmem:[#allocation11 + $0x600] ss:$16 sps:$4 sm:$0xff]   ;;  %v7982_v5 = vld [vmem:[#allocation11 + $0x608] ss:$16 sps:$4 sm:$0xff]  }
 0x353   :  { %6138 = vmatpush1.bf16.msra.mxu0 %v7907_v49  ;;  %v7984_v49 = vld [vmem:[#allocation11 + $0x60c] ss:$16 sps:$4 sm:$0xff]   ;;  %v7988_v14 = vld [vmem:[#allocation11 + $0x628] ss:$16 sps:$4 sm:$0xff]  }
 0x354   :  { %6302 = vmatpush1.bf16.msra.mxu1 %v7910_v45  ;;  %6139 = vmatprep.subr.bf16.mxu0 %v7915_v55  ;;  %v4485_v45 = vpack.c.bf16 %v4477_v44, %v4477_v44  ;;  %v7987_v55 = vld [vmem:[#allocation11 + $0x624] ss:$16 sps:$4 sm:$0xff]   ;;  %v8032_v44 = vld [vmem:[#allocation11 + $0x70c] ss:$16 sps:$4 sm:$0xff]  }
 0x355   :  { %v4301_v47 = vpop.f32.mrb[40].mxu0  ;;  %6303 = vmatprep.subr.bf16.mxu1 %v7918_v50  ;;  %v7990_v50 = vld [vmem:[#allocation11 + $0x62c] ss:$16 sps:$4 sm:$0xff]  }
 0x356   :  { %v8718_v51 = vadd.f32 %v4301_v47, %v4261_v42  ;;  %v4303_v57 = vpop.f32.mrb[41].mxu0  ;;  %v7973_v42 = vld [vmem:[#allocation11 + $0x5e0] ss:$16 sps:$4 sm:$0xff]  }
 0x357   :  { %v8720_v58 = vadd.f32 %v4303_v57, %v4263_v48  ;;  %v4305_v31 = vpop.f32.mrb[42].mxu0  ;;  %6140 = vmatpush1.bf16.msra.mxu0 %v7913_v26  ;;  %v7976_v48 = vld [vmem:[#allocation11 + $0x5e8] ss:$16 sps:$4 sm:$0xff]   ;;  %v7985_v26 = vld [vmem:[#allocation11 + $0x620] ss:$16 sps:$4 sm:$0xff]  }
 0x358   :  { %6304 = vmatpush1.bf16.msra.mxu1 %v7916_v9  ;;  %v4306_v61 = vpop.f32.mrb[43].mxu0  ;;  %6141 = vmatprep.subr.bf16.mxu0 %v7921_v62  ;;  %v7993_v9 = vld [vmem:[#allocation11 + $0x644] ss:$16 sps:$4 sm:$0xff]   ;;  %v7996_v62 = vld [vmem:[#allocation11 + $0x64c] ss:$16 sps:$4 sm:$0xff]  }
 0x359   :  { %6305 = vmatprep.subr.bf16.mxu1 %v7924_v38  ;;  %v7991_v47 = vld [vmem:[#allocation11 + $0x640] ss:$16 sps:$4 sm:$0xff]   ;;  %v7994_v38 = vld [vmem:[#allocation11 + $0x648] ss:$16 sps:$4 sm:$0xff]   ;;  %v7999_v57 = vld [vmem:[#allocation11 + $0x664] ss:$16 sps:$4 sm:$0xff]  }
 0x35a   :  { %v8002_v31 = vld [vmem:[#allocation11 + $0x66c] ss:$16 sps:$4 sm:$0xff]   ;;  %v8000_v61 = vld [vmem:[#allocation11 + $0x668] ss:$16 sps:$4 sm:$0xff]  }
 0x35b   :  { %6142 = vmatpush1.bf16.msra.mxu0 %v7919_v59  ;;  %v7997_v59 = vld [vmem:[#allocation11 + $0x660] ss:$16 sps:$4 sm:$0xff]  }
 0x35c   :  { %6306 = vmatpush1.bf16.msra.mxu1 %v7922_v1  ;;  %6143 = vmatprep.subr.bf16.mxu0 %v7927_v3  ;;  %v8005_v1 = vld [vmem:[#allocation11 + $0x684] ss:$16 sps:$4 sm:$0xff]  }
 0x35d   :  { %6307 = vmatprep.subr.bf16.mxu1 %v7930_v6  ;;  %v8008_v6 = vld [vmem:[#allocation11 + $0x68c] ss:$16 sps:$4 sm:$0xff]  }
 0x35f   :  { %6144 = vmatpush1.bf16.msra.mxu0 %v7925_v22 }
 0x360   :  { %6308 = vmatpush1.bf16.msra.mxu1 %v7928_v7  ;;  %6145 = vmatprep.subr.bf16.mxu0 %v7933_v2 }
 0x361   :  { %6309 = vmatprep.subr.bf16.mxu1 %v7936_v25 }
 0x363   :  { %6146 = vmatpush1.bf16.msra.mxu0 %v7931_v29  ;;  %v8003_v29 = vld [vmem:[#allocation11 + $0x680] ss:$16 sps:$4 sm:$0xff]  }
 0x364   :  { %6310 = vmatpush1.bf16.msra.mxu1 %v7934_v8  ;;  %6147 = vmatprep.subr.bf16.mxu0 %v7939_v60  ;;  %v8006_v60 = vld [vmem:[#allocation11 + $0x688] ss:$16 sps:$4 sm:$0xff]  }
 0x365   :  { %6311 = vmatprep.subr.bf16.mxu1 %v7942_v10  ;;  %v8011_v10 = vld [vmem:[#allocation11 + $0x6a4] ss:$16 sps:$4 sm:$0xff]  }
 0x367   :  { %6148 = vmatpush1.bf16.msra.mxu0 %v7937_v11  ;;  %v8014_v11 = vld [vmem:[#allocation11 + $0x6ac] ss:$16 sps:$4 sm:$0xff]  }
 0x368   :  { %6312 = vmatpush1.bf16.msra.mxu1 %v7940_v20  ;;  %6149 = vmatprep.subr.bf16.mxu0 %v7945_v12  ;;  %v8009_v20 = vld [vmem:[#allocation11 + $0x6a0] ss:$16 sps:$4 sm:$0xff]   ;;  %v4463_v12 = vsub.s32 7, %v8539_v43 }
 0x369   :  { %6313 = vmatprep.subr.bf16.mxu1 %v7948_v16  ;;  %v8017_v16 = vld [vmem:[#allocation11 + $0x6c4] ss:$16 sps:$4 sm:$0xff]  }
 0x36b   :  { %6150 = vmatpush1.bf16.msra.mxu0 %v7943_v35 }
 0x36c   :  { %6314 = vmatpush1.bf16.msra.mxu1 %v7946_v21  ;;  %6151 = vmatprep.subr.bf16.mxu0 %v7951_v23  ;;  %v8020_v21 = vld [vmem:[#allocation11 + $0x6cc] ss:$16 sps:$4 sm:$0xff]  }
 0x36d   :  { %6315 = vmatprep.subr.bf16.mxu1 %v7954_v52 }
 0x36f   :  { %6152 = vmatpush1.bf16.msra.mxu0 %v7949_v13 }
 0x370   :  { %6316 = vmatpush1.bf16.msra.mxu1 %v7952_v54  ;;  %6153 = vmatprep.subr.bf16.mxu0 %v7957_v0 }
 0x371   :  { %6317 = vmatprep.subr.bf16.mxu1 %v7960_v28  ;;  %v8728_v28 = vld [vmem:[#allocation10] sm:$0xff] }
 0x373   :  { %6154 = vmatpush1.bf16.msra.mxu0 %v7955_v17  ;;  %v4464_v17 = vrot.slane %v8728_v28, %v4463_v12 }
 0x374   :  { %6318 = vmatpush1.bf16.msra.mxu1 %v7958_v27  ;;  %6155 = vmatprep.subr.bf16.mxu0 %v7963_v15  ;;  %v8015_v15 = vld [vmem:[#allocation11 + $0x6c0] ss:$16 sps:$4 sm:$0xff]  }
 0x375   :  { %6319 = vmatprep.subr.bf16.mxu1 %v7966_v37 }
 0x377   :  { %6156 = vmatpush1.bf16.msra.mxu0 %v7961_v19 }
 0x378   :  { %6320 = vmatpush1.bf16.msra.mxu1 %v7964_v32  ;;  %6157 = vmatprep.subr.bf16.mxu0 %v7969_v33  ;;  %v8018_v32 = vld [vmem:[#allocation11 + $0x6c8] ss:$16 sps:$4 sm:$0xff]   ;;  %v8023_v33 = vld [vmem:[#allocation11 + $0x6e4] ss:$16 sps:$4 sm:$0xff]  }
 0x379   :  { %6321 = vmatprep.subr.bf16.mxu1 %v7972_v34 }
 0x37b   :  { %6158 = vmatpush1.bf16.msra.mxu0 %v7967_v36  ;;  %v8026_v36 = vld [vmem:[#allocation11 + $0x6ec] ss:$16 sps:$4 sm:$0xff]  }
 0x37c   :  { %6322 = vmatpush1.bf16.msra.mxu1 %v7970_v39  ;;  %6159 = vmatprep.subr.bf16.mxu0 %v7975_v40  ;;  %v8021_v39 = vld [vmem:[#allocation11 + $0x6e0] ss:$16 sps:$4 sm:$0xff]   ;;  %v8024_v40 = vld [vmem:[#allocation11 + $0x6e8] ss:$16 sps:$4 sm:$0xff]  }
 0x37d   :  { %6323 = vmatprep.subr.bf16.mxu1 %v7978_v41 }
 0x37f   :  { %6160 = vmatpush1.bf16.msra.mxu0 %v7973_v42  ;;  %v8029_v42 = vld [vmem:[#allocation11 + $0x704] ss:$16 sps:$4 sm:$0xff]  }
 0x380   :  { %6324 = vmatpush1.bf16.msra.mxu1 %v7976_v48  ;;  %6170 = vmatprep.subr.bf16.mxu0 %v7981_v56  ;;  %v8027_v48 = vld [vmem:[#allocation11 + $0x700] ss:$16 sps:$4 sm:$0xff]   ;;  %v8030_v56 = vld [vmem:[#allocation11 + $0x708] ss:$16 sps:$4 sm:$0xff]  }
 0x381   :  { %6334 = vmatprep.subr.bf16.mxu1 %v7984_v49  ;;  %v8035_v49 = vld [vmem:[#allocation11 + $0x724] ss:$16 sps:$4 sm:$0xff]  }
 0x382   :  { %6162 = vmatmul.mubr.bf16.vlgmr.msra.gmra.mrb[48].mxu0 %v4485_v45 }
 0x383   :  { %6326 = vmatmul.mubr.bf16.vlgmr.msra.gmra.mrb[48].mxu1 %v4485_v45  ;;  %6171 = vmatpush1.bf16.msra.mxu0 %v7979_v53  ;;  %v8038_v53 = vld [vmem:[#allocation11 + $0x72c] ss:$16 sps:$4 sm:$0xff]   ;;  %v8033_v45 = vld [vmem:[#allocation11 + $0x720] ss:$16 sps:$4 sm:$0xff]  }
 0x384   :  { %6335 = vmatpush1.bf16.msra.mxu1 %v7982_v5  ;;  %6172 = vmatprep.subr.bf16.mxu0 %v7987_v55  ;;  %v8036_v5 = vld [vmem:[#allocation11 + $0x728] ss:$16 sps:$4 sm:$0xff]   ;;  %v8041_v55 = vld [vmem:[#allocation11 + $0x744] ss:$16 sps:$4 sm:$0xff]  }
 0x385   :  { %6336 = vmatprep.subr.bf16.mxu1 %v7990_v50  ;;  %v8044_v50 = vld [vmem:[#allocation11 + $0x74c] ss:$16 sps:$4 sm:$0xff]  }
 0x387   :  { %6173 = vmatpush1.bf16.msra.mxu0 %v7985_v26  ;;  %v8039_v26 = vld [vmem:[#allocation11 + $0x740] ss:$16 sps:$4 sm:$0xff]  }
 0x388   :  { %6337 = vmatpush1.bf16.msra.mxu1 %v7988_v14  ;;  %6174 = vmatprep.subr.bf16.mxu0 %v7993_v9  ;;  %v8042_v14 = vld [vmem:[#allocation11 + $0x748] ss:$16 sps:$4 sm:$0xff]   ;;  %v8047_v9 = vld [vmem:[#allocation11 + $0x764] ss:$16 sps:$4 sm:$0xff]  }
 0x389   :  { %6338 = vmatprep.subr.bf16.mxu1 %v7996_v62  ;;  %v8050_v62 = vld [vmem:[#allocation11 + $0x76c] ss:$16 sps:$4 sm:$0xff]  }
 0x38b   :  { %6175 = vmatpush1.bf16.msra.mxu0 %v7991_v47  ;;  %v8045_v47 = vld [vmem:[#allocation11 + $0x760] ss:$16 sps:$4 sm:$0xff]  }
 0x38c   :  { %6339 = vmatpush1.bf16.msra.mxu1 %v7994_v38  ;;  %6176 = vmatprep.subr.bf16.mxu0 %v7999_v57  ;;  %v8048_v38 = vld [vmem:[#allocation11 + $0x768] ss:$16 sps:$4 sm:$0xff]   ;;  %v8053_v57 = vld [vmem:[#allocation11 + $0x784] ss:$16 sps:$4 sm:$0xff]  }
 0x38d   :  { %6340 = vmatprep.subr.bf16.mxu1 %v8002_v31  ;;  %v8056_v31 = vld [vmem:[#allocation11 + $0x78c] ss:$16 sps:$4 sm:$0xff]  }
 0x38e   :  { %v4342_v3 = vpop.f32.mrb[40].mxu1 }
 0x38f   :  { %v4343_v22 = vadd.f32 %v4342_v3, %v8718_v51  ;;  %v4344_v7 = vpop.f32.mrb[41].mxu1  ;;  %6177 = vmatpush1.bf16.msra.mxu0 %v7997_v59  ;;  %v8012_v51 = vld [vmem:[#allocation11 + $0x6a8] ss:$16 sps:$4 sm:$0xff]   ;;  %v8051_v59 = vld [vmem:[#allocation11 + $0x780] ss:$16 sps:$4 sm:$0xff]  }
 0x390   :  { %v4345_v2 = vadd.f32 %v4344_v7, %v8720_v58  ;;  %v4346_v25 = vpop.f32.mrb[42].mxu1  ;;  %6341 = vmatpush1.bf16.msra.mxu1 %v8000_v61  ;;  %6178 = vmatprep.subr.bf16.mxu0 %v8005_v1  ;;  %v8054_v61 = vld [vmem:[#allocation11 + $0x788] ss:$16 sps:$4 sm:$0xff]   ;;  %v8059_v1 = vld [vmem:[#allocation11 + $0x7a4] ss:$16 sps:$4 sm:$0xff]  }
 0x391   :  { %v4347_v8 = vpop.f32.mrb[43].mxu1  ;;  %6342 = vmatprep.subr.bf16.mxu1 %v8008_v6  ;;  %v8062_v3 = vld [vmem:[#allocation11 + $0x7ac] ss:$16 sps:$4 sm:$0xff]   ;;  %v8057_v6 = vld [vmem:[#allocation11 + $0x7a0] ss:$16 sps:$4 sm:$0xff]  }
 0x392   :  { %v8060_v7 = vld [vmem:[#allocation11 + $0x7a8] ss:$16 sps:$4 sm:$0xff]   ;;  %v8068_v25 = vld [vmem:[#allocation11 + $0x7cc] ss:$16 sps:$4 sm:$0xff]  }
 0x393   :  { %6179 = vmatpush1.bf16.msra.mxu0 %v8003_v29  ;;  %v8063_v29 = vld [vmem:[#allocation11 + $0x7c0] ss:$16 sps:$4 sm:$0xff]  }
 0x394   :  { %6343 = vmatpush1.bf16.msra.mxu1 %v8006_v60  ;;  %6180 = vmatprep.subr.bf16.mxu0 %v8011_v10  ;;  %v8066_v60 = vld [vmem:[#allocation11 + $0x7c8] ss:$16 sps:$4 sm:$0xff]   ;;  %v8071_v10 = vld [vmem:[#allocation11 + $0x7e4] ss:$16 sps:$4 sm:$0xff]  }
 0x395   :  { %v4383_v35 = vpop.f32.mrb[44].mxu0  ;;  %6344 = vmatprep.subr.bf16.mxu1 %v8014_v11  ;;  %v8074_v11 = vld [vmem:[#allocation11 + $0x7ec] ss:$16 sps:$4 sm:$0xff]  }
 0x396   :  { %v4424_v58 = vpop.f32.mrb[44].mxu1  ;;  %v4384_v23 = vadd.f32 %v4383_v35, %v4343_v22  ;;  %v4385_v52 = vpop.f32.mrb[45].mxu0  ;;  %v4459_v22 = vsub.s32 6, %v8539_v43  ;;  %v8076_v35 = vld [vmem:[#allocation14 + $0xc0] sm:$0xff]  }
 0x397   :  { %v4426_v13 = vpop.f32.mrb[45].mxu1  ;;  %v4386_v54 = vadd.f32 %v4385_v52, %v4345_v2  ;;  %v4387_v0 = vpop.f32.mrb[46].mxu0  ;;  %6181 = vmatpush1.bf16.msra.mxu0 %v8009_v20  ;;  %v8065_v2 = vld [vmem:[#allocation11 + $0x7c4] ss:$16 sps:$4 sm:$0xff]   ;;  %v8069_v20 = vld [vmem:[#allocation11 + $0x7e0] ss:$16 sps:$4 sm:$0xff]  }
 0x398   :  { %v4428_v27 = vpop.f32.mrb[46].mxu1  ;;  %v8731_v37 = vadd.f32 %v4424_v58, %v4384_v23  ;;  %6345 = vmatpush1.bf16.msra.mxu1 %v8012_v51  ;;  %v4388_v19 = vpop.f32.mrb[47].mxu0  ;;  %6182 = vmatprep.subr.bf16.mxu0 %v8017_v16  ;;  %v4460_v8 = vrot.slane %v8728_v28, %v4459_v22  ;;  %v8072_v51 = vld [vmem:[#allocation11 + $0x7e8] ss:$16 sps:$4 sm:$0xff]   ;;  %v8079_v52 = vld [vmem:[#allocation14 + $0x48] sm:$0xff]  }
 0x399   :  { %v4429_v30 = vpop.f32.mrb[47].mxu1  ;;  %v4427_v34 = vadd.f32 %v4426_v13, %v4386_v54  ;;  %6346 = vmatprep.subr.bf16.mxu1 %v8020_v21  ;;  %v8075_v16 = vld [vmem:[#allocation14 + $0x40] sm:$0xff]   ;;  %v8080_v13 = vld [vmem:[#allocation14 + $0xc8] sm:$0xff]   ;;  %v8083_v28 = vld [vmem:[#allocation14 + $0x50] sm:$0xff]  }
 0x39a   :  { %v4479_v12 = vadd.f32 %v4460_v8, %v8731_v37  ;;  %v8077_v58 = vld [vmem:[#allocation14] sm:$0xff]   ;;  %v8081_v54 = vld [vmem:[#allocation14 + $0x8] sm:$0xff]   ;;  %v8085_v27 = vld [vmem:[#allocation14 + $0x10] sm:$0xff]  }
 0x39b   :  { %v4480_v46 = vadd.f32 %v4464_v17, %v4427_v34  ;;  %6183 = vmatpush1.bf16.msra.mxu0 %v8015_v15  ;;  %v8078_v23 = vld [vmem:[#allocation14 + $0x80] sm:$0xff]   ;;  %v8082_v0 = vld [vmem:[#allocation14 + $0x88] sm:$0xff]   ;;  %v8084_v17 = vld [vmem:[#allocation14 + $0xd0] sm:$0xff]  }
 0x39c   :  { %6347 = vmatpush1.bf16.msra.mxu1 %v8018_v32  ;;  %6184 = vmatprep.subr.bf16.mxu0 %v8023_v33  ;;  %v4487_v21 = vpack.c.bf16 %v4479_v12, %v4479_v12  ;;  %v8086_v15 = vld [vmem:[#allocation14 + $0x90] sm:$0xff]   ;;  %v8087_v37 = vld [vmem:[#allocation14 + $0x58] sm:$0xff]   ;;  %v8091_v33 = vld [vmem:[#allocation14 + $0x60] sm:$0xff]  }
 0x39d   :  { %v4488_v41 = vpack.c.bf16 %v4480_v46, %v4480_v46  ;;  %6348 = vmatprep.subr.bf16.mxu1 %v8026_v36  ;;  %v8088_v19 = vld [vmem:[#allocation14 + $0xd8] sm:$0xff]   ;;  %v8092_v34 = vld [vmem:[#allocation14 + $0xe0] sm:$0xff]  }
 0x39e   :  { %v8089_v30 = vld [vmem:[#allocation14 + $0x18] sm:$0xff]   ;;  %v8093_v36 = vld [vmem:[#allocation14 + $0x20] sm:$0xff]  }
 0x39f   :  { %6185 = vmatpush1.bf16.msra.mxu0 %v8021_v39  ;;  %6202 = vmatprep.mubr.bf16.mxu0 %v4488_v41  ;;  %v8090_v32 = vld [vmem:[#allocation14 + $0x98] sm:$0xff]   ;;  %v8094_v46 = vld [vmem:[#allocation14 + $0xa0] sm:$0xff]   ;;  %v8095_v39 = vld [vmem:[#allocation14 + $0x68] sm:$0xff]  }
 0x3a0   :  { %6349 = vmatpush1.bf16.msra.mxu1 %v8024_v40  ;;  %6366 = vmatprep.mubr.bf16.mxu1 %v4488_v41  ;;  %v8096_v40 = vld [vmem:[#allocation14 + $0xe8] sm:$0xff]  }
 0x3a1   :  { %6186 = vmatprep.subr.bf16.mxu0 %v8029_v42  ;;  %6350 = vmatprep.subr.bf16.mxu1 %v8032_v44  ;;  %v8097_v41 = vld [vmem:[#allocation14 + $0x28] sm:$0xff]   ;;  %v8099_v44 = vld [vmem:[#allocation14 + $0x70] sm:$0xff]  }
 0x3a2   :  { %v8098_v42 = vld [vmem:[#allocation14 + $0xa8] sm:$0xff]  }
 0x3a3   :  { %6187 = vmatpush1.bf16.msra.mxu0 %v8027_v48  ;;  %v8100_v48 = vld [vmem:[#allocation14 + $0xf0] sm:$0xff]  }
 0x3a4   :  { %6351 = vmatpush1.bf16.msra.mxu1 %v8030_v56  ;;  %6188 = vmatprep.subr.bf16.mxu0 %v8035_v49  ;;  %v8101_v56 = vld [vmem:[#allocation14 + $0x30] sm:$0xff]  }
 0x3a5   :  { %6352 = vmatprep.subr.bf16.mxu1 %v8038_v53  ;;  %v8102_v49 = vld [vmem:[#allocation14 + $0xb0] sm:$0xff]   ;;  %v8103_v53 = vld [vmem:[#allocation14 + $0x78] sm:$0xff]  }
 0x3a7   :  { %6189 = vmatpush1.bf16.msra.mxu0 %v8033_v45  ;;  %v8104_v45 = vld [vmem:[#allocation14 + $0xf8] sm:$0xff]  }
 0x3a8   :  { %6353 = vmatpush1.bf16.msra.mxu1 %v8036_v5  ;;  %6190 = vmatprep.subr.bf16.mxu0 %v8041_v55  ;;  %v8105_v5 = vld [vmem:[#allocation14 + $0x38] sm:$0xff]  }
 0x3a9   :  { %6354 = vmatprep.subr.bf16.mxu1 %v8044_v50  ;;  %v8106_v55 = vld [vmem:[#allocation14 + $0xb8] sm:$0xff]  }
 0x3aa   :  { %v4745_v50 = vld [vmem:[#allocation13] sm:$0xf] }
 0x3ab   :  { %6191 = vmatpush1.bf16.msra.mxu0 %v8039_v26  ;;  %v4750_v26 = vrot.slane %v4745_v50, %v4435_v18 }
 0x3ac   :  { %6355 = vmatpush1.bf16.msra.mxu1 %v8042_v14  ;;  %6192 = vmatprep.subr.bf16.mxu0 %v8047_v9  ;;  %v4758_v14 = vrot.slane %v4745_v50, %v4443_v4  ;;  %v4754_v9 = vrot.slane %v4745_v50, %v4439_v63 }
 0x3ad   :  { %6356 = vmatprep.subr.bf16.mxu1 %v8050_v62  ;;  %v4762_v62 = vrot.slane %v4745_v50, %v4447_v24  ;;  %v7551_v24 = vld [vmem:[#allocation16] ss:$0 sm:$0xff] }
 0x3af   :  { %6193 = vmatpush1.bf16.msra.mxu0 %v8045_v47 }
 0x3b0   :  { %6357 = vmatpush1.bf16.msra.mxu1 %v8048_v38  ;;  %6194 = vmatprep.subr.bf16.mxu0 %v8053_v57 }
 0x3b1   :  { %6358 = vmatprep.subr.bf16.mxu1 %v8056_v31 }
 0x3b3   :  { %6195 = vmatpush1.bf16.msra.mxu0 %v8051_v59 }
 0x3b4   :  { %6359 = vmatpush1.bf16.msra.mxu1 %v8054_v61  ;;  %6196 = vmatprep.subr.bf16.mxu0 %v8059_v1 }
 0x3b5   :  { %6360 = vmatprep.subr.bf16.mxu1 %v8062_v3 }
 0x3b7   :  { %6197 = vmatpush1.bf16.msra.mxu0 %v8057_v6 }
 0x3b8   :  { %6361 = vmatpush1.bf16.msra.mxu1 %v8060_v7  ;;  %6198 = vmatprep.subr.bf16.mxu0 %v8065_v2 }
 0x3b9   :  { %6362 = vmatprep.subr.bf16.mxu1 %v8068_v25 }
 0x3bb   :  { %6199 = vmatpush1.bf16.msra.mxu0 %v8063_v29 }
 0x3bc   :  { %6363 = vmatpush1.bf16.msra.mxu1 %v8066_v60  ;;  %6200 = vmatprep.subr.bf16.mxu0 %v8071_v10 }
 0x3bd   :  { %6364 = vmatprep.subr.bf16.mxu1 %v8074_v11 }
 0x3bf   :  { %6201 = vmatpush1.bf16.msra.mxu0 %v8069_v20 }
 0x3c0   :  { %6365 = vmatpush1.bf16.msra.mxu1 %v8072_v51  ;;  %7584 = vmatprep.subr.bf16.mxu0 %v8075_v16 }
 0x3c1   :  { %7606 = vmatprep.subr.bf16.mxu1 %v8076_v35 }
 0x3c2   :  { %6203 = vmatmul.mubr.bf16.vlgmr.msra.gmra.mrb[48].mxu0 %v4487_v21 }
 0x3c3   :  { %6367 = vmatmul.mubr.bf16.vlgmr.msra.gmra.mrb[48].mxu1 %v4487_v21  ;;  %7585 = vmatpush3.bf16.msra.mxu0 %v8077_v58 }
 0x3c4   :  { %7607 = vmatpush3.bf16.msra.mxu1 %v8078_v23  ;;  %7586 = vmatprep.subr.bf16.mxu0 %v8079_v52 }
 0x3c5   :  { %7608 = vmatprep.subr.bf16.mxu1 %v8080_v13 }
 0x3c7   :  { %7587 = vmatpush3.bf16.msra.mxu0 %v8081_v54 }
 0x3c8   :  { %7609 = vmatpush3.bf16.msra.mxu1 %v8082_v0  ;;  %7588 = vmatprep.subr.bf16.mxu0 %v8083_v28 }
 0x3c9   :  { %7610 = vmatprep.subr.bf16.mxu1 %v8084_v17 }
 0x3cb   :  { %7589 = vmatpush3.bf16.msra.mxu0 %v8085_v27 }
 0x3cc   :  { %7611 = vmatpush3.bf16.msra.mxu1 %v8086_v15  ;;  %7590 = vmatprep.subr.bf16.mxu0 %v8087_v37 }
 0x3cd   :  { %7612 = vmatprep.subr.bf16.mxu1 %v8088_v19 }
 0x3cf   :  { %7591 = vmatpush3.bf16.msra.mxu0 %v8089_v30 }
 0x3d0   :  { %7613 = vmatpush3.bf16.msra.mxu1 %v8090_v32  ;;  %7592 = vmatprep.subr.bf16.mxu0 %v8091_v33 }
 0x3d1   :  { %7614 = vmatprep.subr.bf16.mxu1 %v8092_v34 }
 0x3d3   :  { %7593 = vmatpush3.bf16.msra.mxu0 %v8093_v36 }
 0x3d4   :  { %7615 = vmatpush3.bf16.msra.mxu1 %v8094_v46  ;;  %7594 = vmatprep.subr.bf16.mxu0 %v8095_v39 }
 0x3d5   :  { %7616 = vmatprep.subr.bf16.mxu1 %v8096_v40 }
 0x3d7   :  { %7595 = vmatpush3.bf16.msra.mxu0 %v8097_v41 }
 0x3d8   :  { %7617 = vmatpush3.bf16.msra.mxu1 %v8098_v42  ;;  %7596 = vmatprep.subr.bf16.mxu0 %v8099_v44 }
 0x3d9   :  { %7618 = vmatprep.subr.bf16.mxu1 %v8100_v48 }
 0x3db   :  { %7597 = vmatpush3.bf16.msra.mxu0 %v8101_v56 }
 0x3dc   :  { %7619 = vmatpush3.bf16.msra.mxu1 %v8102_v49  ;;  %7598 = vmatprep.subr.bf16.mxu0 %v8103_v53 }
 0x3dd   :  { %7620 = vmatprep.subr.bf16.mxu1 %v8104_v45 }
 0x3df   :  { %7599 = vmatpush3.bf16.msra.mxu0 %v8105_v5 }
 0x3e0   :  { %7621 = vmatpush3.bf16.msra.mxu1 %v8106_v55 }
 0x495   :  { %v6204_v47 = vpop.f32.mrb[48].mxu0 }
 0x496   :  { %v7628_v38 = vadd.f32 %v6204_v47, %v4750_v26  ;;  %v6368_v57 = vpop.f32.mrb[48].mxu1  ;;  %v6206_v31 = vpop.f32.mrb[49].mxu0 }
 0x497   :  { %v7630_v59 = vadd.f32 %v6368_v57, %v4758_v14  ;;  %v7629_v61 = vadd.f32 %v6206_v31, %v4754_v9  ;;  %v6370_v1 = vpop.f32.mrb[49].mxu1  ;;  %v6208_v3 = vpop.f32.mrb[50].mxu0 }
 0x498   :  { %v7631_v6 = vadd.f32 %v6370_v1, %v4762_v62  ;;  %v6372_v22 = vpop.f32.mrb[50].mxu1  ;;  %v6209_v18 = vpop.f32.mrb[51].mxu0  ;;  %v6375_v4 = vpack.c.bf16 %v7628_v38, %v7628_v38 }
 0x499   :  { %v6376_v7 = vpack.c.bf16 %v7629_v61, %v7629_v61  ;;  %v6373_v2 = vpop.f32.mrb[51].mxu1  ;;  %v6377_v29 = vpack.c.bf16 %v7630_v59, %v7630_v59 }
 0x49a   :  { %v6378_v25 = vpack.c.bf16 %v7631_v6, %v7631_v6 }
 0x49b   :  { %6674 = vmatprep.mubr.bf16.mxu0 %v6376_v7 }
 0x49c   :  { %6714 = vmatprep.mubr.bf16.mxu1 %v6378_v25  ;;  %6675 = vmatmul.mubr.bf16.vlgmr.msra.gmra.mrb[52].mxu0 %v6375_v4 }
 0x49d   :  { %6715 = vmatmul.mubr.bf16.vlgmr.msra.gmra.mrb[52].mxu1 %v6377_v29 }
 0x56f   :  { %v7600_v43 = vpop.f32.mrb[52].mxu0 }
 0x570   :  { %v7622_v63 = vpop.f32.mrb[52].mxu1  ;;  %v7601_v8 = vpop.f32.mrb[53].mxu0 }
 0x571   :  { %v7602_v60 = vadd.f32 %v7601_v8, %v7600_v43  ;;  %v7623_v10 = vpop.f32.mrb[53].mxu1  ;;  %v7603_v11 = vpop.f32.mrb[54].mxu0 }
 0x572   :  { %v7624_v20 = vadd.f32 %v7623_v10, %v7622_v63  ;;  %v7625_v12 = vpop.f32.mrb[54].mxu1  ;;  %v7604_v51 = vpop.f32.mrb[55].mxu0 }
 0x573   :  { %v6677_v16 = vadd.f32 %v7602_v60, %v7551_v24  ;;  %v7626_v35 = vpop.f32.mrb[55].mxu1 }
 0x575   :  { %v6717_v58 = vadd.f32 %v7624_v20, %v6677_v16 }
 0x577   :  { %6722 = vst [vmem:[#allocation17] sm:$0x3] %v6717_v58 }
 0x578   :  { %8317 = shalt.err (!%p8314_p6)
}
 0x579   :  { %s8318_s19 = scalar_lea.hbm %s8765_s9, 32 }
 0x57a   :  { %p8319_p7 = scmp.ne.s32.totalorder %s8765_s9, %s8318_s19  ;;  %p8322_p8 = scmp.lt.u32.totalorder %s8318_s19, %s8765_s9 }
 0x57c   :  { %p8324_p9 = pnand %p8322_p8, %p8319_p7 }
 0x57e   :  { %8327 = shalt.err (!%p8324_p9)
}
 0x57f   :  { %6732 = dma.vmem_to_hbm [thread:$0]  %s6730_s24, 32, %s8765_s9, [#allocation4]  }
 0x580   :  { %8338 = dma.done.wait [#allocation4], 32  }
 0x581   :  { %8339 = vsyncadd [#allocation4], 4294967264 }
 0x582   :  { %6736 = vsyncpa [#allocation3], 1 }
 0x583   :  { %6737 = vsyncpa [#allocation6], 1 }
 0x584   :  { %6738 = vsyncpa [#allocation9], 1 }
 0x585   :  { %6739 = vsyncpa [#allocation12], 1 }
 0x586   :  { %6740 = vsyncpa [#allocation15], 1 }
 0x587   :  { %6741 = vsyncpa [#allocation4], 1 }

</bundles_post_ra>
